<compile_context>
chip_gen: v7x
topology: tpu7x:2x2x1
jax: 0.10.0
libtpu: 0.0.40
codegen_flags: <defaults>
</compile_context>

<pallas_src>
import jax
import jax.numpy as jnp
from jax.experimental import pallas as pl
from jax.experimental.pallas import tpu as pltpu

LANE = 128  # fc output padded to this lane width


def _round_up(x, m):
    return (x + m - 1) // m * m


def _tile_rows(M, tile_m):
    """Row-tile: multiple of 8, <= tile_m, and >=2 grid steps when M >= 16 so
    both v7x TensorCores get work.  Partial last blocks are safe: compute is
    row-wise independent and out-of-bounds writes are dropped."""
    if M < 16:
        return M
    return min(tile_m, _round_up(pl.cdiv(M, 2), 8))


# ----------------------------------------------------------------------------
# Pallas kernels
# ----------------------------------------------------------------------------
def _conv_relu_pool_kernel(p_ref, w_ref, b_ref, o_ref):
    """Fused conv-as-matmul + 2x2 max-pool + bias + ReLU.

    p_ref : (4, TM, K) bf16   im2col patches; leading dim = pool position q
    w_ref : (K, N)     bf16   conv weight, rows ordered (kh, kw, cin)
    b_ref : (1, N)     f32    bias
    o_ref : (TM, N)    bf16   pooled output rows (one row per pooled pixel)
    """
    w = w_ref[...]
    acc = jnp.dot(p_ref[0], w, preferred_element_type=jnp.float32)
    for q in range(1, 4):                     # static unroll -> 4 MXU matmuls
        acc = jnp.maximum(
            acc, jnp.dot(p_ref[q], w, preferred_element_type=jnp.float32))
    # bias + ReLU hoisted outside the pool max (exact: monotone, q-invariant)
    o_ref[...] = jnp.maximum(acc + b_ref[...], 0.0).astype(o_ref.dtype)


def _matmul_bias_kernel(x_ref, w_ref, b_ref, o_ref):
    y = jnp.dot(x_ref[...], w_ref[...], preferred_element_type=jnp.float32)
    o_ref[...] = (y + b_ref[...]).astype(o_ref.dtype)


def conv_relu_pool_matmul(patches_q, w, b, *, tile_m=1024):
    """patches_q: (4, M, K) bf16; w: (K, N) bf16; b: (1, N) f32 -> (M, N) bf16."""
    _, M, K = patches_q.shape
    N = w.shape[1]
    tm = _tile_rows(M, tile_m)
    return pl.pallas_call(
        _conv_relu_pool_kernel,
        out_shape=jax.ShapeDtypeStruct((M, N), jnp.bfloat16),
        grid=(pl.cdiv(M, tm),),
        in_specs=[
            pl.BlockSpec((4, tm, K), lambda i: (0, i, 0)),
            pl.BlockSpec((K, N), lambda i: (0, 0)),
            pl.BlockSpec((1, N), lambda i: (0, 0)),
        ],
        out_specs=pl.BlockSpec((tm, N), lambda i: (i, 0)),
        compiler_params=pltpu.CompilerParams(
            dimension_semantics=("parallel",)),
    )(patches_q, w, b)


def matmul_bias(x, w, b, *, tile_m=1024):
    """x: (M, K) bf16, w: (K, N) bf16, b: (1, N) f32 -> (M, N) f32."""
    M, K = x.shape
    N = w.shape[1]
    tm = _tile_rows(M, tile_m)
    return pl.pallas_call(
        _matmul_bias_kernel,
        out_shape=jax.ShapeDtypeStruct((M, N), jnp.float32),
        grid=(pl.cdiv(M, tm),),
        in_specs=[
            pl.BlockSpec((tm, K), lambda i: (i, 0)),
            pl.BlockSpec((K, N), lambda i: (0, 0)),
            pl.BlockSpec((1, N), lambda i: (0, 0)),
        ],
        out_specs=pl.BlockSpec((tm, N), lambda i: (i, 0)),
        compiler_params=pltpu.CompilerParams(
            dimension_semantics=("parallel",)),
    )(x, w, b)


# ----------------------------------------------------------------------------
# Plain-JAX glue: im2col grouped by 2x2 pool-window position
# ----------------------------------------------------------------------------
def _im2col_pooled(x_nhwc, *, ksize, pad, k_pad_to):
    """x: (B, H, W, C) -> (4, B*(H//2)*(W//2), k_pad_to) bf16.

    Row r of slice q is the im2col patch of conv-input pixel
    (2*ho + q//2, 2*wo + q%2) of image b, with (b, ho, wo) = unravel(r).
    Columns ordered (kh, kw, cin), zero-padded up to k_pad_to.
    """
    B, H, W, C = x_nhwc.shape
    Ho, Wo = H // 2, W // 2
    K = ksize * ksize * C
    xp = jnp.pad(x_nhwc, ((0, 0), (pad, pad), (pad, pad), (0, 0)))
    cols = [xp[:, kh:kh + H, kw:kw + W, :]
            for kh in range(ksize) for kw in range(ksize)]
    patches = jnp.stack(cols, axis=3).reshape(B, H, W, K)          # (B,H,W,K)
    qs = [patches[:, py::2, px::2, :] for py in range(2) for px in range(2)]
    pq = jnp.stack(qs, axis=0).reshape(4, B * Ho * Wo, K)
    if k_pad_to > K:
        pq = jnp.pad(pq, ((0, 0), (0, 0), (0, k_pad_to - K)))
    return pq.astype(jnp.bfloat16)


# ----------------------------------------------------------------------------
# One-time parameter re-layout (PyTorch format -> kernel format)
# ----------------------------------------------------------------------------
def prepare_params(params):
    def conv_w(w_pt, k_pad_to):
        cout, cin, kh, kw = w_pt.shape
        w2 = jnp.transpose(w_pt, (2, 3, 1, 0)).reshape(kh * kw * cin, cout)
        if k_pad_to > w2.shape[0]:
            w2 = jnp.pad(w2, ((0, k_pad_to - w2.shape[0]), (0, 0)))
        return w2.astype(jnp.bfloat16)

    def bias_row(b, n_pad=None):
        if n_pad is not None and n_pad > b.shape[0]:
            b = jnp.pad(b, (0, n_pad - b.shape[0]))
        return b.reshape(1, -1).astype(jnp.float32)

    # fc: PyTorch flattens NCHW (B,32,7,7) -> columns ordered (c, h, w).
    # Our conv2 output flattens as (ho, wo, c); permute the fc weight once.
    wf = params["fc_w"].reshape(10, 32, 7, 7).transpose(2, 3, 1, 0)  # (7,7,32,10)
    wf = wf.reshape(7 * 7 * 32, 10)
    wf = jnp.pad(wf, ((0, 0), (0, LANE - 10))).astype(jnp.bfloat16)  # (1568,128)

    return {
        "w1": conv_w(params["w1"], 32),  "b1": bias_row(params["b1"]),
        "w2": conv_w(params["w2"], 400), "b2": bias_row(params["b2"]),
        "wf": wf, "bf": bias_row(params["fc_b"], LANE),
    }


# ----------------------------------------------------------------------------
# ConvNet forward (conv1 -> conv2 -> fc; conv3 is unused in the PyTorch forward)
# ----------------------------------------------------------------------------
def convnet_forward(x_nchw, prepped):
    B = x_nchw.shape[0]
    x = jnp.transpose(x_nchw, (0, 2, 3, 1))                       # NCHW -> NHWC

    # conv1 + ReLU + pool: (B,28,28,1) -> (B*196, 16) bf16 pooled rows
    p1 = _im2col_pooled(x, ksize=5, pad=2, k_pad_to=32)
    h1 = conv_relu_pool_matmul(p1, prepped["w1"], prepped["b1"])
    h1 = h1.reshape(B, 14, 14, 16)

    # conv2 + ReLU + pool: (B,14,14,16) -> (B*49, 32) bf16 pooled rows
    p2 = _im2col_pooled(h1, ksize=5, pad=2, k_pad_to=400)
    h2 = conv_relu_pool_matmul(p2, prepped["w2"], prepped["b2"])

    # fc on the (ho, wo, c)-ordered flatten (weight was permuted to match)
    flat = h2.reshape(B, 7 * 7 * 32)                               # bf16 already
    logits = matmul_bias(flat, prepped["wf"], prepped["bf"])       # (B, 128) f32
    return logits[:, :10]


def init_params(key):
    k1, k2, k3, k4, k5, k6 = jax.random.split(key, 6)

    def u(k, shape, fan_in):
        bound = 1.0 / jnp.sqrt(float(fan_in))
        return jax.random.uniform(k, shape, jnp.float32, -bound, bound)

    return {
        "w1": u(k1, (16, 1, 5, 5), 1 * 5 * 5),
        "b1": u(k2, (16,), 1 * 5 * 5),
        "w2": u(k3, (32, 16, 5, 5), 16 * 5 * 5),
        "b2": u(k4, (32,), 16 * 5 * 5),
        "fc_w": u(k5, (10, 32 * 7 * 7), 32 * 7 * 7),   # PyTorch Linear layout
        "fc_b": u(k6, (10,), 32 * 7 * 7),
    }


# Pure-JAX f32 reference (independent of the im2col path) for a sanity check.
def reference_forward(x_nchw, params):
    def block(x, w, b):
        y = jax.lax.conv_general_dilated(
            x, w, (1, 1), ((2, 2), (2, 2)),
            dimension_numbers=("NCHW", "OIHW", "NCHW"))
        y = jax.nn.relu(y + b[None, :, None, None])
        return jax.lax.reduce_window(y, -jnp.inf, jax.lax.max,
                                     (1, 1, 2, 2), (1, 1, 2, 2), "VALID")
    h = block(x_nchw, params["w1"], params["b1"])
    h = block(h, params["w2"], params["b2"])
    flat = h.reshape(x_nchw.shape[0], -1)
    return flat @ params["fc_w"].T + params["fc_b"]


if __name__ == "__main__":
    key = jax.random.PRNGKey(0)
    k_x, k_p = jax.random.split(key)
    # MNIST-shaped input (28x28 is required so that fc in_features = 32*7*7).
    x = jax.random.normal(k_x, (2, 1, 28, 28), dtype=jnp.float32)
    params = init_params(k_p)
    prepped = prepare_params(params)          # one-time weight re-layout

    fwd = jax.jit(convnet_forward)
    out = fwd(x, prepped)
    jax.block_until_ready(out)
    assert out.shape == (2, 10) and out.dtype == jnp.float32

    ref = reference_forward(x, params)
    err = float(jnp.max(jnp.abs(out - ref)))
    scale = float(jnp.max(jnp.abs(ref))) + 1e-6
    assert err / scale < 0.1, f"mismatch vs f32 reference: {err} (scale {scale})"

    print("KERNEL_OK")
</pallas_src>

<mosaic_0001>
module attributes {stable_mosaic.version = 11 : i64} {
  func.func @_conv_relu_pool_kernel(%arg0: i32, %arg1: memref<4x200x32xbf16, #tpu.memory_space<vmem>>, %arg2: memref<32x16xbf16, #tpu.memory_space<vmem>>, %arg3: memref<1x16xf32, #tpu.memory_space<vmem>>, %arg4: memref<200x16xbf16, #tpu.memory_space<vmem>>) attributes {dimension_semantics = [#tpu.dimension_semantics<parallel>], iteration_bounds = array<i64: 2>, scalar_prefetch = 0 : i64, scratch_operands = 0 : i64, tpu.core_type = #tpu.core_type<tc>, window_params = [{transform_indices = @transform_0, window_bounds = array<i64: 4, 200, 32>}, {pipeline_mode = #tpu.pipeline_mode<synchronous>, transform_indices = @transform_1, window_bounds = array<i64: 32, 16>}, {pipeline_mode = #tpu.pipeline_mode<synchronous>, transform_indices = @transform_2, window_bounds = array<i64: 1, 16>}, {transform_indices = @transform_3, window_bounds = array<i64: 200, 16>}]} {
    %c0 = arith.constant 0 : index
    %c0_0 = arith.constant 0 : index
    %0 = vector.load %arg2[%c0, %c0_0] : memref<32x16xbf16, #tpu.memory_space<vmem>>, vector<32x16xbf16>
    %c0_1 = arith.constant 0 : index
    %c0_2 = arith.constant 0 : index
    %c0_3 = arith.constant 0 : index
    %1 = vector.load %arg1[%c0_1, %c0_2, %c0_3] : memref<4x200x32xbf16, #tpu.memory_space<vmem>>, vector<1x200x32xbf16>
    %2 = vector.shape_cast %1 : vector<1x200x32xbf16> to vector<200x32xbf16>
    %cst = arith.constant dense<0.000000e+00> : vector<200x16xf32>
    %3 = tpu.matmul %2, %0, %cst {dimension_numbers = #tpu.dot_dimension_numbers<[1], [0], [0], [1], [0, 0, 1, 1], [], []>} : vector<200x32xbf16>, vector<32x16xbf16>, vector<200x16xf32> -> vector<200x16xf32>
    %c1 = arith.constant 1 : index
    %c0_4 = arith.constant 0 : index
    %c0_5 = arith.constant 0 : index
    %4 = vector.load %arg1[%c1, %c0_4, %c0_5] : memref<4x200x32xbf16, #tpu.memory_space<vmem>>, vector<1x200x32xbf16>
    %5 = vector.shape_cast %4 : vector<1x200x32xbf16> to vector<200x32xbf16>
    %cst_6 = arith.constant dense<0.000000e+00> : vector<200x16xf32>
    %6 = tpu.matmul %5, %0, %cst_6 {dimension_numbers = #tpu.dot_dimension_numbers<[1], [0], [0], [1], [0, 0, 1, 1], [], []>} : vector<200x32xbf16>, vector<32x16xbf16>, vector<200x16xf32> -> vector<200x16xf32>
    %7 = arith.maximumf %3, %6 : vector<200x16xf32>
    %c2 = arith.constant 2 : index
    %c0_7 = arith.constant 0 : index
    %c0_8 = arith.constant 0 : index
    %8 = vector.load %arg1[%c2, %c0_7, %c0_8] : memref<4x200x32xbf16, #tpu.memory_space<vmem>>, vector<1x200x32xbf16>
    %9 = vector.shape_cast %8 : vector<1x200x32xbf16> to vector<200x32xbf16>
    %cst_9 = arith.constant dense<0.000000e+00> : vector<200x16xf32>
    %10 = tpu.matmul %9, %0, %cst_9 {dimension_numbers = #tpu.dot_dimension_numbers<[1], [0], [0], [1], [0, 0, 1, 1], [], []>} : vector<200x32xbf16>, vector<32x16xbf16>, vector<200x16xf32> -> vector<200x16xf32>
    %11 = arith.maximumf %7, %10 : vector<200x16xf32>
    %c3 = arith.constant 3 : index
    %c0_10 = arith.constant 0 : index
    %c0_11 = arith.constant 0 : index
    %12 = vector.load %arg1[%c3, %c0_10, %c0_11] : memref<4x200x32xbf16, #tpu.memory_space<vmem>>, vector<1x200x32xbf16>
    %13 = vector.shape_cast %12 : vector<1x200x32xbf16> to vector<200x32xbf16>
    %cst_12 = arith.constant dense<0.000000e+00> : vector<200x16xf32>
    %14 = tpu.matmul %13, %0, %cst_12 {dimension_numbers = #tpu.dot_dimension_numbers<[1], [0], [0], [1], [0, 0, 1, 1], [], []>} : vector<200x32xbf16>, vector<32x16xbf16>, vector<200x16xf32> -> vector<200x16xf32>
    %15 = arith.maximumf %11, %14 : vector<200x16xf32>
    %c0_13 = arith.constant 0 : index
    %c0_14 = arith.constant 0 : index
    %16 = vector.load %arg3[%c0_13, %c0_14] : memref<1x16xf32, #tpu.memory_space<vmem>>, vector<1x16xf32>
    %17 = vector.broadcast %16 : vector<1x16xf32> to vector<200x16xf32>
    %18 = arith.addf %15, %17 : vector<200x16xf32>
    %cst_15 = arith.constant 0.000000e+00 : f32
    %19 = vector.broadcast %cst_15 : f32 to vector<200x16xf32>
    %20 = arith.maximumf %18, %19 : vector<200x16xf32>
    %21 = arith.truncf %20 : vector<200x16xf32> to vector<200x16xbf16>
    %c0_16 = arith.constant 0 : index
    %c0_17 = arith.constant 0 : index
    %22 = vector.load %arg4[%c0_16, %c0_17] : memref<200x16xbf16, #tpu.memory_space<vmem>>, vector<200x16xbf16>
    tpu.vector_store %arg4[%c0_16, %c0_17], %21 {strides = array<i32>} : memref<200x16xbf16, #tpu.memory_space<vmem>>, vector<200x16xbf16>,
    return
  }
  func.func @transform_0(%arg0: i32) -> (i32, i32, i32) {
    %c0_i32 = arith.constant 0 : i32
    %c0_i32_0 = arith.constant 0 : i32
    %c0_i32_1 = arith.constant 0 : i32
    return %c0_i32, %arg0, %c0_i32_0 : i32, i32, i32
  }
  func.func @transform_1(%arg0: i32) -> (i32, i32) {
    %c0_i32 = arith.constant 0 : i32
    %c0_i32_0 = arith.constant 0 : i32
    %c0_i32_1 = arith.constant 0 : i32
    return %c0_i32, %c0_i32_0 : i32, i32
  }
  func.func @transform_2(%arg0: i32) -> (i32, i32) {
    %c0_i32 = arith.constant 0 : i32
    %c0_i32_0 = arith.constant 0 : i32
    %c0_i32_1 = arith.constant 0 : i32
    return %c0_i32, %c0_i32_0 : i32, i32
  }
  func.func @transform_3(%arg0: i32) -> (i32, i32) {
    %c0_i32 = arith.constant 0 : i32
    %c0_i32_0 = arith.constant 0 : i32
    return %arg0, %c0_i32 : i32, i32
  }
}

module attributes {stable_mosaic.version = 11 : i64} {
  func.func @_conv_relu_pool_kernel(%arg0: i32, %arg1: memref<4x56x400xbf16, #tpu.memory_space<vmem>>, %arg2: memref<400x32xbf16, #tpu.memory_space<vmem>>, %arg3: memref<1x32xf32, #tpu.memory_space<vmem>>, %arg4: memref<56x32xbf16, #tpu.memory_space<vmem>>) attributes {dimension_semantics = [#tpu.dimension_semantics<parallel>], iteration_bounds = array<i64: 2>, scalar_prefetch = 0 : i64, scratch_operands = 0 : i64, tpu.core_type = #tpu.core_type<tc>, window_params = [{transform_indices = @transform_0, window_bounds = array<i64: 4, 56, 400>}, {pipeline_mode = #tpu.pipeline_mode<synchronous>, transform_indices = @transform_1, window_bounds = array<i64: 400, 32>}, {pipeline_mode = #tpu.pipeline_mode<synchronous>, transform_indices = @transform_2, window_bounds = array<i64: 1, 32>}, {transform_indices = @transform_3, window_bounds = array<i64: 56, 32>}]} {
    %c0 = arith.constant 0 : index
    %c0_0 = arith.constant 0 : index
    %0 = vector.load %arg2[%c0, %c0_0] : memref<400x32xbf16, #tpu.memory_space<vmem>>, vector<400x32xbf16>
    %c0_1 = arith.constant 0 : index
    %c0_2 = arith.constant 0 : index
    %c0_3 = arith.constant 0 : index
    %1 = vector.load %arg1[%c0_1, %c0_2, %c0_3] : memref<4x56x400xbf16, #tpu.memory_space<vmem>>, vector<1x56x400xbf16>
    %2 = vector.shape_cast %1 : vector<1x56x400xbf16> to vector<56x400xbf16>
    %cst = arith.constant dense<0.000000e+00> : vector<56x32xf32>
    %3 = tpu.matmul %2, %0, %cst {dimension_numbers = #tpu.dot_dimension_numbers<[1], [0], [0], [1], [0, 0, 1, 1], [], []>} : vector<56x400xbf16>, vector<400x32xbf16>, vector<56x32xf32> -> vector<56x32xf32>
    %c1 = arith.constant 1 : index
    %c0_4 = arith.constant 0 : index
    %c0_5 = arith.constant 0 : index
    %4 = vector.load %arg1[%c1, %c0_4, %c0_5] : memref<4x56x400xbf16, #tpu.memory_space<vmem>>, vector<1x56x400xbf16>
    %5 = vector.shape_cast %4 : vector<1x56x400xbf16> to vector<56x400xbf16>
    %cst_6 = arith.constant dense<0.000000e+00> : vector<56x32xf32>
    %6 = tpu.matmul %5, %0, %cst_6 {dimension_numbers = #tpu.dot_dimension_numbers<[1], [0], [0], [1], [0, 0, 1, 1], [], []>} : vector<56x400xbf16>, vector<400x32xbf16>, vector<56x32xf32> -> vector<56x32xf32>
    %7 = arith.maximumf %3, %6 : vector<56x32xf32>
    %c2 = arith.constant 2 : index
    %c0_7 = arith.constant 0 : index
    %c0_8 = arith.constant 0 : index
    %8 = vector.load %arg1[%c2, %c0_7, %c0_8] : memref<4x56x400xbf16, #tpu.memory_space<vmem>>, vector<1x56x400xbf16>
    %9 = vector.shape_cast %8 : vector<1x56x400xbf16> to vector<56x400xbf16>
    %cst_9 = arith.constant dense<0.000000e+00> : vector<56x32xf32>
    %10 = tpu.matmul %9, %0, %cst_9 {dimension_numbers = #tpu.dot_dimension_numbers<[1], [0], [0], [1], [0, 0, 1, 1], [], []>} : vector<56x400xbf16>, vector<400x32xbf16>, vector<56x32xf32> -> vector<56x32xf32>
    %11 = arith.maximumf %7, %10 : vector<56x32xf32>
    %c3 = arith.constant 3 : index
    %c0_10 = arith.constant 0 : index
    %c0_11 = arith.constant 0 : index
    %12 = vector.load %arg1[%c3, %c0_10, %c0_11] : memref<4x56x400xbf16, #tpu.memory_space<vmem>>, vector<1x56x400xbf16>
    %13 = vector.shape_cast %12 : vector<1x56x400xbf16> to vector<56x400xbf16>
    %cst_12 = arith.constant dense<0.000000e+00> : vector<56x32xf32>
    %14 = tpu.matmul %13, %0, %cst_12 {dimension_numbers = #tpu.dot_dimension_numbers<[1], [0], [0], [1], [0, 0, 1, 1], [], []>} : vector<56x400xbf16>, vector<400x32xbf16>, vector<56x32xf32> -> vector<56x32xf32>
    %15 = arith.maximumf %11, %14 : vector<56x32xf32>
    %c0_13 = arith.constant 0 : index
    %c0_14 = arith.constant 0 : index
    %16 = vector.load %arg3[%c0_13, %c0_14] : memref<1x32xf32, #tpu.memory_space<vmem>>, vector<1x32xf32>
    %17 = vector.broadcast %16 : vector<1x32xf32> to vector<56x32xf32>
    %18 = arith.addf %15, %17 : vector<56x32xf32>
    %cst_15 = arith.constant 0.000000e+00 : f32
    %19 = vector.broadcast %cst_15 : f32 to vector<56x32xf32>
    %20 = arith.maximumf %18, %19 : vector<56x32xf32>
    %21 = arith.truncf %20 : vector<56x32xf32> to vector<56x32xbf16>
    %c0_16 = arith.constant 0 : index
    %c0_17 = arith.constant 0 : index
    %22 = vector.load %arg4[%c0_16, %c0_17] : memref<56x32xbf16, #tpu.memory_space<vmem>>, vector<56x32xbf16>
    tpu.vector_store %arg4[%c0_16, %c0_17], %21 {strides = array<i32>} : memref<56x32xbf16, #tpu.memory_space<vmem>>, vector<56x32xbf16>,
    return
  }
  func.func @transform_0(%arg0: i32) -> (i32, i32, i32) {
    %c0_i32 = arith.constant 0 : i32
    %c0_i32_0 = arith.constant 0 : i32
    %c0_i32_1 = arith.constant 0 : i32
    return %c0_i32, %arg0, %c0_i32_0 : i32, i32, i32
  }
  func.func @transform_1(%arg0: i32) -> (i32, i32) {
    %c0_i32 = arith.constant 0 : i32
    %c0_i32_0 = arith.constant 0 : i32
    %c0_i32_1 = arith.constant 0 : i32
    return %c0_i32, %c0_i32_0 : i32, i32
  }
  func.func @transform_2(%arg0: i32) -> (i32, i32) {
    %c0_i32 = arith.constant 0 : i32
    %c0_i32_0 = arith.constant 0 : i32
    %c0_i32_1 = arith.constant 0 : i32
    return %c0_i32, %c0_i32_0 : i32, i32
  }
  func.func @transform_3(%arg0: i32) -> (i32, i32) {
    %c0_i32 = arith.constant 0 : i32
    %c0_i32_0 = arith.constant 0 : i32
    return %arg0, %c0_i32 : i32, i32
  }
}

module attributes {stable_mosaic.version = 11 : i64} {
  func.func @_matmul_bias_kernel(%arg0: i32, %arg1: memref<2x1568xbf16, #tpu.memory_space<vmem>>, %arg2: memref<1568x128xbf16, #tpu.memory_space<vmem>>, %arg3: memref<1x128xf32, #tpu.memory_space<vmem>>, %arg4: memref<2x128xf32, #tpu.memory_space<vmem>>) attributes {dimension_semantics = [#tpu.dimension_semantics<parallel>], iteration_bounds = array<i64: 1>, scalar_prefetch = 0 : i64, scratch_operands = 0 : i64, tpu.core_type = #tpu.core_type<tc>, window_params = [{transform_indices = @transform_0, window_bounds = array<i64: 2, 1568>}, {pipeline_mode = #tpu.pipeline_mode<synchronous>, transform_indices = @transform_1, window_bounds = array<i64: 1568, 128>}, {pipeline_mode = #tpu.pipeline_mode<synchronous>, transform_indices = @transform_2, window_bounds = array<i64: 1, 128>}, {transform_indices = @transform_3, window_bounds = array<i64: 2, 128>}]} {
    %c0 = arith.constant 0 : index
    %c0_0 = arith.constant 0 : index
    %0 = vector.load %arg1[%c0, %c0_0] : memref<2x1568xbf16, #tpu.memory_space<vmem>>, vector<2x1568xbf16>
    %c0_1 = arith.constant 0 : index
    %c0_2 = arith.constant 0 : index
    %1 = vector.load %arg2[%c0_1, %c0_2] : memref<1568x128xbf16, #tpu.memory_space<vmem>>, vector<1568x128xbf16>
    %cst = arith.constant dense<0.000000e+00> : vector<2x128xf32>
    %2 = tpu.matmul %0, %1, %cst {dimension_numbers = #tpu.dot_dimension_numbers<[1], [0], [0], [1], [0, 0, 1, 1], [], []>} : vector<2x1568xbf16>, vector<1568x128xbf16>, vector<2x128xf32> -> vector<2x128xf32>
    %c0_3 = arith.constant 0 : index
    %c0_4 = arith.constant 0 : index
    %3 = vector.load %arg3[%c0_3, %c0_4] : memref<1x128xf32, #tpu.memory_space<vmem>>, vector<1x128xf32>
    %4 = vector.broadcast %3 : vector<1x128xf32> to vector<2x128xf32>
    %5 = arith.addf %2, %4 : vector<2x128xf32>
    %c0_5 = arith.constant 0 : index
    %c0_6 = arith.constant 0 : index
    %6 = vector.load %arg4[%c0_5, %c0_6] : memref<2x128xf32, #tpu.memory_space<vmem>>, vector<2x128xf32>
    tpu.vector_store %arg4[%c0_5, %c0_6], %5 {strides = array<i32>} : memref<2x128xf32, #tpu.memory_space<vmem>>, vector<2x128xf32>,
    return
  }
  func.func @transform_0(%arg0: i32) -> (i32, i32) {
    %c0_i32 = arith.constant 0 : i32
    %c0_i32_0 = arith.constant 0 : i32
    return %arg0, %c0_i32 : i32, i32
  }
  func.func @transform_1(%arg0: i32) -> (i32, i32) {
    %c0_i32 = arith.constant 0 : i32
    %c0_i32_0 = arith.constant 0 : i32
    %c0_i32_1 = arith.constant 0 : i32
    return %c0_i32, %c0_i32_0 : i32, i32
  }
  func.func @transform_2(%arg0: i32) -> (i32, i32) {
    %c0_i32 = arith.constant 0 : i32
    %c0_i32_0 = arith.constant 0 : i32
    %c0_i32_1 = arith.constant 0 : i32
    return %c0_i32, %c0_i32_0 : i32, i32
  }
  func.func @transform_3(%arg0: i32) -> (i32, i32) {
    %c0_i32 = arith.constant 0 : i32
    %c0_i32_0 = arith.constant 0 : i32
    return %arg0, %c0_i32 : i32, i32
  }
}

</mosaic_0001>

<bundles_post_ra>
// kernel: convnet_forward.3
= control target key start
LH: loop header
LB: loop body
LE: loop exit
PB: predicated region body
PF: predicated region fallthrough
CT: control target
= control target key end

     0   :  { %s3237_s12 = smov 0   ;;  %s3239_s13 = smov 0   ;;  %s4135_s0 = inlined_call_operand.vmem [shape: bf16[4,392,32], index: 0, kind: input, shape index: {}]   ;;  %s4136_s1 = inlined_call_operand.vmem [shape: bf16[32,16], index: 1, kind: input, shape index: {}]   ;;  %s4137_s2 = inlined_call_operand.vmem [shape: f32[1,16], index: 2, kind: input, shape index: {}]   ;;  %s4138_s3 = inlined_call_operand.vmem [shape: bf16[392,16], index: 3, kind: output, shape index: {}]  }
   0x1   :  { %s3241_s14 = smov 0  }
   0x2 LB: > { %s3253_s15 = sadd.s32 4294967295, %s3149_s14   ;;  %s3256_s16 = sadd.s32 1, %s3149_s14   ;;  %s3149_s14 = sphi %s3241_s14, %s4180_s14   ;;  %s3145_s13 = sphi %s3239_s13, %s4179_s13   ;;  %s3141_s12 = sphi %s3237_s12, %s4178_s12  }
   0x3   : > { %s17_s17 = ssub.s32 %s3149_s14, %s3256_s16  ;;  %s20_s18 = sadd.s32 1, %s3145_s13 }
   0x4   : > { %p18_p0 = scmp.eq.s32.totalorder %s17_s17, 0  ;;  %p27_p1 = scmp.ne.s32.totalorder %s3145_s13, %s3141_s12 }
   0x5   : > { %p28_p2 = scmp.eq.s32.totalorder %s3149_s14, 0  ;;  %p99_p3 = scmp.eq.s32.totalorder %s3253_s15, 1 }
   0x6   : > { %s3266_s19 = scalar_select %p18_p0, %s3145_s13, %s20_s18  }
   0x7   : > { %p29_p4 = por %p28_p2, %p27_p1  ;;  %p3268_p5 = por %p99_p3, %p27_p1 }
   0x8   : > { %p2300_p6 = scmp.ge.s32.totalorder %s3149_s14, 2 }
   0xa   : > { %127 = sbr.rel (%p2300_p6) target bundleno = 119 (0x77), region = 24 }
  0x11   : > { %130 = sbr.rel (!%p29_p4) target bundleno = 119 (0x77), region = 28  ;;  %s132_s21 = sand.u32 (%p29_p4), 1, %s3145_s13  }
  0x12   : > { %s135_s22 = smul.u32 (%p29_p4), 25, %s3149_s14 }
  0x13   : > { %s2847_s23 = smul.u32 (%p29_p4), 400, %s132_s21 }
  0x14   : > { %s136_s24 = ssub.s32 (%p29_p4), 49, %s135_s22  ;;  %s2534_s25 = smul.u32 (%p29_p4), 100, %s3149_s14 }
  0x15   : > { %p137_p7 = scmp.lt.s32.totalorder (%p29_p4), %s136_s24, 25  ;;  %s3284_s30 = scalar_lea.vmem (%p29_p4), [#allocation2], %s2847_s23  }
  0x16   : > { %s3279_s28 = scalar_lea.vmem (%p29_p4), %s4135_s0, %s2534_s25  }
  0x18   : > { %s4182_s24 = smov (!%p137_p7, %s136_s24), 25 }
  0x19   : > { %s2301_s29 = sshll.u32 %s4182_s24, 8 }
  0x1a   : > { %p2304_p8 = scmp.eq.s32.totalorder %s2301_s29, 0 }
  0x1b   : > { %s3287_s4 = sshrl.u32 (!%p2304_p8), %s4182_s24, 4 }
  0x1c   : > { %145 = sbr.rel (%p2304_p8) target bundleno = 119 (0x77), region = 32  ;;  %p2305_p9 = scmp.le.s32.totalorder (!%p2304_p8), %s3287_s4, 0 }
  0x23   : > { %2226 = sbr.rel (%p2305_p9) target bundleno = 94 (0x5e), region = 196  ;;  %s4142_s5 = smov (!%p2305_p9), %s3284_s30 }
  0x24   : > { %s4143_s6 = smov (!%p2305_p9), %s3279_s28  ;;  %s3296_s7 = smov (!%p2305_p9), 0  }
  0x25   : > { %s3298_s8 = smov (!%p2305_p9), 0  }
  0x2a LB: >> { %v161_v0 = vld [vmem:[%s3157_s6] sm:$0xf]  ;;  %v163_v1 = vld [vmem:[%s3157_s6 + $0x4] sm:$0xf]  ;;  %v165_v2 = vld [vmem:[%s3157_s6 + $0x8] sm:$0xf]  ;;  %s3165_s8 = sphi %s3298_s8, %s155_s8   ;;  %s3161_s7 = sphi %s3296_s7, %s4144_s7   ;;  %s3157_s6 = sphi %s4143_s6, %s294_s6   ;;  %s3153_s5 = sphi %s4142_s5, %s295_s5  }
  0x2b   : >> { %162 = vst [vmem:[%s3153_s5] sm:$0xf] %v161_v0  ;;  %164 = vst [vmem:[%s3153_s5 + $0x4] sm:$0xf] %v163_v1  ;;  %v167_v3 = vld [vmem:[%s3157_s6 + $0xc] sm:$0xf]  ;;  %s289_s9 = sadd.s32 1, %s3161_s7 }
  0x2c   : >> { %166 = vst [vmem:[%s3153_s5 + $0x8] sm:$0xf] %v165_v2  ;;  %v169_v4 = vld [vmem:[%s3157_s6 + $0x10] sm:$0xf]  ;;  %v171_v5 = vld [vmem:[%s3157_s6 + $0x14] sm:$0xf]  ;;  %p290_p10 = scmp.ge.s32.totalorder %s289_s9, %s3287_s4 }
  0x2d   : >> { %168 = vst [vmem:[%s3153_s5 + $0xc] sm:$0xf] %v167_v3  ;;  %170 = vst [vmem:[%s3153_s5 + $0x10] sm:$0xf] %v169_v4  ;;  %v173_v6 = vld [vmem:[%s3157_s6 + $0x18] sm:$0xf] }
  0x2e   : >> { %172 = vst [vmem:[%s3153_s5 + $0x14] sm:$0xf] %v171_v5  ;;  %v175_v7 = vld [vmem:[%s3157_s6 + $0x1c] sm:$0xf]  ;;  %v177_v8 = vld [vmem:[%s3157_s6 + $0x20] sm:$0xf] }
  0x2f   : >> { %174 = vst [vmem:[%s3153_s5 + $0x18] sm:$0xf] %v173_v6  ;;  %176 = vst [vmem:[%s3153_s5 + $0x1c] sm:$0xf] %v175_v7  ;;  %v179_v9 = vld [vmem:[%s3157_s6 + $0x24] sm:$0xf] }
  0x30   : >> { %178 = vst [vmem:[%s3153_s5 + $0x20] sm:$0xf] %v177_v8  ;;  %v181_v10 = vld [vmem:[%s3157_s6 + $0x28] sm:$0xf]  ;;  %v183_v11 = vld [vmem:[%s3157_s6 + $0x2c] sm:$0xf] }
  0x31   : >> { %180 = vst [vmem:[%s3153_s5 + $0x24] sm:$0xf] %v179_v9  ;;  %182 = vst [vmem:[%s3153_s5 + $0x28] sm:$0xf] %v181_v10  ;;  %v185_v12 = vld [vmem:[%s3157_s6 + $0x30] sm:$0xf] }
  0x32   : >> { %184 = vst [vmem:[%s3153_s5 + $0x2c] sm:$0xf] %v183_v11  ;;  %v187_v13 = vld [vmem:[%s3157_s6 + $0x34] sm:$0xf]  ;;  %v189_v14 = vld [vmem:[%s3157_s6 + $0x38] sm:$0xf] }
  0x33   : >> { %186 = vst [vmem:[%s3153_s5 + $0x30] sm:$0xf] %v185_v12  ;;  %188 = vst [vmem:[%s3153_s5 + $0x34] sm:$0xf] %v187_v13  ;;  %v191_v15 = vld [vmem:[%s3157_s6 + $0x3c] sm:$0xf] }
  0x34   : >> { %190 = vst [vmem:[%s3153_s5 + $0x38] sm:$0xf] %v189_v14  ;;  %v193_v16 = vld [vmem:[%s3157_s6 + $0xc4] sm:$0xf]  ;;  %v195_v17 = vld [vmem:[%s3157_s6 + $0xc8] sm:$0xf] }
  0x35   : >> { %192 = vst [vmem:[%s3153_s5 + $0x3c] sm:$0xf] %v191_v15  ;;  %194 = vst [vmem:[%s3153_s5 + $0x64] sm:$0xf] %v193_v16  ;;  %v197_v18 = vld [vmem:[%s3157_s6 + $0xcc] sm:$0xf] }
  0x36   : >> { %196 = vst [vmem:[%s3153_s5 + $0x68] sm:$0xf] %v195_v17  ;;  %v199_v19 = vld [vmem:[%s3157_s6 + $0xd0] sm:$0xf]  ;;  %v201_v20 = vld [vmem:[%s3157_s6 + $0xd4] sm:$0xf] }
  0x37   : >> { %198 = vst [vmem:[%s3153_s5 + $0x6c] sm:$0xf] %v197_v18  ;;  %200 = vst [vmem:[%s3153_s5 + $0x70] sm:$0xf] %v199_v19  ;;  %v203_v21 = vld [vmem:[%s3157_s6 + $0xd8] sm:$0xf] }
  0x38   : >> { %202 = vst [vmem:[%s3153_s5 + $0x74] sm:$0xf] %v201_v20  ;;  %v205_v22 = vld [vmem:[%s3157_s6 + $0xdc] sm:$0xf]  ;;  %v207_v23 = vld [vmem:[%s3157_s6 + $0xe0] sm:$0xf] }
  0x39   : >> { %204 = vst [vmem:[%s3153_s5 + $0x78] sm:$0xf] %v203_v21  ;;  %206 = vst [vmem:[%s3153_s5 + $0x7c] sm:$0xf] %v205_v22  ;;  %v209_v24 = vld [vmem:[%s3157_s6 + $0xe4] sm:$0xf] }
  0x3a   : >> { %208 = vst [vmem:[%s3153_s5 + $0x80] sm:$0xf] %v207_v23  ;;  %v211_v25 = vld [vmem:[%s3157_s6 + $0xe8] sm:$0xf]  ;;  %v213_v26 = vld [vmem:[%s3157_s6 + $0xec] sm:$0xf] }
  0x3b   : >> { %210 = vst [vmem:[%s3153_s5 + $0x84] sm:$0xf] %v209_v24  ;;  %212 = vst [vmem:[%s3153_s5 + $0x88] sm:$0xf] %v211_v25  ;;  %v215_v27 = vld [vmem:[%s3157_s6 + $0xf0] sm:$0xf] }
  0x3c   : >> { %214 = vst [vmem:[%s3153_s5 + $0x8c] sm:$0xf] %v213_v26  ;;  %v217_v28 = vld [vmem:[%s3157_s6 + $0xf4] sm:$0xf]  ;;  %v219_v29 = vld [vmem:[%s3157_s6 + $0xf8] sm:$0xf] }
  0x3d   : >> { %216 = vst [vmem:[%s3153_s5 + $0x90] sm:$0xf] %v215_v27  ;;  %218 = vst [vmem:[%s3153_s5 + $0x94] sm:$0xf] %v217_v28  ;;  %v221_v30 = vld [vmem:[%s3157_s6 + $0xfc] sm:$0xf] }
  0x3e   : >> { %220 = vst [vmem:[%s3153_s5 + $0x98] sm:$0xf] %v219_v29  ;;  %v223_v31 = vld [vmem:[%s3157_s6 + $0x100] sm:$0xf]  ;;  %v225_v32 = vld [vmem:[%s3157_s6 + $0x188] sm:$0xf] }
  0x3f   : >> { %222 = vst [vmem:[%s3153_s5 + $0x9c] sm:$0xf] %v221_v30  ;;  %224 = vst [vmem:[%s3153_s5 + $0xa0] sm:$0xf] %v223_v31  ;;  %v227_v33 = vld [vmem:[%s3157_s6 + $0x18c] sm:$0xf] }
  0x40   : >> { %226 = vst [vmem:[%s3153_s5 + $0xc8] sm:$0xf] %v225_v32  ;;  %v229_v34 = vld [vmem:[%s3157_s6 + $0x190] sm:$0xf]  ;;  %v231_v35 = vld [vmem:[%s3157_s6 + $0x194] sm:$0xf] }
  0x41   : >> { %228 = vst [vmem:[%s3153_s5 + $0xcc] sm:$0xf] %v227_v33  ;;  %230 = vst [vmem:[%s3153_s5 + $0xd0] sm:$0xf] %v229_v34  ;;  %v233_v36 = vld [vmem:[%s3157_s6 + $0x198] sm:$0xf] }
  0x42   : >> { %232 = vst [vmem:[%s3153_s5 + $0xd4] sm:$0xf] %v231_v35  ;;  %v235_v37 = vld [vmem:[%s3157_s6 + $0x19c] sm:$0xf]  ;;  %v237_v38 = vld [vmem:[%s3157_s6 + $0x1a0] sm:$0xf] }
  0x43   : >> { %234 = vst [vmem:[%s3153_s5 + $0xd8] sm:$0xf] %v233_v36  ;;  %236 = vst [vmem:[%s3153_s5 + $0xdc] sm:$0xf] %v235_v37  ;;  %v239_v39 = vld [vmem:[%s3157_s6 + $0x1a4] sm:$0xf] }
  0x44   : >> { %238 = vst [vmem:[%s3153_s5 + $0xe0] sm:$0xf] %v237_v38  ;;  %v241_v40 = vld [vmem:[%s3157_s6 + $0x1a8] sm:$0xf]  ;;  %v243_v41 = vld [vmem:[%s3157_s6 + $0x1ac] sm:$0xf] }
  0x45   : >> { %240 = vst [vmem:[%s3153_s5 + $0xe4] sm:$0xf] %v239_v39  ;;  %242 = vst [vmem:[%s3153_s5 + $0xe8] sm:$0xf] %v241_v40  ;;  %v245_v42 = vld [vmem:[%s3157_s6 + $0x1b0] sm:$0xf] }
  0x46   : >> { %244 = vst [vmem:[%s3153_s5 + $0xec] sm:$0xf] %v243_v41  ;;  %v247_v43 = vld [vmem:[%s3157_s6 + $0x1b4] sm:$0xf]  ;;  %v249_v44 = vld [vmem:[%s3157_s6 + $0x1b8] sm:$0xf] }
  0x47   : >> { %246 = vst [vmem:[%s3153_s5 + $0xf0] sm:$0xf] %v245_v42  ;;  %248 = vst [vmem:[%s3153_s5 + $0xf4] sm:$0xf] %v247_v43  ;;  %v251_v45 = vld [vmem:[%s3157_s6 + $0x1bc] sm:$0xf] }
  0x48   : >> { %250 = vst [vmem:[%s3153_s5 + $0xf8] sm:$0xf] %v249_v44  ;;  %v253_v46 = vld [vmem:[%s3157_s6 + $0x1c0] sm:$0xf]  ;;  %v255_v47 = vld [vmem:[%s3157_s6 + $0x1c4] sm:$0xf] }
  0x49   : >> { %252 = vst [vmem:[%s3153_s5 + $0xfc] sm:$0xf] %v251_v45  ;;  %254 = vst [vmem:[%s3153_s5 + $0x100] sm:$0xf] %v253_v46  ;;  %v257_v48 = vld [vmem:[%s3157_s6 + $0x24c] sm:$0xf] }
  0x4a   : >> { %256 = vst [vmem:[%s3153_s5 + $0x104] sm:$0xf] %v255_v47  ;;  %v259_v49 = vld [vmem:[%s3157_s6 + $0x250] sm:$0xf]  ;;  %v261_v50 = vld [vmem:[%s3157_s6 + $0x254] sm:$0xf] }
  0x4b   : >> { %258 = vst [vmem:[%s3153_s5 + $0x12c] sm:$0xf] %v257_v48  ;;  %260 = vst [vmem:[%s3153_s5 + $0x130] sm:$0xf] %v259_v49  ;;  %v263_v51 = vld [vmem:[%s3157_s6 + $0x258] sm:$0xf] }
  0x4c   : >> { %262 = vst [vmem:[%s3153_s5 + $0x134] sm:$0xf] %v261_v50  ;;  %v265_v52 = vld [vmem:[%s3157_s6 + $0x25c] sm:$0xf]  ;;  %v267_v53 = vld [vmem:[%s3157_s6 + $0x260] sm:$0xf] }
  0x4d   : >> { %264 = vst [vmem:[%s3153_s5 + $0x138] sm:$0xf] %v263_v51  ;;  %266 = vst [vmem:[%s3153_s5 + $0x13c] sm:$0xf] %v265_v52  ;;  %v269_v54 = vld [vmem:[%s3157_s6 + $0x264] sm:$0xf] }
  0x4e   : >> { %268 = vst [vmem:[%s3153_s5 + $0x140] sm:$0xf] %v267_v53  ;;  %v271_v55 = vld [vmem:[%s3157_s6 + $0x268] sm:$0xf]  ;;  %v273_v56 = vld [vmem:[%s3157_s6 + $0x26c] sm:$0xf] }
  0x4f   : >> { %270 = vst [vmem:[%s3153_s5 + $0x144] sm:$0xf] %v269_v54  ;;  %272 = vst [vmem:[%s3153_s5 + $0x148] sm:$0xf] %v271_v55  ;;  %v275_v57 = vld [vmem:[%s3157_s6 + $0x270] sm:$0xf] }
  0x50   : >> { %274 = vst [vmem:[%s3153_s5 + $0x14c] sm:$0xf] %v273_v56  ;;  %v277_v58 = vld [vmem:[%s3157_s6 + $0x274] sm:$0xf]  ;;  %v279_v59 = vld [vmem:[%s3157_s6 + $0x278] sm:$0xf] }
  0x51   : >> { %276 = vst [vmem:[%s3153_s5 + $0x150] sm:$0xf] %v275_v57  ;;  %278 = vst [vmem:[%s3153_s5 + $0x154] sm:$0xf] %v277_v58  ;;  %v281_v60 = vld [vmem:[%s3157_s6 + $0x27c] sm:$0xf] }
  0x52   : >> { %280 = vst [vmem:[%s3153_s5 + $0x158] sm:$0xf] %v279_v59  ;;  %v283_v61 = vld [vmem:[%s3157_s6 + $0x280] sm:$0xf]  ;;  %v285_v62 = vld [vmem:[%s3157_s6 + $0x284] sm:$0xf] }
  0x53   : >> { %282 = vst [vmem:[%s3153_s5 + $0x15c] sm:$0xf] %v281_v60  ;;  %284 = vst [vmem:[%s3153_s5 + $0x160] sm:$0xf] %v283_v61  ;;  %v287_v63 = vld [vmem:[%s3157_s6 + $0x288] sm:$0xf] }
  0x54   : >> { %286 = vst [vmem:[%s3153_s5 + $0x164] sm:$0xf] %v285_v62  ;;  %288 = vst [vmem:[%s3153_s5 + $0x168] sm:$0xf] %v287_v63  ;;  %s4184_s9 = smov (%p290_p10, %s289_s9), 0  ;;  %s155_s8 = sadd.s32 1, %s3165_s8  }
  0x55   : >> { %s2306_s10 = sshll.u32 %s4184_s9, 6  ;;  %p154_p11 = scmp.ge.s32.totalorder %s155_s8, %s3287_s4 }
  0x56   : >> { %s294_s6 = scalar_lea.vmem %s3279_s28, %s2306_s10   ;;  %s295_s5 = scalar_lea.vmem %s3284_s30, %s2306_s10 [#allocation2]  }
  0x57   : >> { %s4144_s7 = smov %s4184_s9  ;;  %157 = sbr.rel (!%p154_p11) target bundleno = 42 (0x2a), region = 202 }
  0x5e PF: > { %s3455_s11 = sand.u32 15, %s4182_s24   ;;  %s2535_s17 = sshll.u32 %s3287_s4, 6 }
  0x5f   : > { %s3459_s18 = scalar_lea.vmem %s3279_s28, %s2535_s17   ;;  %s3462_s21 = scalar_lea.vmem %s3284_s30, %s2535_s17 [#allocation2]  }
  0x60   : > { %p2311_p12 = scmp.le.s32.totalorder %s3455_s11, 0 }
  0x61   : > { %s4145_s22 = smov (!%p2311_p12), %s3462_s21  ;;  %s4146_s23 = smov (!%p2311_p12), %s3459_s18 }
  0x62   : > { %2240 = sbr.rel (%p2311_p12) target bundleno = 119 (0x77), region = 207  ;;  %s3175_s25 = smov (!%p2311_p12), 0  }
  0x63   : > { %s3179_s26 = smov (!%p2311_p12), 0  }
  0x69 LB: >> { %v312_v0 = vld [vmem:[%s3173_s23] sm:$0xf]  ;;  %v314_v1 = vld [vmem:[%s3173_s23 + $0xc4] sm:$0xf]  ;;  %v316_v2 = vld [vmem:[%s3173_s23 + $0x188] sm:$0xf]  ;;  %s3181_s26 = sphi %s3179_s26, %s306_s26   ;;  %s3177_s25 = sphi %s3175_s25, %s3176_s25   ;;  %s3173_s23 = sphi %s4146_s23, %s325_s23   ;;  %s3169_s22 = sphi %s4145_s22, %s326_s22  }
  0x6a   : >> { %313 = vst [vmem:[%s3169_s22] sm:$0xf] %v312_v0  ;;  %315 = vst [vmem:[%s3169_s22 + $0x64] sm:$0xf] %v314_v1  ;;  %v318_v3 = vld [vmem:[%s3173_s23 + $0x24c] sm:$0xf]  ;;  %s320_s24 = sadd.s32 1, %s3177_s25 }
  0x6b   : >> { %317 = vst [vmem:[%s3169_s22 + $0xc8] sm:$0xf] %v316_v2  ;;  %319 = vst [vmem:[%s3169_s22 + $0x12c] sm:$0xf] %v318_v3  ;;  %p321_p13 = scmp.ge.s32.totalorder %s320_s24, %s3455_s11  ;;  %s306_s26 = sadd.s32 1, %s3181_s26  }
  0x6c   : >> { %p305_p0 = scmp.ge.s32.totalorder %s306_s26, %s3455_s11 }
  0x6d   : >> { %s4186_s24 = smov (%p321_p13, %s320_s24), 0 }
  0x6e   : >> { %s2312_s27 = sshll.u32 %s4186_s24, 2  ;;  %s3176_s25 = smov %s4186_s24  }
  0x6f   : >> { %s325_s23 = scalar_lea.vmem %s3459_s18, %s2312_s27   ;;  %s326_s22 = scalar_lea.vmem %s3462_s21, %s2312_s27 [#allocation2]  }
  0x70   : > { %308 = sbr.rel (!%p305_p0) target bundleno = 105 (0x69), region = 213 }
  0x77 PF: > { %p2314_p1 = scmp.ge.s32.totalorder %s3149_s14, 1  ;;  %p549_p2 = scmp.lt.s32.totalorder %s3149_s14, 3 }
  0x79   : > { %p550_p3 = pnand %p2314_p1, %p549_p2 }
  0x7b   : > { %553 = sbr.rel (%p550_p3) target bundleno = 640 (0x280), region = 90 }
  0x82   : > { %v3005_v4 = vld [vmem:[%s4136_s1] sm:$0xff]   ;;  %v3215_v5 = vmov 0.0   ;;  %v3006_v6 = vld [vmem:[%s4136_s1 + $0x8] sm:$0xff]   ;;  %s556_s14 = sand.u32 1, %s3141_s12   ;;  %vm3216_vm0 = vmmov 0   ;;  %vm693_vm1 = vcmask 261120  }
  0x83   : > { %2623 = vmatprep.subr.bf16.mxu0 %v3215_v5  ;;  %2679 = vmatprep.subr.bf16.mxu1 %v3215_v5  ;;  %s2848_s5 = smul.u32 400, %s556_s14  ;;  %v3866_v2 = vld [vmem:[%s4137_s2] ss:$0 sm:$0xff]  ;;  %vm1894_vm2 = vcmask 125952  }
  0x84   : > { %2624 = vmatpush3.bf16.msra.mxu0 %v3005_v4  ;;  %2680 = vmatpush3.bf16.msra.mxu1 %v3005_v4  ;;  %s2849_s9 = smul.u32 100, %s556_s14 }
  0x85   : > { %2625 = vmatprep.subr.bf16.mxu0 %v3215_v5  ;;  %2681 = vmatprep.subr.bf16.mxu1 %v3215_v5  ;;  %s3500_s6 = scalar_lea.vmem [#allocation2], %s2848_s5  ;;  %s1927_s10 = smul.u32 (%p3268_p5), 25, %s3253_s15 }
  0x86   : > { %2627 = vmatprep.mubr.msk.bf16.mxu0 %vm3216_vm0, %v3215_v5  ;;  %2683 = vmatprep.mubr.msk.bf16.mxu1 %vm3216_vm0, %v3215_v5  ;;  %v3007_v7 = vld [vmem:[%s3500_s6] sm:$0xff]   ;;  %v3009_v9 = vld [vmem:[%s3500_s6 + $0x8] sm:$0xff]   ;;  %v3011_v11 = vld [vmem:[%s3500_s6 + $0x10] sm:$0xff]   ;;  %s3878_s12 = scalar_lea.vmem [#allocation3], %s2849_s9   ;;  %s2562_s11 = smul.u32 (%p3268_p5), 100, %s3253_s15 }
  0x87   : > { %v3008_v8 = vld [vmem:[%s3500_s6 + $0x64] sm:$0xff]   ;;  %v3010_v10 = vld [vmem:[%s3500_s6 + $0x6c] sm:$0xff]   ;;  %v3012_v12 = vld [vmem:[%s3500_s6 + $0x74] sm:$0xff]   ;;  %s1928_s17 = ssub.s32 (%p3268_p5), 49, %s1927_s10 }
  0x88   : > { %2626 = vmatpush3.bf16.msra.mxu0 %v3006_v6  ;;  %2682 = vmatpush3.bf16.msra.mxu1 %v3006_v6  ;;  %v3013_v13 = vld [vmem:[%s3500_s6 + $0x18] sm:$0xff]   ;;  %v3015_v15 = vld [vmem:[%s3500_s6 + $0x20] sm:$0xff]   ;;  %v3017_v17 = vld [vmem:[%s3500_s6 + $0x28] sm:$0xff]   ;;  %p1929_p4 = scmp.lt.s32.totalorder (%p3268_p5), %s1928_s17, 25  ;;  %s4026_s22 = scalar_lea.vmem (%p3268_p5), %s4138_s3, %s2562_s11  }
  0x89   : > { %2735 = vmatprep.subr.bf16.mxu0 %v3215_v5  ;;  %2791 = vmatprep.subr.bf16.mxu1 %v3215_v5  ;;  %v3014_v14 = vld [vmem:[%s3500_s6 + $0x7c] sm:$0xff]   ;;  %v3016_v16 = vld [vmem:[%s3500_s6 + $0x84] sm:$0xff]   ;;  %v3018_v18 = vld [vmem:[%s3500_s6 + $0x8c] sm:$0xff]  }
  0x8a   : > { %v3019_v19 = vld [vmem:[%s3500_s6 + $0x30] sm:$0xff]   ;;  %v3021_v21 = vld [vmem:[%s3500_s6 + $0x38] sm:$0xff]   ;;  %v3023_v23 = vld [vmem:[%s3500_s6 + $0x40] sm:$0xff]  }
  0x8b   : > { %2628 = vmatmul.mubr.msk.bf16.vlgmr.msra.gmra.mrb[0].mxu0 %vm693_vm1, %v3007_v7  ;;  %2684 = vmatmul.mubr.msk.bf16.vlgmr.msra.gmra.mrb[0].mxu1 %vm693_vm1, %v3008_v8  ;;  %v3020_v20 = vld [vmem:[%s3500_s6 + $0x94] sm:$0xff]   ;;  %v3022_v22 = vld [vmem:[%s3500_s6 + $0x9c] sm:$0xff]   ;;  %v3024_v24 = vld [vmem:[%s3500_s6 + $0xa4] sm:$0xff]  }
  0x8c   : > { %2736 = vmatpush3.bf16.msra.mxu0 %v3005_v4  ;;  %2792 = vmatpush3.bf16.msra.mxu1 %v3005_v4  ;;  %v3025_v25 = vld [vmem:[%s3500_s6 + $0x48] sm:$0xff]   ;;  %v3027_v27 = vld [vmem:[%s3500_s6 + $0x50] sm:$0xff]   ;;  %v3029_v29 = vld [vmem:[%s3500_s6 + $0x58] sm:$0xff]  }
  0x8d   : > { %2631 = vmatprep.mubr.msk.bf16.mxu0 %vm3216_vm0, %v3215_v5  ;;  %2687 = vmatprep.mubr.msk.bf16.mxu1 %vm3216_vm0, %v3215_v5  ;;  %v3026_v26 = vld [vmem:[%s3500_s6 + $0xac] sm:$0xff]   ;;  %v3028_v28 = vld [vmem:[%s3500_s6 + $0xb4] sm:$0xff]   ;;  %v3030_v30 = vld [vmem:[%s3500_s6 + $0xbc] sm:$0xff]  }
  0x8e   : > { %2737 = vmatprep.subr.bf16.mxu0 %v3215_v5  ;;  %2793 = vmatprep.subr.bf16.mxu1 %v3215_v5  ;;  %v3031_v31 = vld [vmem:[%s3500_s6 + $0x60] ss:$0 sps:$4 sm:$0xff]   ;;  %v3032_v32 = vld [vmem:[%s3500_s6 + $0xc4] ss:$0 sps:$4 sm:$0xff]   ;;  %v3033_v33 = vld [vmem:[%s3500_s6 + $0xc8] sm:$0xff]  }
  0x8f   : > { %v3034_v34 = vld [vmem:[%s3500_s6 + $0x12c] sm:$0xff]   ;;  %v3036_v36 = vld [vmem:[%s3500_s6 + $0x134] sm:$0xff]   ;;  %v3038_v38 = vld [vmem:[%s3500_s6 + $0x13c] sm:$0xff]  }
  0x90   : > { %2738 = vmatpush3.bf16.msra.mxu0 %v3006_v6  ;;  %2794 = vmatpush3.bf16.msra.mxu1 %v3006_v6  ;;  %v3035_v35 = vld [vmem:[%s3500_s6 + $0xd0] sm:$0xff]   ;;  %v3037_v37 = vld [vmem:[%s3500_s6 + $0xd8] sm:$0xff]   ;;  %v3039_v39 = vld [vmem:[%s3500_s6 + $0xe0] sm:$0xff]  }
  0x91   : > { %v3040_v40 = vld [vmem:[%s3500_s6 + $0x144] sm:$0xff]   ;;  %v3042_v42 = vld [vmem:[%s3500_s6 + $0x14c] sm:$0xff]   ;;  %v3044_v44 = vld [vmem:[%s3500_s6 + $0x154] sm:$0xff]  }
  0x92   : > { %v3041_v41 = vld [vmem:[%s3500_s6 + $0xe8] sm:$0xff]   ;;  %v3043_v43 = vld [vmem:[%s3500_s6 + $0xf0] sm:$0xff]   ;;  %v3045_v45 = vld [vmem:[%s3500_s6 + $0xf8] sm:$0xff]  }
  0x93   : > { %2632 = vmatmul.mubr.msk.bf16.gmra.mrb[4].mxu0 %vm693_vm1, %v3009_v9  ;;  %2688 = vmatmul.mubr.msk.bf16.gmra.mrb[4].mxu1 %vm693_vm1, %v3010_v10  ;;  %v3046_v46 = vld [vmem:[%s3500_s6 + $0x15c] sm:$0xff]   ;;  %v3048_v48 = vld [vmem:[%s3500_s6 + $0x164] sm:$0xff]   ;;  %v3050_v50 = vld [vmem:[%s3500_s6 + $0x16c] sm:$0xff]  }
  0x94   : > { %2635 = vmatprep.mubr.msk.bf16.mxu0 %vm3216_vm0, %v3215_v5  ;;  %2691 = vmatprep.mubr.msk.bf16.mxu1 %vm3216_vm0, %v3215_v5  ;;  %v3047_v47 = vld [vmem:[%s3500_s6 + $0x100] sm:$0xff]   ;;  %v3049_v49 = vld [vmem:[%s3500_s6 + $0x108] sm:$0xff]   ;;  %v3051_v51 = vld [vmem:[%s3500_s6 + $0x110] sm:$0xff]  }
  0x95   : > { %v3052_v52 = vld [vmem:[%s3500_s6 + $0x174] sm:$0xff]   ;;  %v3054_v54 = vld [vmem:[%s3500_s6 + $0x17c] sm:$0xff]   ;;  %v3056_v56 = vld [vmem:[%s3500_s6 + $0x184] sm:$0xff]  }
  0x96   : > { %v3053_v53 = vld [vmem:[%s3500_s6 + $0x118] sm:$0xff]   ;;  %v3055_v55 = vld [vmem:[%s3500_s6 + $0x120] sm:$0xff]   ;;  %v3057_v57 = vld [vmem:[%s3500_s6 + $0x128] ss:$0 sps:$4 sm:$0xff]  }
  0x97   : > { %v3058_v58 = vld [vmem:[%s3500_s6 + $0x18c] ss:$0 sps:$4 sm:$0xff]  }
  0x9b   : > { %2636 = vmatmul.mubr.msk.bf16.gmra.mrb[8].mxu0 %vm693_vm1, %v3011_v11  ;;  %2692 = vmatmul.mubr.msk.bf16.gmra.mrb[8].mxu1 %vm693_vm1, %v3012_v12 }
  0x9c   : > { %2639 = vmatprep.mubr.msk.bf16.mxu0 %vm3216_vm0, %v3215_v5  ;;  %2695 = vmatprep.mubr.msk.bf16.mxu1 %vm3216_vm0, %v3215_v5 }
  0xa3   : > { %2640 = vmatmul.mubr.msk.bf16.gmra.mrb[12].mxu0 %vm693_vm1, %v3013_v13  ;;  %2696 = vmatmul.mubr.msk.bf16.gmra.mrb[12].mxu1 %vm693_vm1, %v3014_v14 }
  0xa4   : > { %2643 = vmatprep.mubr.msk.bf16.mxu0 %vm3216_vm0, %v3215_v5  ;;  %2699 = vmatprep.mubr.msk.bf16.mxu1 %vm3216_vm0, %v3215_v5 }
  0xab   : > { %2644 = vmatmul.mubr.msk.bf16.gmra.mrb[16].mxu0 %vm693_vm1, %v3015_v15  ;;  %2700 = vmatmul.mubr.msk.bf16.gmra.mrb[16].mxu1 %vm693_vm1, %v3016_v16 }
  0xac   : > { %2647 = vmatprep.mubr.msk.bf16.mxu0 %vm3216_vm0, %v3215_v5  ;;  %2703 = vmatprep.mubr.msk.bf16.mxu1 %vm3216_vm0, %v3215_v5 }
  0xb3   : > { %2648 = vmatmul.mubr.msk.bf16.gmra.mrb[20].mxu0 %vm693_vm1, %v3017_v17  ;;  %2704 = vmatmul.mubr.msk.bf16.gmra.mrb[20].mxu1 %vm693_vm1, %v3018_v18 }
  0xb4   : > { %2651 = vmatprep.mubr.msk.bf16.mxu0 %vm3216_vm0, %v3215_v5  ;;  %2707 = vmatprep.mubr.msk.bf16.mxu1 %vm3216_vm0, %v3215_v5 }
  0xbb   : > { %2652 = vmatmul.mubr.msk.bf16.gmra.mrb[24].mxu0 %vm693_vm1, %v3019_v19  ;;  %2708 = vmatmul.mubr.msk.bf16.gmra.mrb[24].mxu1 %vm693_vm1, %v3020_v20 }
  0xbc   : > { %2655 = vmatprep.mubr.msk.bf16.mxu0 %vm3216_vm0, %v3215_v5  ;;  %2711 = vmatprep.mubr.msk.bf16.mxu1 %vm3216_vm0, %v3215_v5 }
  0xc3   : > { %2656 = vmatmul.mubr.msk.bf16.gmra.mrb[28].mxu0 %vm693_vm1, %v3021_v21  ;;  %2712 = vmatmul.mubr.msk.bf16.gmra.mrb[28].mxu1 %vm693_vm1, %v3022_v22 }
  0xc4   : > { %2659 = vmatprep.mubr.msk.bf16.mxu0 %vm3216_vm0, %v3215_v5  ;;  %2715 = vmatprep.mubr.msk.bf16.mxu1 %vm3216_vm0, %v3215_v5 }
  0xcb   : > { %2660 = vmatmul.mubr.msk.bf16.gmra.mrb[32].mxu0 %vm693_vm1, %v3023_v23  ;;  %2716 = vmatmul.mubr.msk.bf16.gmra.mrb[32].mxu1 %vm693_vm1, %v3024_v24 }
  0xcc   : > { %2663 = vmatprep.mubr.msk.bf16.mxu0 %vm3216_vm0, %v3215_v5  ;;  %2719 = vmatprep.mubr.msk.bf16.mxu1 %vm3216_vm0, %v3215_v5 }
  0xd3   : > { %2664 = vmatmul.mubr.msk.bf16.gmra.mrb[36].mxu0 %vm693_vm1, %v3025_v25  ;;  %2720 = vmatmul.mubr.msk.bf16.gmra.mrb[36].mxu1 %vm693_vm1, %v3026_v26 }
  0xd4   : > { %2667 = vmatprep.mubr.msk.bf16.mxu0 %vm3216_vm0, %v3215_v5  ;;  %2723 = vmatprep.mubr.msk.bf16.mxu1 %vm3216_vm0, %v3215_v5 }
  0xdb   : > { %2668 = vmatmul.mubr.msk.bf16.gmra.mrb[40].mxu0 %vm693_vm1, %v3027_v27  ;;  %2724 = vmatmul.mubr.msk.bf16.gmra.mrb[40].mxu1 %vm693_vm1, %v3028_v28 }
  0xdc   : > { %2671 = vmatprep.mubr.msk.bf16.mxu0 %vm3216_vm0, %v3215_v5  ;;  %2727 = vmatprep.mubr.msk.bf16.mxu1 %vm3216_vm0, %v3215_v5 }
  0xe3   : > { %2672 = vmatmul.mubr.msk.bf16.gmra.mrb[44].mxu0 %vm693_vm1, %v3029_v29  ;;  %2728 = vmatmul.mubr.msk.bf16.gmra.mrb[44].mxu1 %vm693_vm1, %v3030_v30 }
  0xe4   : > { %2675 = vmatprep.mubr.msk.bf16.mxu0 %vm3216_vm0, %v3215_v5  ;;  %2731 = vmatprep.mubr.msk.bf16.mxu1 %vm3216_vm0, %v3215_v5 }
  0xeb   : > { %2676 = vmatmul.mubr.msk.bf16.gmra.mrb[48].mxu0 %vm693_vm1, %v3031_v31  ;;  %2732 = vmatmul.mubr.msk.bf16.gmra.mrb[48].mxu1 %vm693_vm1, %v3032_v32 }
  0xec   : > { %2739 = vmatprep.mubr.msk.bf16.mxu0 %vm3216_vm0, %v3215_v5  ;;  %2795 = vmatprep.mubr.msk.bf16.mxu1 %vm3216_vm0, %v3215_v5 }
  0xf3   : > { %2740 = vmatmul.mubr.msk.bf16.vlgmr.msra.gmra.mrb[52].mxu0 %vm693_vm1, %v3033_v33  ;;  %2796 = vmatmul.mubr.msk.bf16.vlgmr.msra.gmra.mrb[52].mxu1 %vm693_vm1, %v3034_v34 }
  0xf4   : > { %2743 = vmatprep.mubr.msk.bf16.mxu0 %vm3216_vm0, %v3215_v5  ;;  %2799 = vmatprep.mubr.msk.bf16.mxu1 %vm3216_vm0, %v3215_v5 }
  0xfb   : > { %2744 = vmatmul.mubr.msk.bf16.gmra.mrb[56].mxu0 %vm693_vm1, %v3035_v35  ;;  %2800 = vmatmul.mubr.msk.bf16.gmra.mrb[56].mxu1 %vm693_vm1, %v3036_v36 }
  0xfc   : > { %2747 = vmatprep.mubr.msk.bf16.mxu0 %vm3216_vm0, %v3215_v5  ;;  %2803 = vmatprep.mubr.msk.bf16.mxu1 %vm3216_vm0, %v3215_v5 }
 0x103   : > { %2748 = vmatmul.mubr.msk.bf16.gmra.mrb[60].mxu0 %vm693_vm1, %v3037_v37  ;;  %2804 = vmatmul.mubr.msk.bf16.gmra.mrb[60].mxu1 %vm693_vm1, %v3038_v38 }
 0x104   : > { %2751 = vmatprep.mubr.msk.bf16.mxu0 %vm3216_vm0, %v3215_v5  ;;  %2807 = vmatprep.mubr.msk.bf16.mxu1 %vm3216_vm0, %v3215_v5 }
 0x10b   : > { %2752 = vmatmul.mubr.msk.bf16.gmra.mrb[64].mxu0 %vm693_vm1, %v3039_v39  ;;  %2808 = vmatmul.mubr.msk.bf16.gmra.mrb[64].mxu1 %vm693_vm1, %v3040_v40 }
 0x10c   : > { %2755 = vmatprep.mubr.msk.bf16.mxu0 %vm3216_vm0, %v3215_v5  ;;  %2811 = vmatprep.mubr.msk.bf16.mxu1 %vm3216_vm0, %v3215_v5 }
 0x113   : > { %2756 = vmatmul.mubr.msk.bf16.gmra.mrb[68].mxu0 %vm693_vm1, %v3041_v41  ;;  %2812 = vmatmul.mubr.msk.bf16.gmra.mrb[68].mxu1 %vm693_vm1, %v3042_v42 }
 0x114   : > { %2759 = vmatprep.mubr.msk.bf16.mxu0 %vm3216_vm0, %v3215_v5  ;;  %2815 = vmatprep.mubr.msk.bf16.mxu1 %vm3216_vm0, %v3215_v5 }
 0x11b   : > { %2760 = vmatmul.mubr.msk.bf16.gmra.mrb[72].mxu0 %vm693_vm1, %v3043_v43  ;;  %2816 = vmatmul.mubr.msk.bf16.gmra.mrb[72].mxu1 %vm693_vm1, %v3044_v44 }
 0x11c   : > { %2763 = vmatprep.mubr.msk.bf16.mxu0 %vm3216_vm0, %v3215_v5  ;;  %2819 = vmatprep.mubr.msk.bf16.mxu1 %vm3216_vm0, %v3215_v5 }
 0x123   : > { %2764 = vmatmul.mubr.msk.bf16.gmra.mrb[76].mxu0 %vm693_vm1, %v3045_v45  ;;  %2820 = vmatmul.mubr.msk.bf16.gmra.mrb[76].mxu1 %vm693_vm1, %v3046_v46 }
 0x124   : > { %2767 = vmatprep.mubr.msk.bf16.mxu0 %vm3216_vm0, %v3215_v5  ;;  %2823 = vmatprep.mubr.msk.bf16.mxu1 %vm3216_vm0, %v3215_v5 }
 0x12b   : > { %2768 = vmatmul.mubr.msk.bf16.gmra.mrb[80].mxu0 %vm693_vm1, %v3047_v47  ;;  %2824 = vmatmul.mubr.msk.bf16.gmra.mrb[80].mxu1 %vm693_vm1, %v3048_v48 }
 0x12c   : > { %2771 = vmatprep.mubr.msk.bf16.mxu0 %vm3216_vm0, %v3215_v5  ;;  %2827 = vmatprep.mubr.msk.bf16.mxu1 %vm3216_vm0, %v3215_v5 }
 0x133   : > { %2772 = vmatmul.mubr.msk.bf16.gmra.mrb[84].mxu0 %vm693_vm1, %v3049_v49  ;;  %2828 = vmatmul.mubr.msk.bf16.gmra.mrb[84].mxu1 %vm693_vm1, %v3050_v50 }
 0x134   : > { %2775 = vmatprep.mubr.msk.bf16.mxu0 %vm3216_vm0, %v3215_v5  ;;  %2831 = vmatprep.mubr.msk.bf16.mxu1 %vm3216_vm0, %v3215_v5 }
 0x13b   : > { %2776 = vmatmul.mubr.msk.bf16.gmra.mrb[88].mxu0 %vm693_vm1, %v3051_v51  ;;  %2832 = vmatmul.mubr.msk.bf16.gmra.mrb[88].mxu1 %vm693_vm1, %v3052_v52 }
 0x13c   : > { %2779 = vmatprep.mubr.msk.bf16.mxu0 %vm3216_vm0, %v3215_v5  ;;  %2835 = vmatprep.mubr.msk.bf16.mxu1 %vm3216_vm0, %v3215_v5 }
 0x143   : > { %2780 = vmatmul.mubr.msk.bf16.gmra.mrb[92].mxu0 %vm693_vm1, %v3053_v53  ;;  %2836 = vmatmul.mubr.msk.bf16.gmra.mrb[92].mxu1 %vm693_vm1, %v3054_v54 }
 0x144   : > { %2783 = vmatprep.mubr.msk.bf16.mxu0 %vm3216_vm0, %v3215_v5  ;;  %2839 = vmatprep.mubr.msk.bf16.mxu1 %vm3216_vm0, %v3215_v5 }
 0x14b   : > { %2784 = vmatmul.mubr.msk.bf16.gmra.mrb[96].mxu0 %vm693_vm1, %v3055_v55  ;;  %2840 = vmatmul.mubr.msk.bf16.gmra.mrb[96].mxu1 %vm693_vm1, %v3056_v56 }
 0x14c   : > { %2787 = vmatprep.mubr.msk.bf16.mxu0 %vm3216_vm0, %v3215_v5  ;;  %2843 = vmatprep.mubr.msk.bf16.mxu1 %vm3216_vm0, %v3215_v5 }
 0x153   : > { %2788 = vmatmul.mubr.msk.bf16.gmra.mrb[100].mxu0 %vm693_vm1, %v3057_v57  ;;  %2844 = vmatmul.mubr.msk.bf16.gmra.mrb[100].mxu1 %vm693_vm1, %v3058_v58 }
 0x15e   : > { %v3710_v59 = vpop.f32.mrb[0].mxu0  ;;  %v3712_v60 = vpop.f32.mrb[0].mxu1 }
 0x15f   : > { %v1133_v61 = vmax.f32 %v3710_v59, %v3712_v60  ;;  %v2629_v62 = vpop.f32.mrb[1].mxu0  ;;  %v2685_v63 = vpop.f32.mrb[1].mxu1 }
 0x160   : > { %v3716_v0 = vpop.f32.mrb[2].mxu0  ;;  %v3718_v1 = vpop.f32.mrb[2].mxu1 }
 0x161   : > { %v2630_v3 = vpop.f32.mrb[3].mxu0  ;;  %v2686_v4 = vpop.f32.mrb[3].mxu1 }
 0x166   : > { %v3722_v5 = vpop.f32.mrb[4].mxu0  ;;  %v3724_v6 = vpop.f32.mrb[4].mxu1 }
 0x167   : > { %v2633_v8 = vpop.f32.mrb[5].mxu0  ;;  %v2689_v9 = vpop.f32.mrb[5].mxu1 }
 0x168   : > { %v3728_v10 = vpop.f32.mrb[6].mxu0  ;;  %v3730_v11 = vpop.f32.mrb[6].mxu1 }
 0x169   : > { %v2634_v13 = vpop.f32.mrb[7].mxu0  ;;  %v2690_v14 = vpop.f32.mrb[7].mxu1 }
 0x16e   : > { %v3734_v15 = vpop.f32.mrb[8].mxu0  ;;  %v3736_v16 = vpop.f32.mrb[8].mxu1 }
 0x16f   : > { %v2637_v18 = vpop.f32.mrb[9].mxu0  ;;  %v2693_v19 = vpop.f32.mrb[9].mxu1 }
 0x170   : > { %v3740_v20 = vpop.f32.mrb[10].mxu0  ;;  %v3742_v21 = vpop.f32.mrb[10].mxu1 }
 0x171   : > { %v2638_v23 = vpop.f32.mrb[11].mxu0  ;;  %v2694_v24 = vpop.f32.mrb[11].mxu1 }
 0x176   : > { %v3746_v25 = vpop.f32.mrb[12].mxu0  ;;  %v3748_v26 = vpop.f32.mrb[12].mxu1 }
 0x177   : > { %v2641_v28 = vpop.f32.mrb[13].mxu0  ;;  %v2697_v29 = vpop.f32.mrb[13].mxu1 }
 0x178   : > { %v3752_v30 = vpop.f32.mrb[14].mxu0  ;;  %v3754_v31 = vpop.f32.mrb[14].mxu1 }
 0x179   : > { %v2642_v33 = vpop.f32.mrb[15].mxu0  ;;  %v2698_v34 = vpop.f32.mrb[15].mxu1 }
 0x17e   : > { %v3758_v35 = vpop.f32.mrb[16].mxu0  ;;  %v3760_v36 = vpop.f32.mrb[16].mxu1 }
 0x17f   : > { %v2645_v38 = vpop.f32.mrb[17].mxu0  ;;  %v2701_v39 = vpop.f32.mrb[17].mxu1 }
 0x180   : > { %v3764_v40 = vpop.f32.mrb[18].mxu0  ;;  %v3766_v41 = vpop.f32.mrb[18].mxu1 }
 0x181   : > { %v2646_v43 = vpop.f32.mrb[19].mxu0  ;;  %v2702_v44 = vpop.f32.mrb[19].mxu1 }
 0x186   : > { %v3770_v45 = vpop.f32.mrb[20].mxu0  ;;  %v3772_v46 = vpop.f32.mrb[20].mxu1 }
 0x187   : > { %v2649_v48 = vpop.f32.mrb[21].mxu0  ;;  %v2705_v49 = vpop.f32.mrb[21].mxu1 }
 0x188   : > { %v3776_v50 = vpop.f32.mrb[22].mxu0  ;;  %v3778_v51 = vpop.f32.mrb[22].mxu1 }
 0x189   : > { %v2650_v53 = vpop.f32.mrb[23].mxu0  ;;  %v2706_v54 = vpop.f32.mrb[23].mxu1 }
 0x18e   : > { %v3782_v55 = vpop.f32.mrb[24].mxu0  ;;  %v3784_v56 = vpop.f32.mrb[24].mxu1 }
 0x18f   : > { %v2653_v58 = vpop.f32.mrb[25].mxu0  ;;  %v2709_v62 = vpop.f32.mrb[25].mxu1 }
 0x190   : > { %v3788_v63 = vpop.f32.mrb[26].mxu0  ;;  %v3790_v3 = vpop.f32.mrb[26].mxu1 }
 0x191   : > { %v2654_v8 = vpop.f32.mrb[27].mxu0  ;;  %v2710_v9 = vpop.f32.mrb[27].mxu1 }
 0x196   : > { %v3794_v13 = vpop.f32.mrb[28].mxu0  ;;  %v3796_v14 = vpop.f32.mrb[28].mxu1 }
 0x197   : > { %v2657_v19 = vpop.f32.mrb[29].mxu0  ;;  %v2713_v23 = vpop.f32.mrb[29].mxu1 }
 0x198   : > { %v3800_v24 = vpop.f32.mrb[30].mxu0  ;;  %v3802_v28 = vpop.f32.mrb[30].mxu1 }
 0x199   : > { %v2658_v33 = vpop.f32.mrb[31].mxu0  ;;  %v2714_v34 = vpop.f32.mrb[31].mxu1 }
 0x19e   : > { %v3806_v38 = vpop.f32.mrb[32].mxu0  ;;  %v3808_v39 = vpop.f32.mrb[32].mxu1 }
 0x19f   : > { %v2661_v44 = vpop.f32.mrb[33].mxu0  ;;  %v2717_v48 = vpop.f32.mrb[33].mxu1 }
 0x1a0   : > { %v3812_v49 = vpop.f32.mrb[34].mxu0  ;;  %v3814_v53 = vpop.f32.mrb[34].mxu1 }
 0x1a1   : > { %v2662_v58 = vpop.f32.mrb[35].mxu0  ;;  %v2718_v62 = vpop.f32.mrb[35].mxu1 }
 0x1a6   : > { %v3818_v8 = vpop.f32.mrb[36].mxu0  ;;  %v3820_v9 = vpop.f32.mrb[36].mxu1 }
 0x1a7   : > { %v2665_v23 = vpop.f32.mrb[37].mxu0  ;;  %v2721_v33 = vpop.f32.mrb[37].mxu1 }
 0x1a8   : > { %v3824_v34 = vpop.f32.mrb[38].mxu0  ;;  %v3826_v44 = vpop.f32.mrb[38].mxu1 }
 0x1a9   : > { %v2666_v43 = vpop.f32.mrb[39].mxu0  ;;  %v2722_v54 = vpop.f32.mrb[39].mxu1 }
 0x1ae   : > { %v3830_v58 = vpop.f32.mrb[40].mxu0  ;;  %v3832_v62 = vpop.f32.mrb[40].mxu1 }
 0x1af   : > { %v2669_v18 = vpop.f32.mrb[41].mxu0  ;;  %v2725_v19 = vpop.f32.mrb[41].mxu1 }
 0x1b0   : > { %v3836_v23 = vpop.f32.mrb[42].mxu0  ;;  %v3838_v33 = vpop.f32.mrb[42].mxu1 }
 0x1b1   : > { %v2670_v57 = vpop.f32.mrb[43].mxu0  ;;  %v2726_v48 = vpop.f32.mrb[43].mxu1 }
 0x1b6   : > { %v3842_v43 = vpop.f32.mrb[44].mxu0  ;;  %v3844_v54 = vpop.f32.mrb[44].mxu1 }
 0x1b7   : > { %v2673_v47 = vpop.f32.mrb[45].mxu0  ;;  %v2729_v29 = vpop.f32.mrb[45].mxu1 }
 0x1b8   : > { %v3848_v18 = vpop.f32.mrb[46].mxu0  ;;  %v3850_v19 = vpop.f32.mrb[46].mxu1 }
 0x1b9   : > { %v2674_v37 = vpop.f32.mrb[47].mxu0  ;;  %v2730_v4 = vpop.f32.mrb[47].mxu1 }
 0x1be   : > { %v3854_v57 = vpop.f32.mrb[48].mxu0  ;;  %v3856_v48 = vpop.f32.mrb[48].mxu1 }
 0x1bf   : > { %4147 = vst [vmem:[#allocation4_spill] sm:$0xff] %v3854_v57  ;;  %4148 = vst [vmem:[#allocation5_spill] sm:$0xff] %v3856_v48  ;;  %v2677_v27 = vpop.f32.mrb[49].mxu0  ;;  %v2733_v52 = vpop.f32.mrb[49].mxu1 }
 0x1c0   : > { %v866_v47 = vpop.f32.mrb[50].mxu0  ;;  %v1130_v29 = vpop.f32.mrb[50].mxu1 }
 0x1c1   : > { %v2678_v22 = vpop.f32.mrb[51].mxu0  ;;  %v2734_v17 = vpop.f32.mrb[51].mxu1 }
 0x1c2   : > { %v4149_v22 = vmax.f32 %v3716_v0, %v3718_v1 }
 0x1c6   : > { %v1320_v12 = vpop.f32.mrb[52].mxu0  ;;  %v1609_v7 = vpop.f32.mrb[52].mxu1 }
 0x1c7   : > { %v1422_v37 = vmax.f32 %v1133_v61, %v1320_v12  ;;  %v2741_v4 = vpop.f32.mrb[53].mxu0  ;;  %v2797_v42 = vpop.f32.mrb[53].mxu1 }
 0x1c8   : > { %v1323_v27 = vpop.f32.mrb[54].mxu0  ;;  %v1612_v52 = vpop.f32.mrb[54].mxu1 }
 0x1c9   : > { %v1711_v47 = vmax.f32 %v1422_v37, %v1609_v7  ;;  %v1423_v17 = vmax.f32 %v4149_v22, %v1323_v27  ;;  %v2742_v29 = vpop.f32.mrb[55].mxu0  ;;  %v2798_v32 = vpop.f32.mrb[55].mxu1  ;;  %v4150_v7 = vmax.f32 %v3722_v5, %v3724_v6  ;;  %v4151_v22 = vmax.f32 %v3728_v10, %v3730_v11 }
 0x1ca   : > { %v4152_v10 = vmax.f32 %v3734_v15, %v3736_v16 }
 0x1cb   : > { %v1743_v59 = vadd.f32 %v3866_v2, %v1711_v47  ;;  %v1712_v60 = vmax.f32 %v1423_v17, %v1612_v52 }
 0x1cd   : > { %v1768_v61 = vmax.f32 %v1743_v59, 0.0  ;;  %v1744_v12 = vadd.f32 %v3866_v2, %v1712_v60 }
 0x1ce   : > { %v1328_v42 = vpop.f32.mrb[56].mxu0  ;;  %v1617_v4 = vpop.f32.mrb[56].mxu1 }
 0x1cf   : > { %v2537_v48 = vpack.c.bf16 %v1768_v61, %v1768_v61  ;;  %v1769_v57 = vmax.f32 %v1744_v12, 0.0  ;;  %v1424_v0 = vmax.f32 %v4150_v7, %v1328_v42  ;;  %v2745_v1 = vpop.f32.mrb[57].mxu0  ;;  %v2801_v37 = vpop.f32.mrb[57].mxu1 }
 0x1d0   : > { %v1331_v32 = vpop.f32.mrb[58].mxu0  ;;  %v1620_v27 = vpop.f32.mrb[58].mxu1 }
 0x1d1   : > { %1895 = vst.msk [vmem:[%s3878_s12] sm:$0xf] %vm1894_vm2, %v2537_v48  ;;  %v2538_v52 = vpack.c.bf16 %v1769_v57, %v1769_v57  ;;  %v1713_v47 = vmax.f32 %v1424_v0, %v1617_v4  ;;  %v1425_v17 = vmax.f32 %v4151_v22, %v1331_v32  ;;  %v2746_v29 = vpop.f32.mrb[59].mxu0  ;;  %v2802_v5 = vpop.f32.mrb[59].mxu1 }
 0x1d3   : > { %1896 = vst.msk [vmem:[%s3878_s12 + $0x4] sm:$0xf] %vm1894_vm2, %v2538_v52  ;;  %v1745_v6 = vadd.f32 %v3866_v2, %v1713_v47  ;;  %v1714_v59 = vmax.f32 %v1425_v17, %v1620_v27  ;;  %v4153_v27 = vmax.f32 %v3740_v20, %v3742_v21  ;;  %v4154_v20 = vmax.f32 %v3746_v25, %v3748_v26 }
 0x1d5   : > { %v1770_v60 = vmax.f32 %v1745_v6, 0.0  ;;  %v1746_v61 = vadd.f32 %v3866_v2, %v1714_v59 }
 0x1d6   : > { %v1336_v12 = vpop.f32.mrb[60].mxu0  ;;  %v1625_v48 = vpop.f32.mrb[60].mxu1 }
 0x1d7   : > { %v2539_v57 = vpack.c.bf16 %v1770_v60, %v1770_v60  ;;  %v1771_v42 = vmax.f32 %v1746_v61, 0.0  ;;  %v1426_v11 = vmax.f32 %v4152_v10, %v1336_v12  ;;  %v2749_v4 = vpop.f32.mrb[61].mxu0  ;;  %v2805_v7 = vpop.f32.mrb[61].mxu1 }
 0x1d8   : > { %v1339_v0 = vpop.f32.mrb[62].mxu0  ;;  %v1628_v1 = vpop.f32.mrb[62].mxu1 }
 0x1d9   : > { %1897 = vst.msk [vmem:[%s3878_s12 + $0x8] sm:$0xf] %vm1894_vm2, %v2539_v57  ;;  %v2540_v37 = vpack.c.bf16 %v1771_v42, %v1771_v42  ;;  %v1715_v32 = vmax.f32 %v1426_v11, %v1625_v48  ;;  %v1427_v52 = vmax.f32 %v4153_v27, %v1339_v0  ;;  %v2750_v47 = vpop.f32.mrb[63].mxu0  ;;  %v2806_v22 = vpop.f32.mrb[63].mxu1  ;;  %v4155_v11 = vmax.f32 %v3752_v30, %v3754_v31 }
 0x1da   : > { %v4156_v30 = vmax.f32 %v3758_v35, %v3760_v36 }
 0x1db   : > { %1898 = vst.msk [vmem:[%s3878_s12 + $0xc] sm:$0xf] %vm1894_vm2, %v2540_v37  ;;  %v1747_v15 = vadd.f32 %v3866_v2, %v1715_v32  ;;  %v1716_v16 = vmax.f32 %v1427_v52, %v1628_v1 }
 0x1dd   : > { %v1772_v17 = vmax.f32 %v1747_v15, 0.0  ;;  %v1748_v29 = vadd.f32 %v3866_v2, %v1716_v16 }
 0x1de   : > { %v1344_v5 = vpop.f32.mrb[64].mxu0  ;;  %v1633_v6 = vpop.f32.mrb[64].mxu1 }
 0x1df   : > { %v2541_v59 = vpack.c.bf16 %v1772_v17, %v1772_v17  ;;  %v1773_v60 = vmax.f32 %v1748_v29, 0.0  ;;  %v1428_v21 = vmax.f32 %v4154_v20, %v1344_v5  ;;  %v2753_v61 = vpop.f32.mrb[65].mxu0  ;;  %v2809_v12 = vpop.f32.mrb[65].mxu1 }
 0x1e0   : > { %v1347_v48 = vpop.f32.mrb[66].mxu0  ;;  %v1636_v57 = vpop.f32.mrb[66].mxu1 }
 0x1e1   : > { %1899 = vst.msk [vmem:[%s3878_s12 + $0x10] sm:$0xf] %vm1894_vm2, %v2541_v59  ;;  %v2542_v42 = vpack.c.bf16 %v1773_v60, %v1773_v60  ;;  %v1717_v10 = vmax.f32 %v1428_v21, %v1633_v6  ;;  %v1429_v4 = vmax.f32 %v4155_v11, %v1347_v48  ;;  %v2754_v7 = vpop.f32.mrb[67].mxu0  ;;  %v2810_v0 = vpop.f32.mrb[67].mxu1  ;;  %v4157_v6 = vmax.f32 %v3764_v40, %v3766_v41 }
 0x1e2   : > { %v4158_v40 = vmax.f32 %v3770_v45, %v3772_v46 }
 0x1e3   : > { %1900 = vst.msk [vmem:[%s3878_s12 + $0x14] sm:$0xf] %vm1894_vm2, %v2542_v42  ;;  %v1749_v25 = vadd.f32 %v3866_v2, %v1717_v10  ;;  %v1718_v26 = vmax.f32 %v1429_v4, %v1636_v57 }
 0x1e5   : > { %v1774_v1 = vmax.f32 %v1749_v25, 0.0  ;;  %v1750_v37 = vadd.f32 %v3866_v2, %v1718_v26  ;;  %v4159_v26 = vmax.f32 %v3776_v50, %v3778_v51  ;;  %v4160_v50 = vmax.f32 %v3782_v55, %v3784_v56 }
 0x1e6   : > { %v1352_v32 = vpop.f32.mrb[68].mxu0  ;;  %v1641_v27 = vpop.f32.mrb[68].mxu1 }
 0x1e7   : > { %v2543_v52 = vpack.c.bf16 %v1774_v1, %v1774_v1  ;;  %v1775_v47 = vmax.f32 %v1750_v37, 0.0  ;;  %v1430_v31 = vmax.f32 %v4156_v30, %v1352_v32  ;;  %v2757_v22 = vpop.f32.mrb[69].mxu0  ;;  %v2813_v15 = vpop.f32.mrb[69].mxu1 }
 0x1e8   : > { %v1355_v16 = vpop.f32.mrb[70].mxu0  ;;  %v1644_v17 = vpop.f32.mrb[70].mxu1 }
 0x1e9   : > { %1901 = vst.msk [vmem:[%s3878_s12 + $0x18] sm:$0xf] %vm1894_vm2, %v2543_v52  ;;  %v2544_v29 = vpack.c.bf16 %v1775_v47, %v1775_v47  ;;  %v1719_v5 = vmax.f32 %v1430_v31, %v1641_v27  ;;  %v1431_v59 = vmax.f32 %v4157_v6, %v1355_v16  ;;  %v2758_v60 = vpop.f32.mrb[71].mxu0  ;;  %v2814_v20 = vpop.f32.mrb[71].mxu1 }
 0x1eb   : > { %1902 = vst.msk [vmem:[%s3878_s12 + $0x1c] sm:$0xf] %vm1894_vm2, %v2544_v29  ;;  %v1751_v35 = vadd.f32 %v3866_v2, %v1719_v5  ;;  %v1720_v36 = vmax.f32 %v1431_v59, %v1644_v17  ;;  %v4161_v59 = vmax.f32 %v3788_v63, %v3790_v3  ;;  %v4162_v63 = vmax.f32 %v3794_v13, %v3796_v14 }
 0x1ed   : > { %v1776_v21 = vmax.f32 %v1751_v35, 0.0  ;;  %v1752_v61 = vadd.f32 %v3866_v2, %v1720_v36 }
 0x1ee   : > { %v1360_v12 = vpop.f32.mrb[72].mxu0  ;;  %v1649_v48 = vpop.f32.mrb[72].mxu1 }
 0x1ef   : > { %v2545_v57 = vpack.c.bf16 %v1776_v21, %v1776_v21  ;;  %v1777_v42 = vmax.f32 %v1752_v61, 0.0  ;;  %v1432_v41 = vmax.f32 %v4158_v40, %v1360_v12  ;;  %v2761_v10 = vpop.f32.mrb[73].mxu0  ;;  %v2817_v11 = vpop.f32.mrb[73].mxu1 }
 0x1f0   : > { %v1363_v4 = vpop.f32.mrb[74].mxu0  ;;  %v1652_v7 = vpop.f32.mrb[74].mxu1 }
 0x1f1   : > { %1903 = vst.msk [vmem:[%s3878_s12 + $0x20] sm:$0xf] %vm1894_vm2, %v2545_v57  ;;  %v2546_v0 = vpack.c.bf16 %v1777_v42, %v1777_v42  ;;  %v1721_v25 = vmax.f32 %v1432_v41, %v1649_v48  ;;  %v1433_v1 = vmax.f32 %v4159_v26, %v1363_v4  ;;  %v2762_v37 = vpop.f32.mrb[75].mxu0  ;;  %v2818_v32 = vpop.f32.mrb[75].mxu1 }
 0x1f3   : > { %1904 = vst.msk [vmem:[%s3878_s12 + $0x24] sm:$0xf] %vm1894_vm2, %v2546_v0  ;;  %v1753_v45 = vadd.f32 %v3866_v2, %v1721_v25  ;;  %v1722_v46 = vmax.f32 %v1433_v1, %v1652_v7  ;;  %v4163_v7 = vmax.f32 %v3800_v24, %v3802_v28  ;;  %v4164_v24 = vmax.f32 %v3806_v38, %v3808_v39 }
 0x1f5   : > { %v1778_v27 = vmax.f32 %v1753_v45, 0.0  ;;  %v1754_v52 = vadd.f32 %v3866_v2, %v1722_v46 }
 0x1f6   : > { %v1368_v47 = vpop.f32.mrb[76].mxu0  ;;  %v1657_v30 = vpop.f32.mrb[76].mxu1 }
 0x1f7   : > { %v2547_v31 = vpack.c.bf16 %v1778_v27, %v1778_v27  ;;  %v1779_v22 = vmax.f32 %v1754_v52, 0.0  ;;  %v1434_v51 = vmax.f32 %v4160_v50, %v1368_v47  ;;  %v2765_v15 = vpop.f32.mrb[77].mxu0  ;;  %v2821_v16 = vpop.f32.mrb[77].mxu1 }
 0x1f8   : > { %v1371_v17 = vpop.f32.mrb[78].mxu0  ;;  %v1660_v29 = vpop.f32.mrb[78].mxu1 }
 0x1f9   : > { %1905 = vst.msk [vmem:[%s3878_s12 + $0x28] sm:$0xf] %vm1894_vm2, %v2547_v31  ;;  %v2548_v5 = vpack.c.bf16 %v1779_v22, %v1779_v22  ;;  %v1723_v6 = vmax.f32 %v1434_v51, %v1657_v30  ;;  %v1435_v60 = vmax.f32 %v4161_v59, %v1371_v17  ;;  %v2766_v20 = vpop.f32.mrb[79].mxu0  ;;  %v2822_v35 = vpop.f32.mrb[79].mxu1  ;;  %v4165_v51 = vmax.f32 %v3812_v49, %v3814_v53 }
 0x1fa   : > { %v4166_v49 = vmax.f32 %v3818_v8, %v3820_v9 }
 0x1fb   : > { %1906 = vst.msk [vmem:[%s3878_s12 + $0x2c] sm:$0xf] %vm1894_vm2, %v2548_v5  ;;  %v1755_v55 = vadd.f32 %v3866_v2, %v1723_v6  ;;  %v1724_v56 = vmax.f32 %v1435_v60, %v1660_v29 }
 0x1fd   : > { %v1780_v36 = vmax.f32 %v1755_v55, 0.0  ;;  %v1756_v21 = vadd.f32 %v3866_v2, %v1724_v56 }
 0x1fe   : > { %v1376_v61 = vpop.f32.mrb[80].mxu0  ;;  %v1665_v12 = vpop.f32.mrb[80].mxu1 }
 0x1ff   : > { %v2549_v48 = vpack.c.bf16 %v1780_v36, %v1780_v36  ;;  %v1781_v57 = vmax.f32 %v1756_v21, 0.0  ;;  %v1436_v3 = vmax.f32 %v4162_v63, %v1376_v61  ;;  %v2769_v42 = vpop.f32.mrb[81].mxu0  ;;  %v2825_v40 = vpop.f32.mrb[81].mxu1 }
 0x200   : > { %v1379_v41 = vpop.f32.mrb[82].mxu0  ;;  %v1668_v10 = vpop.f32.mrb[82].mxu1 }
 0x201   : > { %1907 = vst.msk [vmem:[%s3878_s12 + $0x30] sm:$0xf] %vm1894_vm2, %v2549_v48  ;;  %v2550_v11 = vpack.c.bf16 %v1781_v57, %v1781_v57  ;;  %v1725_v4 = vmax.f32 %v1436_v3, %v1665_v12  ;;  %v1437_v0 = vmax.f32 %v4163_v7, %v1379_v41  ;;  %v2770_v25 = vpop.f32.mrb[83].mxu0  ;;  %v2826_v26 = vpop.f32.mrb[83].mxu1  ;;  %v4167_v12 = vmax.f32 %v3824_v34, %v3826_v44 }
 0x202   : > { %v4168_v34 = vmax.f32 %v3830_v58, %v3832_v62 }
 0x203   : > { %1908 = vst.msk [vmem:[%s3878_s12 + $0x34] sm:$0xf] %vm1894_vm2, %v2550_v11  ;;  %v1757_v13 = vadd.f32 %v3866_v2, %v1725_v4  ;;  %v1726_v14 = vmax.f32 %v1437_v0, %v1668_v10 }
 0x205   : > { %v1782_v1 = vmax.f32 %v1757_v13, 0.0  ;;  %v1758_v37 = vadd.f32 %v3866_v2, %v1726_v14  ;;  %v4169_v14 = vmax.f32 %v3836_v23, %v3838_v33  ;;  %v4170_v23 = vmax.f32 %v3842_v43, %v3844_v54 }
 0x206   : > { %v1384_v32 = vpop.f32.mrb[84].mxu0  ;;  %v1673_v45 = vpop.f32.mrb[84].mxu1 }
 0x207   : > { %v2551_v46 = vpack.c.bf16 %v1782_v1, %v1782_v1  ;;  %v1783_v27 = vmax.f32 %v1758_v37, 0.0  ;;  %v1438_v28 = vmax.f32 %v4164_v24, %v1384_v32  ;;  %v2773_v52 = vpop.f32.mrb[85].mxu0  ;;  %v2829_v47 = vpop.f32.mrb[85].mxu1 }
 0x208   : > { %v1387_v30 = vpop.f32.mrb[86].mxu0  ;;  %v1676_v31 = vpop.f32.mrb[86].mxu1 }
 0x209   : > { %1909 = vst.msk [vmem:[%s3878_s12 + $0x38] sm:$0xf] %vm1894_vm2, %v2551_v46  ;;  %v2552_v22 = vpack.c.bf16 %v1783_v27, %v1783_v27  ;;  %v1727_v50 = vmax.f32 %v1438_v28, %v1673_v45  ;;  %v1439_v15 = vmax.f32 %v4165_v51, %v1387_v30  ;;  %v2774_v16 = vpop.f32.mrb[87].mxu0  ;;  %v2830_v17 = vpop.f32.mrb[87].mxu1 }
 0x20b   : > { %1910 = vst.msk [vmem:[%s3878_s12 + $0x3c] sm:$0xf] %vm1894_vm2, %v2552_v22  ;;  %v1759_v38 = vadd.f32 %v3866_v2, %v1727_v50  ;;  %v1728_v39 = vmax.f32 %v1439_v15, %v1676_v31  ;;  %v4171_v15 = vmax.f32 %v3848_v18, %v3850_v19  ;;  %v4173_v18 = vld [vmem:[#allocation5_spill] sm:$0xff] }
 0x20d   : > { %v1784_v29 = vmax.f32 %v1759_v38, 0.0  ;;  %v1760_v5 = vadd.f32 %v3866_v2, %v1728_v39 }
 0x20e   : > { %v1392_v6 = vpop.f32.mrb[88].mxu0  ;;  %v1681_v59 = vpop.f32.mrb[88].mxu1 }
 0x20f   : > { %v2553_v60 = vpack.c.bf16 %v1784_v29, %v1784_v29  ;;  %v1785_v20 = vmax.f32 %v1760_v5, 0.0  ;;  %v1440_v53 = vmax.f32 %v4166_v49, %v1392_v6  ;;  %v2777_v35 = vpop.f32.mrb[89].mxu0  ;;  %v2833_v55 = vpop.f32.mrb[89].mxu1 }
 0x210   : > { %v1395_v56 = vpop.f32.mrb[90].mxu0  ;;  %v1684_v36 = vpop.f32.mrb[90].mxu1 }
 0x211   : > { %1911 = vst.msk [vmem:[%s3878_s12 + $0x40] sm:$0xf] %vm1894_vm2, %v2553_v60  ;;  %v2554_v21 = vpack.c.bf16 %v1785_v20, %v1785_v20  ;;  %v1729_v61 = vmax.f32 %v1440_v53, %v1681_v59  ;;  %v1441_v48 = vmax.f32 %v4167_v12, %v1395_v56  ;;  %v2778_v57 = vpop.f32.mrb[91].mxu0  ;;  %v2834_v63 = vpop.f32.mrb[91].mxu1  ;;  %v4172_v20 = vld [vmem:[#allocation4_spill] sm:$0xff] }
 0x212   : > { %v4174_v19 = vmax.f32 %v4172_v20, %v4173_v18 }
 0x213   : > { %1912 = vst.msk [vmem:[%s3878_s12 + $0x44] sm:$0xf] %vm1894_vm2, %v2554_v21  ;;  %v1761_v8 = vadd.f32 %v3866_v2, %v1729_v61  ;;  %v1730_v9 = vmax.f32 %v1441_v48, %v1684_v36 }
 0x215   : > { %v1786_v3 = vmax.f32 %v1761_v8, 0.0  ;;  %v1762_v42 = vadd.f32 %v3866_v2, %v1730_v9 }
 0x216   : > { %v1400_v40 = vpop.f32.mrb[92].mxu0  ;;  %v1689_v41 = vpop.f32.mrb[92].mxu1 }
 0x217   : > { %v2555_v10 = vpack.c.bf16 %v1786_v3, %v1786_v3  ;;  %v1787_v11 = vmax.f32 %v1762_v42, 0.0  ;;  %v1442_v44 = vmax.f32 %v4168_v34, %v1400_v40  ;;  %v2781_v4 = vpop.f32.mrb[93].mxu0  ;;  %v2837_v7 = vpop.f32.mrb[93].mxu1 }
 0x218   : > { %v1403_v0 = vpop.f32.mrb[94].mxu0  ;;  %v1692_v25 = vpop.f32.mrb[94].mxu1 }
 0x219   : > { %1913 = vst.msk [vmem:[%s3878_s12 + $0x48] sm:$0xf] %vm1894_vm2, %v2555_v10  ;;  %v2556_v26 = vpack.c.bf16 %v1787_v11, %v1787_v11  ;;  %v1731_v13 = vmax.f32 %v1442_v44, %v1689_v41  ;;  %v1443_v1 = vmax.f32 %v4169_v14, %v1403_v0  ;;  %v2782_v37 = vpop.f32.mrb[95].mxu0  ;;  %v2838_v32 = vpop.f32.mrb[95].mxu1 }
 0x21b   : > { %1914 = vst.msk [vmem:[%s3878_s12 + $0x4c] sm:$0xf] %vm1894_vm2, %v2556_v26  ;;  %v1763_v58 = vadd.f32 %v3866_v2, %v1731_v13  ;;  %v1732_v62 = vmax.f32 %v1443_v1, %v1692_v25 }
 0x21d   : > { %v1788_v45 = vmax.f32 %v1763_v58, 0.0  ;;  %v1764_v46 = vadd.f32 %v3866_v2, %v1732_v62 }
 0x21e   : > { %v1408_v27 = vpop.f32.mrb[96].mxu0  ;;  %v1697_v24 = vpop.f32.mrb[96].mxu1 }
 0x21f   : > { %v2557_v28 = vpack.c.bf16 %v1788_v45, %v1788_v45  ;;  %v1789_v52 = vmax.f32 %v1764_v46, 0.0  ;;  %v1444_v33 = vmax.f32 %v4170_v23, %v1408_v27  ;;  %v2785_v47 = vpop.f32.mrb[97].mxu0  ;;  %v2841_v30 = vpop.f32.mrb[97].mxu1 }
 0x220   : > { %v1411_v31 = vpop.f32.mrb[98].mxu0  ;;  %v1700_v22 = vpop.f32.mrb[98].mxu1 }
 0x221   : > { %1915 = vst.msk [vmem:[%s3878_s12 + $0x50] sm:$0xf] %vm1894_vm2, %v2557_v28  ;;  %v2558_v50 = vpack.c.bf16 %v1789_v52, %v1789_v52  ;;  %v1733_v51 = vmax.f32 %v1444_v33, %v1697_v24  ;;  %v1445_v16 = vmax.f32 %v4171_v15, %v1411_v31  ;;  %v2786_v17 = vpop.f32.mrb[99].mxu0  ;;  %v2842_v38 = vpop.f32.mrb[99].mxu1 }
 0x223   : > { %1916 = vst.msk [vmem:[%s3878_s12 + $0x54] sm:$0xf] %vm1894_vm2, %v2558_v50  ;;  %v1765_v43 = vadd.f32 %v3866_v2, %v1733_v51  ;;  %v1734_v54 = vmax.f32 %v1445_v16, %v1700_v22 }
 0x225   : > { %v1790_v39 = vmax.f32 %v1765_v43, 0.0  ;;  %v1766_v29 = vadd.f32 %v3866_v2, %v1734_v54 }
 0x226   : > { %v1416_v5 = vpop.f32.mrb[100].mxu0  ;;  %v1705_v6 = vpop.f32.mrb[100].mxu1 }
 0x227   : > { %v2559_v59 = vpack.c.bf16 %v1790_v39, %v1790_v39  ;;  %v1791_v60 = vmax.f32 %v1766_v29, 0.0  ;;  %v1446_v49 = vmax.f32 %v4174_v19, %v1416_v5  ;;  %v2789_v53 = vpop.f32.mrb[101].mxu0  ;;  %v2845_v35 = vpop.f32.mrb[101].mxu1 }
 0x228   : > { %v1419_v55 = vpop.f32.mrb[102].mxu0  ;;  %v1708_v56 = vpop.f32.mrb[102].mxu1 }
 0x229   : > { %1917 = vst.msk [vmem:[%s3878_s12 + $0x58] sm:$0xf] %vm1894_vm2, %v2559_v59  ;;  %v2560_v36 = vpack.c.bf16 %v1791_v60, %v1791_v60  ;;  %v1735_v21 = vmax.f32 %v1446_v49, %v1705_v6  ;;  %v2790_v61 = vpop.f32.mrb[103].mxu0  ;;  %v2846_v12 = vpop.f32.mrb[103].mxu1 }
 0x22b   : > { %1918 = vst.msk [vmem:[%s3878_s12 + $0x5c] sm:$0xf] %vm1894_vm2, %v2560_v36  ;;  %v1767_v48 = vadd.f32 %v3866_v2, %v1735_v21  ;;  %1926 = sbr.rel (!%p3268_p5) target bundleno = 640 (0x280), region = 98 }
 0x22d   : > { %v1792_v57 = vmax.f32 %v1767_v48, 0.0 }
 0x22f   : > { %v2561_v63 = vpack.c.bf16 %v1792_v57, %v1792_v57 }
 0x231   : > { %1919 = vst.msk [vmem:[%s3878_s12 + $0x60] sm:$0xf] %vm1894_vm2, %v2561_v63 }
 0x232   : > { %s4188_s17 = smov (!%p1929_p4, %s1928_s17), 25 }
 0x233   : > { %s2522_s23 = sshll.u32 %s4188_s17, 6 }
 0x234   : > { %p2525_p6 = scmp.eq.s32.totalorder %s2522_s23, 0 }
 0x235   : > { %3059 = sdivrem.u32 (!%p2525_p6), %s4188_s17, 25 }
 0x236   : > { %1937 = sbr.rel (%p2525_p6) target bundleno = 640 (0x280), region = 102 }
 0x23e   : > { %s4032_s20 = spop.drf %3059 }
 0x23f   : > { %p2526_p5 = scmp.le.s32.totalorder %s4032_s20, 0 }
 0x240   : > { %s4175_s15 = smov (!%p2526_p5), %s4026_s22  ;;  %s4176_s25 = smov (!%p2526_p5), %s3878_s12 }
 0x241   : > { %2254 = sbr.rel (%p2526_p5) target bundleno = 611 (0x263), region = 218  ;;  %s4041_s26 = smov (!%p2526_p5), 0  }
 0x242   : > { %s4043_s24 = smov (!%p2526_p5), 0  }
 0x248 LB: >> { %v1954_v2 = vld [vmem:[%s3189_s25] sm:$0xf]  ;;  %v1956_v8 = vld [vmem:[%s3189_s25 + $0x4] sm:$0xf]  ;;  %v1958_v9 = vld [vmem:[%s3189_s25 + $0x8] sm:$0xf]  ;;  %s3197_s24 = sphi %s4043_s24, %s1948_s24   ;;  %s3193_s26 = sphi %s4041_s26, %s4177_s26   ;;  %s3189_s25 = sphi %s4176_s25, %s2009_s25   ;;  %s3185_s15 = sphi %s4175_s15, %s2010_s15  }
 0x249   : >> { %1955 = vst [vmem:[%s3185_s15] sm:$0xf] %v1954_v2  ;;  %1957 = vst [vmem:[%s3185_s15 + $0x4] sm:$0xf] %v1956_v8  ;;  %v1960_v3 = vld [vmem:[%s3189_s25 + $0xc] sm:$0xf]  ;;  %s2004_s27 = sadd.s32 1, %s3193_s26 }
 0x24a   : >> { %1959 = vst [vmem:[%s3185_s15 + $0x8] sm:$0xf] %v1958_v9  ;;  %v1962_v42 = vld [vmem:[%s3189_s25 + $0x10] sm:$0xf]  ;;  %v1964_v40 = vld [vmem:[%s3189_s25 + $0x14] sm:$0xf]  ;;  %p2005_p7 = scmp.ge.s32.totalorder %s2004_s27, %s4032_s20 }
 0x24b   : >> { %1961 = vst [vmem:[%s3185_s15 + $0xc] sm:$0xf] %v1960_v3  ;;  %1963 = vst [vmem:[%s3185_s15 + $0x10] sm:$0xf] %v1962_v42  ;;  %v1966_v41 = vld [vmem:[%s3189_s25 + $0x18] sm:$0xf] }
 0x24c   : >> { %1965 = vst [vmem:[%s3185_s15 + $0x14] sm:$0xf] %v1964_v40  ;;  %v1968_v10 = vld [vmem:[%s3189_s25 + $0x1c] sm:$0xf]  ;;  %v1970_v11 = vld [vmem:[%s3189_s25 + $0x20] sm:$0xf] }
 0x24d   : >> { %1967 = vst [vmem:[%s3185_s15 + $0x18] sm:$0xf] %v1966_v41  ;;  %1969 = vst [vmem:[%s3185_s15 + $0x1c] sm:$0xf] %v1968_v10  ;;  %v1972_v34 = vld [vmem:[%s3189_s25 + $0x24] sm:$0xf] }
 0x24e   : >> { %1971 = vst [vmem:[%s3185_s15 + $0x20] sm:$0xf] %v1970_v11  ;;  %v1974_v44 = vld [vmem:[%s3189_s25 + $0x28] sm:$0xf]  ;;  %v1976_v4 = vld [vmem:[%s3189_s25 + $0x2c] sm:$0xf] }
 0x24f   : >> { %1973 = vst [vmem:[%s3185_s15 + $0x24] sm:$0xf] %v1972_v34  ;;  %1975 = vst [vmem:[%s3185_s15 + $0x28] sm:$0xf] %v1974_v44  ;;  %v1978_v7 = vld [vmem:[%s3189_s25 + $0x30] sm:$0xf] }
 0x250   : >> { %1977 = vst [vmem:[%s3185_s15 + $0x2c] sm:$0xf] %v1976_v4  ;;  %v1980_v0 = vld [vmem:[%s3189_s25 + $0x34] sm:$0xf]  ;;  %v1982_v25 = vld [vmem:[%s3189_s25 + $0x38] sm:$0xf] }
 0x251   : >> { %1979 = vst [vmem:[%s3185_s15 + $0x30] sm:$0xf] %v1978_v7  ;;  %1981 = vst [vmem:[%s3185_s15 + $0x34] sm:$0xf] %v1980_v0  ;;  %v1984_v26 = vld [vmem:[%s3189_s25 + $0x3c] sm:$0xf] }
 0x252   : >> { %1983 = vst [vmem:[%s3185_s15 + $0x38] sm:$0xf] %v1982_v25  ;;  %v1986_v13 = vld [vmem:[%s3189_s25 + $0x40] sm:$0xf]  ;;  %v1988_v14 = vld [vmem:[%s3189_s25 + $0x44] sm:$0xf] }
 0x253   : >> { %1985 = vst [vmem:[%s3185_s15 + $0x3c] sm:$0xf] %v1984_v26  ;;  %1987 = vst [vmem:[%s3185_s15 + $0x40] sm:$0xf] %v1986_v13  ;;  %v1990_v1 = vld [vmem:[%s3189_s25 + $0x48] sm:$0xf] }
 0x254   : >> { %1989 = vst [vmem:[%s3185_s15 + $0x44] sm:$0xf] %v1988_v14  ;;  %v1992_v37 = vld [vmem:[%s3189_s25 + $0x4c] sm:$0xf]  ;;  %v1994_v32 = vld [vmem:[%s3189_s25 + $0x50] sm:$0xf] }
 0x255   : >> { %1991 = vst [vmem:[%s3185_s15 + $0x48] sm:$0xf] %v1990_v1  ;;  %1993 = vst [vmem:[%s3185_s15 + $0x4c] sm:$0xf] %v1992_v37  ;;  %v1996_v58 = vld [vmem:[%s3189_s25 + $0x54] sm:$0xf] }
 0x256   : >> { %1995 = vst [vmem:[%s3185_s15 + $0x50] sm:$0xf] %v1994_v32  ;;  %v1998_v62 = vld [vmem:[%s3189_s25 + $0x58] sm:$0xf]  ;;  %v2000_v45 = vld [vmem:[%s3189_s25 + $0x5c] sm:$0xf] }
 0x257   : >> { %1997 = vst [vmem:[%s3185_s15 + $0x54] sm:$0xf] %v1996_v58  ;;  %1999 = vst [vmem:[%s3185_s15 + $0x58] sm:$0xf] %v1998_v62  ;;  %v2002_v46 = vld [vmem:[%s3189_s25 + $0x60] sm:$0xf] }
 0x258   : >> { %2001 = vst [vmem:[%s3185_s15 + $0x5c] sm:$0xf] %v2000_v45  ;;  %2003 = vst [vmem:[%s3185_s15 + $0x60] sm:$0xf] %v2002_v46  ;;  %s4190_s27 = smov (%p2005_p7, %s2004_s27), 0  ;;  %s1948_s24 = sadd.s32 1, %s3197_s24  }
 0x259   : >> { %s2007_s28 = smul.u32 100, %s4190_s27  ;;  %p1947_p8 = scmp.ge.s32.totalorder %s1948_s24, %s4032_s20 }
 0x25a   : >> { %s4177_s26 = smov %s4190_s27 }
 0x25b   : >> { %s2009_s25 = scalar_lea.vmem %s3878_s12, %s2007_s28 [#allocation3]   ;;  %s2010_s15 = scalar_lea.vmem %s4026_s22, %s2007_s28  }
 0x25c   : > { %1950 = sbr.rel (!%p1947_p8) target bundleno = 584 (0x248), region = 224 }
 0x263 PF: > { %3061 = sdivrem.u32 %s4188_s17, 25 }
 0x264   : > { %s2527_s29 = smul.u32 100, %s4032_s20 }
 0x266   : > { %s2015_s30 = scalar_lea.vmem %s3878_s12, %s2527_s29 [#allocation3]   ;;  %s2017_s4 = scalar_lea.vmem %s4026_s22, %s2527_s29  }
 0x26c   : > { %s3062_s14 = spop.drf %3061 }
 0x26d   : > { %p2529_p9 = scmp.le.s32.totalorder %s3062_s14, 0 }
 0x26e   : > { %s3199_s5 = smov (!%p2529_p9), %s2017_s4   ;;  %s3203_s6 = smov (!%p2529_p9), %s2015_s30  }
 0x26f   : > { %2268 = sbr.rel (%p2529_p9) target bundleno = 640 (0x280), region = 229  ;;  %s3207_s7 = smov (!%p2529_p9), 0  }
 0x270   : > { %s3211_s8 = smov (!%p2529_p9), 0  }
 0x276 LB: >> { %v2027_v27 = vld [vmem:[%s3205_s6] sm:$0xf]  ;;  %s2029_s9 = sadd.s32 1, %s3209_s7  ;;  %s2021_s8 = sadd.s32 1, %s3213_s8   ;;  %s3213_s8 = sphi %s3211_s8, %s2021_s8   ;;  %s3209_s7 = sphi %s3207_s7, %s3208_s7   ;;  %s3205_s6 = sphi %s3203_s6, %s2034_s6   ;;  %s3201_s5 = sphi %s3199_s5, %s2035_s5  }
 0x277   : >> { %2028 = vst [vmem:[%s3201_s5] sm:$0xf] %v2027_v27  ;;  %p2030_p10 = scmp.ge.s32.totalorder %s2029_s9, %s3062_s14  ;;  %p2020_p11 = scmp.ge.s32.totalorder %s2021_s8, %s3062_s14 }
 0x279   : >> { %s4192_s9 = smov (%p2030_p10, %s2029_s9), 0  ;;  %2023 = sbr.rel (!%p2020_p11) target bundleno = 630 (0x276), region = 235 }
 0x27a   : >> { %s2530_s12 = sshll.u32 %s4192_s9, 2  ;;  %s3208_s7 = smov %s4192_s9  }
 0x27b   : >> { %s2034_s6 = scalar_lea.vmem %s2015_s30, %s2530_s12 [#allocation3]   ;;  %s2035_s5 = scalar_lea.vmem %s2017_s4, %s2530_s12  }
 0x280 PF: > { %p10_p12 = scmp.ge.s32.totalorder %s3256_s16, 4   ;;  %s4178_s12 = smov %s3145_s13 }
 0x281   : > { %s4179_s13 = smov %s3266_s19  ;;  %s4180_s14 = smov %s3256_s16 }
 0x282   :  { %12 = sbr.rel (!%p10_p12) target bundleno = 2 (0x2), region = 246 }

// kernel: convnet_forward.4
= control target key start
LH: loop header
LB: loop body
LE: loop exit
PB: predicated region body
PF: predicated region fallthrough
CT: control target
= control target key end

     0   :  { %s2632_s12 = smov 0   ;;  %s2634_s13 = smov 0   ;;  %s3354_s0 = inlined_call_operand.vmem [shape: bf16[4,98,400], index: 0, kind: input, shape index: {}]   ;;  %s3355_s1 = inlined_call_operand.vmem [shape: bf16[400,32], index: 1, kind: input, shape index: {}]   ;;  %s3356_s2 = inlined_call_operand.vmem [shape: f32[1,32], index: 2, kind: input, shape index: {}]   ;;  %s3357_s3 = inlined_call_operand.vmem [shape: bf16[98,32], index: 3, kind: output, shape index: {}]  }
   0x1   :  { %s2636_s14 = smov 0  }
   0x2 LB: > { %s2648_s15 = sadd.s32 4294967295, %s2545_s14   ;;  %s2651_s16 = sadd.s32 1, %s2545_s14   ;;  %s2545_s14 = sphi %s2636_s14, %s3372_s14   ;;  %s2541_s13 = sphi %s2634_s13, %s3371_s13   ;;  %s2537_s12 = sphi %s2632_s12, %s3370_s12  }
   0x3   : > { %s17_s17 = ssub.s32 %s2545_s14, %s2651_s16  ;;  %s20_s18 = sadd.s32 1, %s2541_s13 }
   0x4   : > { %p18_p0 = scmp.eq.s32.totalorder %s17_s17, 0  ;;  %p27_p1 = scmp.ne.s32.totalorder %s2541_s13, %s2537_s12 }
   0x5   : > { %p28_p2 = scmp.eq.s32.totalorder %s2545_s14, 0  ;;  %p99_p3 = scmp.eq.s32.totalorder %s2648_s15, 1 }
   0x6   : > { %s2661_s19 = scalar_select %p18_p0, %s2541_s13, %s20_s18  }
   0x7   : > { %p29_p4 = por %p28_p2, %p27_p1  ;;  %p2663_p5 = por %p99_p3, %p27_p1 }
   0x8   : > { %p1827_p6 = scmp.ge.s32.totalorder %s2545_s14, 2 }
   0xa   : > { %127 = sbr.rel (%p1827_p6) target bundleno = 104 (0x68), region = 24 }
  0x11   : > { %130 = sbr.rel (!%p29_p4) target bundleno = 104 (0x68), region = 28  ;;  %s132_s21 = sand.u32 (%p29_p4), 1, %s2541_s13  }
  0x12   : > { %s135_s22 = smul.u32 (%p29_p4), 7, %s2545_s14 }
  0x13   : > { %s2180_s23 = smul.u32 (%p29_p4), 448, %s132_s21 }
  0x14   : > { %s136_s24 = ssub.s32 (%p29_p4), 13, %s135_s22  ;;  %s2019_s25 = smul.u32 (%p29_p4), 112, %s2545_s14 }
  0x15   : > { %p137_p7 = scmp.lt.s32.totalorder (%p29_p4), %s136_s24, 7  ;;  %s2679_s30 = scalar_lea.vmem (%p29_p4), [#allocation2], %s2180_s23  }
  0x16   : > { %s2674_s28 = scalar_lea.vmem (%p29_p4), %s3354_s0, %s2019_s25  }
  0x18   : > { %s3374_s24 = smov (!%p137_p7, %s136_s24), 7 }
  0x19   : > { %s2008_s29 = sshll.u32 %s3374_s24, 10 }
  0x1a   : > { %p1833_p8 = scmp.eq.s32.totalorder %s2008_s29, 0 }
  0x1b   : > { %2338 = sdivrem.u32 (!%p1833_p8), %s3374_s24, 7 }
  0x1c   : > { %147 = sbr.rel (%p1833_p8) target bundleno = 104 (0x68), region = 32 }
  0x24   : > { %s2682_s4 = spop.drf %2338 }
  0x25   : > { %p1834_p9 = scmp.le.s32.totalorder %s2682_s4, 0 }
  0x26   : > { %s3359_s5 = smov (!%p1834_p9), %s2679_s30  ;;  %s3360_s6 = smov (!%p1834_p9), %s2674_s28 }
  0x27   : > { %1753 = sbr.rel (%p1834_p9) target bundleno = 75 (0x4b), region = 152  ;;  %s2691_s7 = smov (!%p1834_p9), 0  }
  0x28   : > { %s2693_s8 = smov (!%p1834_p9), 0  }
  0x2e LB: >> { %v161_v0 = vld [vmem:[%s2553_s6] sm:$0xff]  ;;  %v163_v1 = vld [vmem:[%s2553_s6 + $0x10] sm:$0xff]  ;;  %s273_s9 = sadd.s32 1, %s2557_s7  ;;  %v175_v7 = vld [vmem:[%s2553_s6 + $0x8] sm:$0xff]  ;;  %s155_s8 = sadd.s32 1, %s2561_s8   ;;  %s2561_s8 = sphi %s2693_s8, %s155_s8   ;;  %s2557_s7 = sphi %s2691_s7, %s3363_s7   ;;  %s2553_s6 = sphi %s3360_s6, %s3362_s6   ;;  %s2549_s5 = sphi %s3359_s5, %s3361_s5  }
  0x2f   : >> { %v165_v2 = vld [vmem:[%s2553_s6 + $0x20] sm:$0xff]  ;;  %162 = vst [vmem:[%s2549_s5] sm:$0xff] %v161_v0  ;;  %164 = vst [vmem:[%s2549_s5 + $0x10] sm:$0xff] %v163_v1  ;;  %v167_v3 = vld [vmem:[%s2553_s6 + $0x30] sm:$0xff]  ;;  %p274_p10 = scmp.ge.s32.totalorder %s273_s9, %s2682_s4  ;;  %p154_p11 = scmp.ge.s32.totalorder %s155_s8, %s2682_s4 }
  0x30   : >> { %166 = vst [vmem:[%s2549_s5 + $0x20] sm:$0xff] %v165_v2  ;;  %v169_v4 = vld [vmem:[%s2553_s6 + $0x40] sm:$0xff]  ;;  %v171_v5 = vld [vmem:[%s2553_s6 + $0x50] sm:$0xff]  ;;  %168 = vst [vmem:[%s2549_s5 + $0x30] sm:$0xff] %v167_v3 }
  0x31   : >> { %170 = vst [vmem:[%s2549_s5 + $0x40] sm:$0xff] %v169_v4  ;;  %172 = vst [vmem:[%s2549_s5 + $0x50] sm:$0xff] %v171_v5  ;;  %v173_v6 = vld [vmem:[%s2553_s6 + $0x60] sm:$0xff]  ;;  %v177_v8 = vld [vmem:[%s2553_s6 + $0x18] sm:$0xff]  ;;  %s3376_s9 = smov (%p274_p10, %s273_s9), 0 }
  0x32   : >> { %174 = vst [vmem:[%s2549_s5 + $0x60] sm:$0xff] %v173_v6  ;;  %176 = vst [vmem:[%s2549_s5 + $0x8] sm:$0xff] %v175_v7  ;;  %v179_v9 = vld [vmem:[%s2553_s6 + $0x28] sm:$0xff]  ;;  %v181_v10 = vld [vmem:[%s2553_s6 + $0x38] sm:$0xff]  ;;  %s276_s10 = smul.u32 112, %s3376_s9  ;;  %s3363_s7 = smov %s3376_s9 }
  0x33   : >> { %178 = vst [vmem:[%s2549_s5 + $0x18] sm:$0xff] %v177_v8  ;;  %v183_v11 = vld [vmem:[%s2553_s6 + $0x48] sm:$0xff]  ;;  %180 = vst [vmem:[%s2549_s5 + $0x28] sm:$0xff] %v179_v9  ;;  %v185_v12 = vld [vmem:[%s2553_s6 + $0x58] sm:$0xff] }
  0x34   : >> { %182 = vst [vmem:[%s2549_s5 + $0x38] sm:$0xff] %v181_v10  ;;  %184 = vst [vmem:[%s2549_s5 + $0x48] sm:$0xff] %v183_v11  ;;  %v187_v13 = vld [vmem:[%s2553_s6 + $0x68] sm:$0xff]  ;;  %v189_v14 = vld [vmem:[%s2553_s6 + $0xd0] sm:$0xff]  ;;  %s2755_s11 = scalar_lea.vmem %s2674_s28, %s276_s10   ;;  %s2758_s17 = scalar_lea.vmem %s2679_s30, %s276_s10 [#allocation2]  }
  0x35   : >> { %186 = vst [vmem:[%s2549_s5 + $0x58] sm:$0xff] %v185_v12  ;;  %188 = vst [vmem:[%s2549_s5 + $0x68] sm:$0xff] %v187_v13  ;;  %v191_v15 = vld [vmem:[%s2553_s6 + $0xe0] sm:$0xff]  ;;  %v193_v16 = vld [vmem:[%s2553_s6 + $0xf0] sm:$0xff] }
  0x36   : >> { %190 = vst [vmem:[%s2549_s5 + $0x70] sm:$0xff] %v189_v14  ;;  %v195_v17 = vld [vmem:[%s2553_s6 + $0x100] sm:$0xff]  ;;  %192 = vst [vmem:[%s2549_s5 + $0x80] sm:$0xff] %v191_v15  ;;  %v197_v18 = vld [vmem:[%s2553_s6 + $0x110] sm:$0xff] }
  0x37   : >> { %194 = vst [vmem:[%s2549_s5 + $0x90] sm:$0xff] %v193_v16  ;;  %196 = vst [vmem:[%s2549_s5 + $0xa0] sm:$0xff] %v195_v17  ;;  %v199_v19 = vld [vmem:[%s2553_s6 + $0x120] sm:$0xff]  ;;  %v201_v20 = vld [vmem:[%s2553_s6 + $0x130] sm:$0xff] }
  0x38   : >> { %198 = vst [vmem:[%s2549_s5 + $0xb0] sm:$0xff] %v197_v18  ;;  %200 = vst [vmem:[%s2549_s5 + $0xc0] sm:$0xff] %v199_v19  ;;  %v203_v21 = vld [vmem:[%s2553_s6 + $0xd8] sm:$0xff]  ;;  %v205_v22 = vld [vmem:[%s2553_s6 + $0xe8] sm:$0xff] }
  0x39   : >> { %202 = vst [vmem:[%s2549_s5 + $0xd0] sm:$0xff] %v201_v20  ;;  %v207_v23 = vld [vmem:[%s2553_s6 + $0xf8] sm:$0xff]  ;;  %204 = vst [vmem:[%s2549_s5 + $0x78] sm:$0xff] %v203_v21  ;;  %v209_v24 = vld [vmem:[%s2553_s6 + $0x108] sm:$0xff] }
  0x3a   : >> { %206 = vst [vmem:[%s2549_s5 + $0x88] sm:$0xff] %v205_v22  ;;  %208 = vst [vmem:[%s2549_s5 + $0x98] sm:$0xff] %v207_v23  ;;  %v211_v25 = vld [vmem:[%s2553_s6 + $0x118] sm:$0xff]  ;;  %v213_v26 = vld [vmem:[%s2553_s6 + $0x128] sm:$0xff] }
  0x3b   : >> { %210 = vst [vmem:[%s2549_s5 + $0xa8] sm:$0xff] %v209_v24  ;;  %212 = vst [vmem:[%s2549_s5 + $0xb8] sm:$0xff] %v211_v25  ;;  %v215_v27 = vld [vmem:[%s2553_s6 + $0x138] sm:$0xff]  ;;  %v217_v28 = vld [vmem:[%s2553_s6 + $0x1a0] sm:$0xff] }
  0x3c   : >> { %214 = vst [vmem:[%s2549_s5 + $0xc8] sm:$0xff] %v213_v26  ;;  %v219_v29 = vld [vmem:[%s2553_s6 + $0x1b0] sm:$0xff]  ;;  %216 = vst [vmem:[%s2549_s5 + $0xd8] sm:$0xff] %v215_v27  ;;  %v221_v30 = vld [vmem:[%s2553_s6 + $0x1c0] sm:$0xff] }
  0x3d   : >> { %218 = vst [vmem:[%s2549_s5 + $0xe0] sm:$0xff] %v217_v28  ;;  %220 = vst [vmem:[%s2549_s5 + $0xf0] sm:$0xff] %v219_v29  ;;  %v223_v31 = vld [vmem:[%s2553_s6 + $0x1d0] sm:$0xff]  ;;  %v225_v32 = vld [vmem:[%s2553_s6 + $0x1e0] sm:$0xff] }
  0x3e   : >> { %222 = vst [vmem:[%s2549_s5 + $0x100] sm:$0xff] %v221_v30  ;;  %224 = vst [vmem:[%s2549_s5 + $0x110] sm:$0xff] %v223_v31  ;;  %v227_v33 = vld [vmem:[%s2553_s6 + $0x1f0] sm:$0xff]  ;;  %v229_v34 = vld [vmem:[%s2553_s6 + $0x200] sm:$0xff] }
  0x3f   : >> { %226 = vst [vmem:[%s2549_s5 + $0x120] sm:$0xff] %v225_v32  ;;  %v231_v35 = vld [vmem:[%s2553_s6 + $0x1a8] sm:$0xff]  ;;  %228 = vst [vmem:[%s2549_s5 + $0x130] sm:$0xff] %v227_v33  ;;  %v233_v36 = vld [vmem:[%s2553_s6 + $0x1b8] sm:$0xff] }
  0x40   : >> { %230 = vst [vmem:[%s2549_s5 + $0x140] sm:$0xff] %v229_v34  ;;  %232 = vst [vmem:[%s2549_s5 + $0xe8] sm:$0xff] %v231_v35  ;;  %v235_v37 = vld [vmem:[%s2553_s6 + $0x1c8] sm:$0xff]  ;;  %v237_v38 = vld [vmem:[%s2553_s6 + $0x1d8] sm:$0xff] }
  0x41   : >> { %234 = vst [vmem:[%s2549_s5 + $0xf8] sm:$0xff] %v233_v36  ;;  %236 = vst [vmem:[%s2549_s5 + $0x108] sm:$0xff] %v235_v37  ;;  %v239_v39 = vld [vmem:[%s2553_s6 + $0x1e8] sm:$0xff]  ;;  %v241_v40 = vld [vmem:[%s2553_s6 + $0x1f8] sm:$0xff] }
  0x42   : >> { %238 = vst [vmem:[%s2549_s5 + $0x118] sm:$0xff] %v237_v38  ;;  %v243_v41 = vld [vmem:[%s2553_s6 + $0x208] sm:$0xff]  ;;  %240 = vst [vmem:[%s2549_s5 + $0x128] sm:$0xff] %v239_v39  ;;  %v245_v42 = vld [vmem:[%s2553_s6 + $0x270] sm:$0xff] }
  0x43   : >> { %242 = vst [vmem:[%s2549_s5 + $0x138] sm:$0xff] %v241_v40  ;;  %244 = vst [vmem:[%s2549_s5 + $0x148] sm:$0xff] %v243_v41  ;;  %v247_v43 = vld [vmem:[%s2553_s6 + $0x280] sm:$0xff]  ;;  %v249_v44 = vld [vmem:[%s2553_s6 + $0x290] sm:$0xff] }
  0x44   : >> { %246 = vst [vmem:[%s2549_s5 + $0x150] sm:$0xff] %v245_v42  ;;  %248 = vst [vmem:[%s2549_s5 + $0x160] sm:$0xff] %v247_v43  ;;  %v251_v45 = vld [vmem:[%s2553_s6 + $0x2a0] sm:$0xff]  ;;  %v253_v46 = vld [vmem:[%s2553_s6 + $0x2b0] sm:$0xff]  ;;  %157 = sbr.rel (!%p154_p11) target bundleno = 46 (0x2e), region = 158 }
  0x45   : >> { %250 = vst [vmem:[%s2549_s5 + $0x170] sm:$0xff] %v249_v44  ;;  %v255_v47 = vld [vmem:[%s2553_s6 + $0x2c0] sm:$0xff]  ;;  %252 = vst [vmem:[%s2549_s5 + $0x180] sm:$0xff] %v251_v45  ;;  %v257_v48 = vld [vmem:[%s2553_s6 + $0x2d0] sm:$0xff] }
  0x46   : >> { %254 = vst [vmem:[%s2549_s5 + $0x190] sm:$0xff] %v253_v46  ;;  %256 = vst [vmem:[%s2549_s5 + $0x1a0] sm:$0xff] %v255_v47  ;;  %v259_v49 = vld [vmem:[%s2553_s6 + $0x278] sm:$0xff]  ;;  %v261_v50 = vld [vmem:[%s2553_s6 + $0x288] sm:$0xff] }
  0x47   : >> { %258 = vst [vmem:[%s2549_s5 + $0x1b0] sm:$0xff] %v257_v48  ;;  %260 = vst [vmem:[%s2549_s5 + $0x158] sm:$0xff] %v259_v49  ;;  %v263_v51 = vld [vmem:[%s2553_s6 + $0x298] sm:$0xff]  ;;  %v265_v52 = vld [vmem:[%s2553_s6 + $0x2a8] sm:$0xff] }
  0x48   : >> { %262 = vst [vmem:[%s2549_s5 + $0x168] sm:$0xff] %v261_v50  ;;  %v267_v53 = vld [vmem:[%s2553_s6 + $0x2b8] sm:$0xff]  ;;  %264 = vst [vmem:[%s2549_s5 + $0x178] sm:$0xff] %v263_v51  ;;  %v269_v54 = vld [vmem:[%s2553_s6 + $0x2c8] sm:$0xff] }
  0x49   : >> { %266 = vst [vmem:[%s2549_s5 + $0x188] sm:$0xff] %v265_v52  ;;  %268 = vst [vmem:[%s2549_s5 + $0x198] sm:$0xff] %v267_v53  ;;  %v271_v55 = vld [vmem:[%s2553_s6 + $0x2d8] sm:$0xff]  ;;  %s3362_s6 = smov %s2755_s11 }
  0x4a   : >> { %270 = vst [vmem:[%s2549_s5 + $0x1a8] sm:$0xff] %v269_v54  ;;  %272 = vst [vmem:[%s2549_s5 + $0x1b8] sm:$0xff] %v271_v55  ;;  %s3361_s5 = smov %s2758_s17 }
  0x4b PF: > { %2340 = sdivrem.u32 %s3374_s24, 7 }
  0x4c   : > { %s1835_s18 = smul.u32 112, %s2682_s4 }
  0x4e   : > { %s2843_s21 = scalar_lea.vmem %s2674_s28, %s1835_s18   ;;  %s2846_s22 = scalar_lea.vmem %s2679_s30, %s1835_s18 [#allocation2]  }
  0x54   : > { %s2848_s23 = spop.drf %2340 }
  0x55   : > { %p1837_p12 = scmp.le.s32.totalorder %s2848_s23, 0 }
  0x56   : > { %s3364_s25 = smov (!%p1837_p12), %s2846_s22  ;;  %s3365_s26 = smov (!%p1837_p12), %s2843_s21 }
  0x57   : > { %1767 = sbr.rel (%p1837_p12) target bundleno = 104 (0x68), region = 163  ;;  %s2857_s27 = smov (!%p1837_p12), 0  }
  0x58   : > { %s2859_s29 = smov (!%p1837_p12), 0  }
  0x5e LB: >> { %v296_v56 = vld [vmem:[%s2569_s26] sm:$0xff]  ;;  %v298_v57 = vld [vmem:[%s2569_s26 + $0x8] sm:$0xff]  ;;  %v300_v58 = vld [vmem:[%s2569_s26 + $0xd0] sm:$0xff]  ;;  %s312_s24 = sadd.s32 1, %s2573_s27  ;;  %s290_s29 = sadd.s32 1, %s2577_s29   ;;  %s2577_s29 = sphi %s2859_s29, %s290_s29   ;;  %s2573_s27 = sphi %s2857_s27, %s3366_s27   ;;  %s2569_s26 = sphi %s3365_s26, %s317_s26   ;;  %s2565_s25 = sphi %s3364_s25, %s318_s25  }
  0x5f   : >> { %297 = vst [vmem:[%s2565_s25] sm:$0xff] %v296_v56  ;;  %299 = vst [vmem:[%s2565_s25 + $0x8] sm:$0xff] %v298_v57  ;;  %v302_v59 = vld [vmem:[%s2569_s26 + $0xd8] sm:$0xff]  ;;  %v304_v60 = vld [vmem:[%s2569_s26 + $0x1a0] sm:$0xff]  ;;  %p313_p13 = scmp.ge.s32.totalorder %s312_s24, %s2848_s23  ;;  %p289_p0 = scmp.ge.s32.totalorder %s290_s29, %s2848_s23 }
  0x60   : >> { %301 = vst [vmem:[%s2565_s25 + $0x70] sm:$0xff] %v300_v58  ;;  %v306_v61 = vld [vmem:[%s2569_s26 + $0x1a8] sm:$0xff]  ;;  %303 = vst [vmem:[%s2565_s25 + $0x78] sm:$0xff] %v302_v59  ;;  %v308_v62 = vld [vmem:[%s2569_s26 + $0x270] sm:$0xff] }
  0x61   : >> { %305 = vst [vmem:[%s2565_s25 + $0xe0] sm:$0xff] %v304_v60  ;;  %307 = vst [vmem:[%s2565_s25 + $0xe8] sm:$0xff] %v306_v61  ;;  %v310_v63 = vld [vmem:[%s2569_s26 + $0x278] sm:$0xff]  ;;  %s3378_s24 = smov (%p313_p13, %s312_s24), 0  ;;  %292 = sbr.rel (!%p289_p0) target bundleno = 94 (0x5e), region = 169 }
  0x62   : >> { %309 = vst [vmem:[%s2565_s25 + $0x150] sm:$0xff] %v308_v62  ;;  %311 = vst [vmem:[%s2565_s25 + $0x158] sm:$0xff] %v310_v63  ;;  %s1838_s28 = sshll.u32 %s3378_s24, 4  ;;  %s3366_s27 = smov %s3378_s24 }
  0x63   : >> { %s317_s26 = scalar_lea.vmem %s2843_s21, %s1838_s28   ;;  %s318_s25 = scalar_lea.vmem %s2846_s22, %s1838_s28 [#allocation2]  }
  0x68 PF: > { %p1840_p1 = scmp.ge.s32.totalorder %s2545_s14, 1  ;;  %p323_p2 = scmp.lt.s32.totalorder %s2545_s14, 3 }
  0x6a   : > { %p324_p3 = pnand %p1840_p1, %p323_p2 }
  0x6b   : > { %v2882_v0 = vld [vmem:[%s3355_s1 + $0x40] sm:$0xff] (!%p324_p3)   ;;  %v2611_v1 = vmov (!%p324_p3), 0   ;;  %v2900_v4 = vld [vmem:[%s3355_s1 + $0x48] sm:$0xff] (!%p324_p3)   ;;  %v2918_v7 = vld [vmem:[%s3355_s1 + $0x50] sm:$0xff] (!%p324_p3)   ;;  %s330_s9 = sand.u32 (!%p324_p3), 1, %s2537_s12   ;;  %vm648_vm0 = vcmask (!%p324_p3), 130048  }
  0x6c   : > { %327 = sbr.rel (%p324_p3) target bundleno = 565 (0x235), region = 58  ;;  %725 = vmatprep.subr.bf16.mxu1 (!%p324_p3), %v2611_v1  ;;  %v2888_v2 = vld [vmem:[%s3355_s1 + $0x80] sm:$0xff] (!%p324_p3)   ;;  %2020 = vmatprep.subr.bf16.mxu0 (!%p324_p3), %v2882_v0  ;;  %v2907_v5 = vld [vmem:[%s3355_s1 + $0x88] sm:$0xff] (!%p324_p3)   ;;  %v2924_v8 = vld [vmem:[%s3355_s1 + $0x90] sm:$0xff] (!%p324_p3)   ;;  %vm1535_vm1 = vcmask (!%p324_p3), 257024  }
  0x6d   : > { %v2894_v3 = vld [vmem:[%s3355_s1] sm:$0xff] (!%p324_p3)   ;;  %726 = vmatpush1.bf16.msra.mxu1 (!%p324_p3), %v2888_v2  ;;  %v2913_v6 = vld [vmem:[%s3355_s1 + $0x8] sm:$0xff] (!%p324_p3)   ;;  %v2931_v9 = vld [vmem:[%s3355_s1 + $0x10] sm:$0xff] (!%p324_p3)   ;;  %s2181_s21 = smul.u32 (!%p324_p3), 448, %s330_s9 }
  0x6e   : > { %2021 = vmatpush3.bf16.msra.mxu0 (!%p324_p3), %v2894_v3  ;;  %727 = vmatprep.subr.bf16.mxu1 (!%p324_p3), %v2611_v1  ;;  %v2937_v10 = vld [vmem:[%s3355_s1 + $0x58] sm:$0xff] (!%p324_p3)   ;;  %v2956_v13 = vld [vmem:[%s3355_s1 + $0x60] sm:$0xff] (!%p324_p3)   ;;  %v2976_v16 = vld [vmem:[%s3355_s1 + $0x68] sm:$0xff] (!%p324_p3)   ;;  %s2182_s23 = smul.u32 (!%p324_p3), 28, %s330_s9 }
  0x6f   : > { %2022 = vmatprep.subr.bf16.mxu0 (!%p324_p3), %v2900_v4  ;;  %v2943_v11 = vld [vmem:[%s3355_s1 + $0x98] sm:$0xff] (!%p324_p3)   ;;  %v2962_v14 = vld [vmem:[%s3355_s1 + $0xa0] sm:$0xff] (!%p324_p3)   ;;  %v2984_v17 = vld [vmem:[%s3355_s1 + $0xa8] sm:$0xff] (!%p324_p3)   ;;  %s3017_s7 = scalar_lea.vmem (!%p324_p3), [#allocation2], %s2181_s21 }
  0x70   : > { %v2950_v12 = vld [vmem:[%s3355_s1 + $0x18] sm:$0xff] (!%p324_p3)   ;;  %v2970_v15 = vld [vmem:[%s3355_s1 + $0x20] sm:$0xff] (!%p324_p3)   ;;  %v2991_v18 = vld [vmem:[%s3355_s1 + $0x28] sm:$0xff] (!%p324_p3)   ;;  %s3272_s12 = scalar_lea.vmem (!%p324_p3), [#allocation3], %s2182_s23  }
  0x71   : > { %728 = vmatpush1.bf16.msra.mxu1 (!%p324_p3), %v2907_v5  ;;  %v2997_v19 = vld [vmem:[%s3355_s1 + $0x70] sm:$0xff] (!%p324_p3)   ;;  %v3015_v22 = vld [vmem:[%s3355_s1 + $0x78] sm:$0xff] (!%p324_p3)   ;;  %v3042_v28 = vld [vmem:[%s3355_s1 + $0xc0] sm:$0xff] (!%p324_p3)  }
  0x72   : > { %2023 = vmatpush3.bf16.msra.mxu0 (!%p324_p3), %v2913_v6  ;;  %729 = vmatprep.subr.bf16.mxu1 (!%p324_p3), %v2611_v1  ;;  %v3002_v20 = vld [vmem:[%s3355_s1 + $0xb0] sm:$0xff] (!%p324_p3)   ;;  %v3025_v24 = vld [vmem:[%s3355_s1 + $0xb8] sm:$0xff] (!%p324_p3)   ;;  %v426_v36 = vld [vmem:[%s3017_s7 + $0x60] sm:$0xff] (!%p324_p3) }
  0x73   : > { %2024 = vmatprep.subr.bf16.mxu0 %v2918_v7  ;;  %v3008_v21 = vld [vmem:[%s3355_s1 + $0x30] sm:$0xff]   ;;  %v2372_v25 = vld [vmem:[%s3017_s7 + $0xc] ss:$16 sps:$4 sm:$0xff]   ;;  %v2370_v30 = vld [vmem:[%s3017_s7 + $0x8] ss:$16 sps:$4 sm:$0xff]   ;;  %v1854_v39 = vcombine.high %v426_v36, %v426_v36  ;;  %v1853_v42 = vcombine.low %v426_v36, %v426_v36  ;;  %s1550_s9 = smul.u32 (%p2663_p5), 7, %s2648_s15 }
  0x74   : > { %v2368_v23 = vld [vmem:[%s3017_s7 + $0x4] ss:$16 sps:$4 sm:$0xff]   ;;  %v3033_v26 = vld [vmem:[%s3355_s1 + $0x38] sm:$0xff]   ;;  %1882 = vmatprep.mubr.msk.bf16.mxu1 %vm648_vm0, %v2372_v25  ;;  %v2366_v27 = vld [vmem:[%s3017_s7] ss:$16 sps:$4 sm:$0xff]   ;;  %s2018_s25 = smul.u32 (%p2663_p5), 28, %s2648_s15 }
  0x75   : > { %730 = vmatpush1.bf16.msra.mxu1 %v2924_v8  ;;  %693 = vmatprep.mubr.bf16.mxu0 %v2368_v23  ;;  %v2373_v29 = vld [vmem:[%s3017_s7 + $0x24] ss:$16 sps:$4 sm:$0xff]   ;;  %v2376_v31 = vld [vmem:[%s3017_s7 + $0x2c] ss:$16 sps:$4 sm:$0xff]   ;;  %v2375_v32 = vld [vmem:[%s3017_s7 + $0x20] ss:$16 sps:$4 sm:$0xff]  }
  0x76   : > { %2025 = vmatpush3.bf16.msra.mxu0 %v2931_v9  ;;  %731 = vmatprep.subr.bf16.mxu1 %v2611_v1  ;;  %v2379_v33 = vld [vmem:[%s3017_s7 + $0x44] ss:$16 sps:$4 sm:$0xff]   ;;  %v2378_v34 = vld [vmem:[%s3017_s7 + $0x28] ss:$16 sps:$4 sm:$0xff]   ;;  %v2382_v35 = vld [vmem:[%s3017_s7 + $0x4c] ss:$16 sps:$4 sm:$0xff]   ;;  %s3305_s24 = scalar_lea.vmem (%p2663_p5), %s3357_s3, %s2018_s25  }
  0x77   : > { %2026 = vmatprep.subr.bf16.mxu0 %v2937_v10  ;;  %v2381_v37 = vld [vmem:[%s3017_s7 + $0x40] ss:$16 sps:$4 sm:$0xff]   ;;  %v427_v38 = vld [vmem:[%s3017_s7 + $0x68] sm:$0xff]  ;;  %v2391_v43 = vld [vmem:[%s3017_s7 + $0x74] ss:$16 sps:$4 sm:$0xff]   ;;  %s1551_s26 = ssub.s32 (%p2663_p5), 13, %s1550_s9 }
  0x78   : > { %v2384_v40 = vld [vmem:[%s3017_s7 + $0x48] ss:$16 sps:$4 sm:$0xff]   ;;  %v1856_v41 = vcombine.high %v427_v38, %v427_v38  ;;  %v1855_v44 = vcombine.low %v427_v38, %v427_v38  ;;  %v2394_v45 = vld [vmem:[%s3017_s7 + $0x7c] ss:$16 sps:$4 sm:$0xff]   ;;  %v2389_v46 = vld [vmem:[%s3017_s7 + $0x70] ss:$16 sps:$4 sm:$0xff]  }
  0x79   : > { %732 = vmatpush1.bf16.msra.mxu1 %v2943_v11  ;;  %v2395_v47 = vld [vmem:[%s3017_s7 + $0x94] ss:$16 sps:$4 sm:$0xff]   ;;  %v2392_v48 = vld [vmem:[%s3017_s7 + $0x78] ss:$16 sps:$4 sm:$0xff]   ;;  %v2397_v49 = vld [vmem:[%s3017_s7 + $0x90] ss:$16 sps:$4 sm:$0xff]  }
  0x7a   : > { %2027 = vmatpush3.bf16.msra.mxu0 %v2950_v12  ;;  %733 = vmatprep.subr.bf16.mxu1 %v2611_v1  ;;  %v2398_v50 = vld [vmem:[%s3017_s7 + $0x9c] ss:$16 sps:$4 sm:$0xff]   ;;  %v2401_v51 = vld [vmem:[%s3017_s7 + $0xb4] ss:$16 sps:$4 sm:$0xff]   ;;  %v2400_v52 = vld [vmem:[%s3017_s7 + $0x98] ss:$16 sps:$4 sm:$0xff]  }
  0x7b   : > { %2028 = vmatprep.subr.bf16.mxu0 %v2956_v13  ;;  %v1898_v53 = vld [vmem:[%s3017_s7 + $0xd0] sm:$0xff]  ;;  %v2404_v55 = vld [vmem:[%s3017_s7 + $0xbc] ss:$16 sps:$4 sm:$0xff]   ;;  %v2406_v58 = vld [vmem:[%s3017_s7 + $0xb8] ss:$16 sps:$4 sm:$0xff]   ;;  %p1552_p4 = scmp.lt.s32.totalorder (%p2663_p5), %s1551_s26, 7 }
  0x7c   : > { %v2403_v54 = vld [vmem:[%s3017_s7 + $0xb0] ss:$16 sps:$4 sm:$0xff]   ;;  %v1913_v56 = vcombine.high %v1898_v53, %v1898_v53  ;;  %v1899_v57 = vld [vmem:[%s3017_s7 + $0xd8] sm:$0xff]  ;;  %v1912_v59 = vcombine.low %v1898_v53, %v1898_v53  ;;  %v2413_v61 = vld [vmem:[%s3017_s7 + $0xe4] ss:$16 sps:$4 sm:$0xff]  }
  0x7d   : > { %734 = vmatpush1.bf16.msra.mxu1 %v2962_v14  ;;  %v1915_v60 = vcombine.high %v1899_v57, %v1899_v57  ;;  %v1914_v62 = vcombine.low %v1899_v57, %v1899_v57  ;;  %v2416_v63 = vld [vmem:[%s3017_s7 + $0xec] ss:$16 sps:$4 sm:$0xff]   ;;  %v2411_v23 = vld [vmem:[%s3017_s7 + $0xe0] ss:$16 sps:$4 sm:$0xff]   ;;  %v2417_v25 = vld [vmem:[%s3017_s7 + $0x104] ss:$16 sps:$4 sm:$0xff]  }
  0x7e   : > { %2029 = vmatpush3.bf16.msra.mxu0 %v2970_v15  ;;  %735 = vmatprep.subr.bf16.mxu1 %v2611_v1 }
  0x7f   : > { %2030 = vmatprep.subr.bf16.mxu0 %v2976_v16 }
  0x81   : > { %736 = vmatpush1.bf16.msra.mxu1 %v2984_v17 }
  0x82   : > { %2031 = vmatpush3.bf16.msra.mxu0 %v2991_v18  ;;  %737 = vmatprep.subr.bf16.mxu1 %v2611_v1 }
  0x83   : > { %2032 = vmatprep.subr.bf16.mxu0 %v2997_v19 }
  0x85   : > { %738 = vmatpush1.bf16.msra.mxu1 %v3002_v20 }
  0x86   : > { %2033 = vmatpush3.bf16.msra.mxu0 %v3008_v21  ;;  %739 = vmatprep.subr.bf16.mxu1 %v2611_v1 }
  0x87   : > { %2034 = vmatprep.subr.bf16.mxu0 %v3015_v22 }
  0x89   : > { %740 = vmatpush1.bf16.msra.mxu1 %v3025_v24 }
  0x8a   : > { %2035 = vmatpush3.bf16.msra.mxu0 %v3033_v26  ;;  %741 = vmatprep.subr.bf16.mxu1 %v2611_v1 }
  0x8b   : > { %2060 = vmatprep.subr.bf16.mxu0 %v2882_v0 }
  0x8d   : > { %694 = vmatmul.mubr.bf16.vlgmr.msra.gmra.mrb[0].mxu0 %v2366_v27  ;;  %742 = vmatpush1.bf16.msra.mxu1 %v3042_v28  ;;  %v2419_v27 = vld [vmem:[%s3017_s7 + $0x100] ss:$16 sps:$4 sm:$0xff]  }
  0x8e   : > { %950 = vmatprep.subr.bf16.mxu1 %v2611_v1  ;;  %2061 = vmatpush3.bf16.msra.mxu0 %v2894_v3 }
  0x8f   : > { %2062 = vmatprep.subr.bf16.mxu0 %v2900_v4  ;;  %701 = vmatprep.mubr.bf16.mxu0 %v2373_v29  ;;  %v2414_v29 = vld [vmem:[%s3017_s7 + $0xe8] ss:$16 sps:$4 sm:$0xff]  }
  0x90   : > { %758 = vmatmul.mubr.bf16.vlgmr.msra.gmra.mrb[0].mxu1 %v2370_v30  ;;  %v2422_v30 = vld [vmem:[%s3017_s7 + $0x108] ss:$16 sps:$4 sm:$0xff]  }
  0x91   : > { %951 = vmatpush1.bf16.msra.mxu1 %v2888_v2  ;;  %1883 = vmatprep.mubr.msk.bf16.mxu1 %vm648_vm0, %v2376_v31 }
  0x92   : > { %952 = vmatprep.subr.bf16.mxu1 %v2611_v1  ;;  %2063 = vmatpush3.bf16.msra.mxu0 %v2913_v6 }
  0x93   : > { %2064 = vmatprep.subr.bf16.mxu0 %v2918_v7 }
  0x95   : > { %953 = vmatpush1.bf16.msra.mxu1 %v2907_v5  ;;  %702 = vmatmul.mubr.bf16.gmra.mrb[4].mxu0 %v2375_v32  ;;  %v2450_v32 = vld [vmem:[%s3017_s7 + $0x198] ss:$16 sps:$4 sm:$0xff]  }
  0x96   : > { %954 = vmatprep.subr.bf16.mxu1 %v2611_v1  ;;  %2065 = vmatpush3.bf16.msra.mxu0 %v2931_v9 }
  0x97   : > { %2066 = vmatprep.subr.bf16.mxu0 %v2937_v10  ;;  %709 = vmatprep.mubr.bf16.mxu0 %v2379_v33 }
  0x98   : > { %766 = vmatmul.mubr.bf16.gmra.mrb[4].mxu1 %v2378_v34 }
  0x99   : > { %955 = vmatpush1.bf16.msra.mxu1 %v2924_v8  ;;  %1884 = vmatprep.mubr.msk.bf16.mxu1 %vm648_vm0, %v2382_v35 }
  0x9a   : > { %956 = vmatprep.subr.bf16.mxu1 %v2611_v1  ;;  %2067 = vmatpush3.bf16.msra.mxu0 %v2950_v12 }
  0x9b   : > { %2068 = vmatprep.subr.bf16.mxu0 %v2956_v13 }
  0x9d   : > { %957 = vmatpush1.bf16.msra.mxu1 %v2943_v11  ;;  %710 = vmatmul.mubr.bf16.gmra.mrb[8].mxu0 %v2381_v37 }
  0x9e   : > { %958 = vmatprep.subr.bf16.mxu1 %v2611_v1  ;;  %2069 = vmatpush3.bf16.msra.mxu0 %v2970_v15 }
  0x9f   : > { %2070 = vmatprep.subr.bf16.mxu0 %v2976_v16  ;;  %717 = vmatprep.mubr.bf16.mxu0 %v1854_v39 }
  0xa0   : > { %774 = vmatmul.mubr.bf16.gmra.mrb[8].mxu1 %v2384_v40 }
  0xa1   : > { %959 = vmatpush1.bf16.msra.mxu1 %v2962_v14  ;;  %1885 = vmatprep.mubr.msk.bf16.mxu1 %vm648_vm0, %v1856_v41 }
  0xa2   : > { %960 = vmatprep.subr.bf16.mxu1 %v2611_v1  ;;  %2071 = vmatpush3.bf16.msra.mxu0 %v2991_v18 }
  0xa3   : > { %2072 = vmatprep.subr.bf16.mxu0 %v2997_v19 }
  0xa5   : > { %961 = vmatpush1.bf16.msra.mxu1 %v2984_v17  ;;  %718 = vmatmul.mubr.bf16.gmra.mrb[12].mxu0 %v1853_v42 }
  0xa6   : > { %962 = vmatprep.subr.bf16.mxu1 %v2611_v1  ;;  %2073 = vmatpush3.bf16.msra.mxu0 %v3008_v21 }
  0xa7   : > { %2074 = vmatprep.subr.bf16.mxu0 %v3015_v22  ;;  %918 = vmatprep.mubr.bf16.mxu0 %v2391_v43 }
  0xa8   : > { %782 = vmatmul.mubr.bf16.gmra.mrb[12].mxu1 %v1855_v44 }
  0xa9   : > { %963 = vmatpush1.bf16.msra.mxu1 %v3002_v20  ;;  %1916 = vmatprep.mubr.msk.bf16.mxu1 %vm648_vm0, %v2394_v45 }
  0xaa   : > { %964 = vmatprep.subr.bf16.mxu1 %v2611_v1  ;;  %2075 = vmatpush3.bf16.msra.mxu0 %v3033_v26 }
  0xab   : > { %2100 = vmatprep.subr.bf16.mxu0 %v2882_v0 }
  0xad   : > { %965 = vmatpush1.bf16.msra.mxu1 %v3025_v24  ;;  %919 = vmatmul.mubr.bf16.vlgmr.msra.gmra.mrb[16].mxu0 %v2389_v46 }
  0xae   : > { %966 = vmatprep.subr.bf16.mxu1 %v2611_v1  ;;  %2101 = vmatpush3.bf16.msra.mxu0 %v2894_v3 }
  0xaf   : > { %926 = vmatprep.mubr.bf16.mxu0 %v2395_v47  ;;  %2102 = vmatprep.subr.bf16.mxu0 %v2900_v4 }
  0xb1   : > { %967 = vmatpush1.bf16.msra.mxu1 %v3042_v28 }
  0xb2   : > { %1182 = vmatprep.subr.bf16.mxu1 %v2611_v1  ;;  %2103 = vmatpush3.bf16.msra.mxu0 %v2913_v6 }
  0xb3   : > { %2104 = vmatprep.subr.bf16.mxu0 %v2918_v7 }
  0xb4   : > { %983 = vmatmul.mubr.bf16.vlgmr.msra.gmra.mrb[16].mxu1 %v2392_v48 }
  0xb5   : > { %1183 = vmatpush1.bf16.msra.mxu1 %v2888_v2  ;;  %927 = vmatmul.mubr.bf16.gmra.mrb[20].mxu0 %v2397_v49 }
  0xb6   : > { %1184 = vmatprep.subr.bf16.mxu1 %v2611_v1  ;;  %1917 = vmatprep.mubr.msk.bf16.mxu1 %vm648_vm0, %v2398_v50 }
  0xb7   : > { %2105 = vmatpush3.bf16.msra.mxu0 %v2931_v9  ;;  %934 = vmatprep.mubr.bf16.mxu0 %v2401_v51 }
  0xb8   : > { %2106 = vmatprep.subr.bf16.mxu0 %v2937_v10 }
  0xb9   : > { %1185 = vmatpush1.bf16.msra.mxu1 %v2907_v5 }
  0xba   : > { %1186 = vmatprep.subr.bf16.mxu1 %v2611_v1 }
  0xbb   : > { %2107 = vmatpush3.bf16.msra.mxu0 %v2950_v12 }
  0xbc   : > { %991 = vmatmul.mubr.bf16.gmra.mrb[20].mxu1 %v2400_v52  ;;  %2108 = vmatprep.subr.bf16.mxu0 %v2956_v13 }
  0xbd   : > { %1187 = vmatpush1.bf16.msra.mxu1 %v2924_v8  ;;  %935 = vmatmul.mubr.bf16.gmra.mrb[24].mxu0 %v2403_v54 }
  0xbe   : > { %1188 = vmatprep.subr.bf16.mxu1 %v2611_v1  ;;  %1918 = vmatprep.mubr.msk.bf16.mxu1 %vm648_vm0, %v2404_v55 }
  0xbf   : > { %2109 = vmatpush3.bf16.msra.mxu0 %v2970_v15  ;;  %942 = vmatprep.mubr.bf16.mxu0 %v1913_v56 }
  0xc0   : > { %2110 = vmatprep.subr.bf16.mxu0 %v2976_v16 }
  0xc1   : > { %1189 = vmatpush1.bf16.msra.mxu1 %v2943_v11 }
  0xc2   : > { %1190 = vmatprep.subr.bf16.mxu1 %v2611_v1 }
  0xc3   : > { %2111 = vmatpush3.bf16.msra.mxu0 %v2991_v18 }
  0xc4   : > { %999 = vmatmul.mubr.bf16.gmra.mrb[24].mxu1 %v2406_v58  ;;  %2112 = vmatprep.subr.bf16.mxu0 %v2997_v19 }
  0xc5   : > { %1191 = vmatpush1.bf16.msra.mxu1 %v2962_v14  ;;  %943 = vmatmul.mubr.bf16.gmra.mrb[28].mxu0 %v1912_v59 }
  0xc6   : > { %1192 = vmatprep.subr.bf16.mxu1 %v2611_v1  ;;  %1919 = vmatprep.mubr.msk.bf16.mxu1 %vm648_vm0, %v1915_v60 }
  0xc7   : > { %2113 = vmatpush3.bf16.msra.mxu0 %v3008_v21  ;;  %1150 = vmatprep.mubr.bf16.mxu0 %v2413_v61 }
  0xc8   : > { %2114 = vmatprep.subr.bf16.mxu0 %v3015_v22 }
  0xc9   : > { %1193 = vmatpush1.bf16.msra.mxu1 %v2984_v17 }
  0xca   : > { %1194 = vmatprep.subr.bf16.mxu1 %v2611_v1 }
  0xcb   : > { %2115 = vmatpush3.bf16.msra.mxu0 %v3033_v26 }
  0xcc   : > { %1007 = vmatmul.mubr.bf16.gmra.mrb[28].mxu1 %v1914_v62  ;;  %2140 = vmatprep.subr.bf16.mxu0 %v2882_v0  ;;  %v2423_v0 = vld [vmem:[%s3017_s7 + $0x124] ss:$16 sps:$4 sm:$0xff]  }
  0xcd   : > { %1195 = vmatpush1.bf16.msra.mxu1 %v3002_v20  ;;  %1950 = vmatprep.mubr.msk.bf16.mxu1 %vm648_vm0, %v2416_v63 }
  0xce   : > { %1196 = vmatprep.subr.bf16.mxu1 %v2611_v1  ;;  %1151 = vmatmul.mubr.bf16.vlgmr.msra.gmra.mrb[32].mxu0 %v2411_v23 }
  0xcf   : > { %2141 = vmatpush3.bf16.msra.mxu0 %v2894_v3  ;;  %1158 = vmatprep.mubr.bf16.mxu0 %v2417_v25  ;;  %v2420_v3 = vld [vmem:[%s3017_s7 + $0x10c] ss:$16 sps:$4 sm:$0xff]  }
  0xd0   : > { %2142 = vmatprep.subr.bf16.mxu0 %v2900_v4  ;;  %v1932_v4 = vld [vmem:[%s3017_s7 + $0x140] sm:$0xff] }
  0xd1   : > { %1197 = vmatpush1.bf16.msra.mxu1 %v3025_v24 }
  0xd2   : > { %1198 = vmatprep.subr.bf16.mxu1 %v2611_v1 }
  0xd3   : > { %2143 = vmatpush3.bf16.msra.mxu0 %v2913_v6  ;;  %v2425_v6 = vld [vmem:[%s3017_s7 + $0x120] ss:$16 sps:$4 sm:$0xff]  }
  0xd4   : > { %2144 = vmatprep.subr.bf16.mxu0 %v2918_v7  ;;  %v1947_v7 = vcombine.high %v1932_v4, %v1932_v4 }
  0xd5   : > { %1199 = vmatpush1.bf16.msra.mxu1 %v3042_v28 }
  0xd6   : > { %1414 = vmatprep.subr.bf16.mxu1 %v2611_v1  ;;  %1159 = vmatmul.mubr.bf16.gmra.mrb[36].mxu0 %v2419_v27 }
  0xd7   : > { %2145 = vmatpush3.bf16.msra.mxu0 %v2931_v9  ;;  %1166 = vmatprep.mubr.bf16.mxu0 %v2423_v0  ;;  %v2426_v9 = vld [vmem:[%s3017_s7 + $0x12c] ss:$16 sps:$4 sm:$0xff]  }
  0xd8   : > { %1215 = vmatmul.mubr.bf16.vlgmr.msra.gmra.mrb[32].mxu1 %v2414_v29  ;;  %2146 = vmatprep.subr.bf16.mxu0 %v2937_v10  ;;  %v1933_v10 = vld [vmem:[%s3017_s7 + $0x148] sm:$0xff] }
  0xd9   : > { %1415 = vmatpush1.bf16.msra.mxu1 %v2888_v2  ;;  %1951 = vmatprep.mubr.msk.bf16.mxu1 %vm648_vm0, %v2420_v3  ;;  %v1946_v2 = vcombine.low %v1932_v4, %v1932_v4 }
  0xda   : > { %1416 = vmatprep.subr.bf16.mxu1 %v2611_v1 }
  0xdb   : > { %2147 = vmatpush3.bf16.msra.mxu0 %v2950_v12  ;;  %v2428_v12 = vld [vmem:[%s3017_s7 + $0x128] ss:$16 sps:$4 sm:$0xff]  }
  0xdc   : > { %2148 = vmatprep.subr.bf16.mxu0 %v2956_v13  ;;  %v1949_v13 = vcombine.high %v1933_v10, %v1933_v10 }
  0xdd   : > { %1417 = vmatpush1.bf16.msra.mxu1 %v2907_v5  ;;  %v2435_v5 = vld [vmem:[%s3017_s7 + $0x154] ss:$16 sps:$4 sm:$0xff]  }
  0xde   : > { %1418 = vmatprep.subr.bf16.mxu1 %v2611_v1  ;;  %1167 = vmatmul.mubr.bf16.gmra.mrb[40].mxu0 %v2425_v6 }
  0xdf   : > { %2149 = vmatpush3.bf16.msra.mxu0 %v2970_v15  ;;  %1174 = vmatprep.mubr.bf16.mxu0 %v1947_v7  ;;  %v1948_v15 = vcombine.low %v1933_v10, %v1933_v10 }
  0xe0   : > { %1223 = vmatmul.mubr.bf16.gmra.mrb[36].mxu1 %v2422_v30  ;;  %2150 = vmatprep.subr.bf16.mxu0 %v2976_v16  ;;  %v2438_v16 = vld [vmem:[%s3017_s7 + $0x15c] ss:$16 sps:$4 sm:$0xff]  }
  0xe1   : > { %1419 = vmatpush1.bf16.msra.mxu1 %v2924_v8  ;;  %1952 = vmatprep.mubr.msk.bf16.mxu1 %vm648_vm0, %v2426_v9  ;;  %v2433_v8 = vld [vmem:[%s3017_s7 + $0x150] ss:$16 sps:$4 sm:$0xff]  }
  0xe2   : > { %1420 = vmatprep.subr.bf16.mxu1 %v2611_v1 }
  0xe3   : > { %2151 = vmatpush3.bf16.msra.mxu0 %v2991_v18  ;;  %v2445_v18 = vld [vmem:[%s3017_s7 + $0x194] ss:$16 sps:$4 sm:$0xff]  }
  0xe4   : > { %2152 = vmatprep.subr.bf16.mxu0 %v2997_v19  ;;  %v1966_v19 = vld [vmem:[%s3017_s7 + $0x1b0] sm:$0xff] }
  0xe5   : > { %1421 = vmatpush1.bf16.msra.mxu1 %v2943_v11  ;;  %v2439_v11 = vld [vmem:[%s3017_s7 + $0x174] ss:$16 sps:$4 sm:$0xff]   ;;  %v1980_v31 = vcombine.low %v1966_v19, %v1966_v19 }
  0xe6   : > { %1422 = vmatprep.subr.bf16.mxu1 %v2611_v1  ;;  %1175 = vmatmul.mubr.bf16.gmra.mrb[44].mxu0 %v1946_v2 }
  0xe7   : > { %2153 = vmatpush3.bf16.msra.mxu0 %v3008_v21  ;;  %1382 = vmatprep.mubr.bf16.mxu0 %v2435_v5  ;;  %v2447_v21 = vld [vmem:[%s3017_s7 + $0x190] ss:$16 sps:$4 sm:$0xff]  }
  0xe8   : > { %1231 = vmatmul.mubr.bf16.gmra.mrb[40].mxu1 %v2428_v12  ;;  %2154 = vmatprep.subr.bf16.mxu0 %v3015_v22  ;;  %v1981_v22 = vcombine.high %v1966_v19, %v1966_v19 }
  0xe9   : > { %1423 = vmatpush1.bf16.msra.mxu1 %v2962_v14  ;;  %1953 = vmatprep.mubr.msk.bf16.mxu1 %vm648_vm0, %v1949_v13  ;;  %v2441_v14 = vld [vmem:[%s3017_s7 + $0x170] ss:$16 sps:$4 sm:$0xff]  }
  0xea   : > { %1424 = vmatprep.subr.bf16.mxu1 %v2611_v1 }
  0xeb   : > { %2155 = vmatpush3.bf16.msra.mxu0 %v3033_v26  ;;  %v2444_v26 = vld [vmem:[%s3017_s7 + $0x178] ss:$16 sps:$4 sm:$0xff]  }
  0xed   : > { %1425 = vmatpush1.bf16.msra.mxu1 %v2984_v17  ;;  %v2436_v17 = vld [vmem:[%s3017_s7 + $0x158] ss:$16 sps:$4 sm:$0xff]  }
  0xee   : > { %1426 = vmatprep.subr.bf16.mxu1 %v2611_v1  ;;  %1383 = vmatmul.mubr.bf16.vlgmr.msra.gmra.mrb[48].mxu0 %v2433_v8 }
  0xef   : > { %1390 = vmatprep.mubr.bf16.mxu0 %v2439_v11 }
  0xf0   : > { %1239 = vmatmul.mubr.bf16.gmra.mrb[44].mxu1 %v1948_v15 }
  0xf1   : > { %1427 = vmatpush1.bf16.msra.mxu1 %v3002_v20  ;;  %1984 = vmatprep.mubr.msk.bf16.mxu1 %vm648_vm0, %v2438_v16  ;;  %v2442_v20 = vld [vmem:[%s3017_s7 + $0x17c] ss:$16 sps:$4 sm:$0xff]  }
  0xf2   : > { %1428 = vmatprep.subr.bf16.mxu1 %v2611_v1 }
  0xf5   : > { %1429 = vmatpush1.bf16.msra.mxu1 %v3025_v24  ;;  %v2448_v24 = vld [vmem:[%s3017_s7 + $0x19c] ss:$16 sps:$4 sm:$0xff]  }
  0xf6   : > { %1430 = vmatprep.subr.bf16.mxu1 %v2611_v1  ;;  %1391 = vmatmul.mubr.bf16.gmra.mrb[52].mxu0 %v2441_v14  ;;  %v1967_v1 = vld [vmem:[%s3017_s7 + $0x1b8] sm:$0xff] }
  0xf7   : > { %1398 = vmatprep.mubr.bf16.mxu0 %v2445_v18  ;;  %v1983_v33 = vcombine.high %v1967_v1, %v1967_v1 }
  0xf9   : > { %1431 = vmatpush1.bf16.msra.mxu1 %v3042_v28  ;;  %v1982_v28 = vcombine.low %v1967_v1, %v1967_v1 }
  0xfc   : > { %1447 = vmatmul.mubr.bf16.vlgmr.msra.gmra.mrb[48].mxu1 %v2436_v17 }
  0xfd   : > { %1985 = vmatprep.mubr.msk.bf16.mxu1 %vm648_vm0, %v2442_v20 }
  0xfe   : > { %1399 = vmatmul.mubr.bf16.gmra.mrb[56].mxu0 %v2447_v21 }
  0xff   : > { %1406 = vmatprep.mubr.bf16.mxu0 %v1981_v22 }
 0x104   : > { %1455 = vmatmul.mubr.bf16.gmra.mrb[52].mxu1 %v2444_v26 }
 0x105   : > { %1986 = vmatprep.mubr.msk.bf16.mxu1 %vm648_vm0, %v2448_v24 }
 0x106   : > { %1407 = vmatmul.mubr.bf16.gmra.mrb[60].mxu0 %v1980_v31 }
 0x10c   : > { %1463 = vmatmul.mubr.bf16.gmra.mrb[56].mxu1 %v2450_v32 }
 0x10d   : > { %1987 = vmatprep.mubr.msk.bf16.mxu1 %vm648_vm0, %v1983_v33 }
 0x114   : > { %1471 = vmatmul.mubr.bf16.gmra.mrb[60].mxu1 %v1982_v28 }
 0x160   : > { %v2036_v34 = vpop.f32.mrb[0].mxu0 }
 0x161   : > { %v2037_v35 = vpop.f32.mrb[1].mxu0 }
 0x162   : > { %v2038_v36 = vadd.f32 %v2037_v35, %v2036_v34  ;;  %v2039_v37 = vpop.f32.mrb[2].mxu0 }
 0x163   : > { %v2040_v38 = vpop.f32.mrb[3].mxu0  ;;  %v759_v39 = vpop.f32.mrb[0].mxu1 }
 0x164   : > { %v2041_v40 = vadd.f32 %v2040_v38, %v2039_v37  ;;  %v3217_v41 = vadd.f32 %v2038_v36, %v759_v39  ;;  %v761_v42 = vpop.f32.mrb[1].mxu1 }
 0x165   : > { %v762_v43 = vpop.f32.mrb[2].mxu1 }
 0x166   : > { %v3219_v44 = vadd.f32 %v2041_v40, %v762_v43  ;;  %v764_v45 = vpop.f32.mrb[3].mxu1 }
 0x168   : > { %v2042_v46 = vpop.f32.mrb[4].mxu0 }
 0x169   : > { %v2043_v47 = vpop.f32.mrb[5].mxu0 }
 0x16a   : > { %v2044_v48 = vadd.f32 %v2043_v47, %v2042_v46  ;;  %v2045_v49 = vpop.f32.mrb[6].mxu0 }
 0x16b   : > { %v767_v50 = vpop.f32.mrb[4].mxu1  ;;  %v2046_v51 = vpop.f32.mrb[7].mxu0 }
 0x16c   : > { %v3221_v52 = vadd.f32 %v2044_v48, %v767_v50  ;;  %v2047_v53 = vadd.f32 %v2046_v51, %v2045_v49  ;;  %v769_v54 = vpop.f32.mrb[5].mxu1 }
 0x16d   : > { %v770_v55 = vpop.f32.mrb[6].mxu1 }
 0x16e   : > { %v3223_v56 = vadd.f32 %v2047_v53, %v770_v55  ;;  %v772_v57 = vpop.f32.mrb[7].mxu1 }
 0x170   : > { %v2048_v58 = vpop.f32.mrb[8].mxu0 }
 0x171   : > { %v2049_v59 = vpop.f32.mrb[9].mxu0 }
 0x172   : > { %v2050_v60 = vadd.f32 %v2049_v59, %v2048_v58  ;;  %v2051_v61 = vpop.f32.mrb[10].mxu0 }
 0x173   : > { %v775_v62 = vpop.f32.mrb[8].mxu1  ;;  %v2052_v63 = vpop.f32.mrb[11].mxu0 }
 0x174   : > { %v3225_v23 = vadd.f32 %v2050_v60, %v775_v62  ;;  %v2053_v25 = vadd.f32 %v2052_v63, %v2051_v61  ;;  %v777_v27 = vpop.f32.mrb[9].mxu1 }
 0x175   : > { %v778_v0 = vpop.f32.mrb[10].mxu1 }
 0x176   : > { %v3227_v29 = vadd.f32 %v2053_v25, %v778_v0  ;;  %v780_v3 = vpop.f32.mrb[11].mxu1 }
 0x178   : > { %v2054_v4 = vpop.f32.mrb[12].mxu0 }
 0x179   : > { %v2055_v6 = vpop.f32.mrb[13].mxu0 }
 0x17a   : > { %v2056_v7 = vadd.f32 %v2055_v6, %v2054_v4  ;;  %v2057_v30 = vpop.f32.mrb[14].mxu0 }
 0x17b   : > { %v783_v9 = vpop.f32.mrb[12].mxu1  ;;  %v2058_v2 = vpop.f32.mrb[15].mxu0 }
 0x17c   : > { %v3229_v10 = vadd.f32 %v2056_v7, %v783_v9  ;;  %v785_v5 = vpop.f32.mrb[13].mxu1 }
 0x17d   : > { %v786_v12 = vpop.f32.mrb[14].mxu1 }
 0x17e   : > { %v787_v13 = vpop.f32.mrb[15].mxu1 }
 0x180   : > { %v2076_v8 = vpop.f32.mrb[16].mxu0 }
 0x181   : > { %v2077_v11 = vpop.f32.mrb[17].mxu0 }
 0x182   : > { %v2078_v15 = vadd.f32 %v2077_v11, %v2076_v8  ;;  %v2079_v16 = vpop.f32.mrb[18].mxu0 }
 0x183   : > { %v2080_v14 = vpop.f32.mrb[19].mxu0 }
 0x184   : > { %v2081_v18 = vadd.f32 %v2080_v14, %v2079_v16 }
 0x187   : > { %v984_v17 = vpop.f32.mrb[16].mxu1 }
 0x188   : > { %v3231_v19 = vadd.f32 %v2078_v15, %v984_v17  ;;  %v986_v20 = vpop.f32.mrb[17].mxu1  ;;  %v2082_v21 = vpop.f32.mrb[20].mxu0 }
 0x189   : > { %v987_v22 = vpop.f32.mrb[18].mxu1  ;;  %v2083_v26 = vpop.f32.mrb[21].mxu0 }
 0x18a   : > { %v1014_v24 = vmax.f32 %v3217_v41, %v3231_v19  ;;  %v988_v31 = vadd.f32 %v2081_v18, %v987_v22  ;;  %v989_v1 = vpop.f32.mrb[19].mxu1  ;;  %v2084_v32 = vadd.f32 %v2083_v26, %v2082_v21  ;;  %v2085_v33 = vpop.f32.mrb[22].mxu0 }
 0x18b   : > { %v2086_v28 = vpop.f32.mrb[23].mxu0 }
 0x18c   : > { %v1015_v34 = vmax.f32 %v3219_v44, %v988_v31  ;;  %v2087_v35 = vadd.f32 %v2086_v28, %v2085_v33 }
 0x18f   : > { %v992_v36 = vpop.f32.mrb[20].mxu1 }
 0x190   : > { %v3236_v37 = vadd.f32 %v2084_v32, %v992_v36  ;;  %v994_v38 = vpop.f32.mrb[21].mxu1  ;;  %v2088_v39 = vpop.f32.mrb[24].mxu0 }
 0x191   : > { %v995_v40 = vpop.f32.mrb[22].mxu1  ;;  %v2089_v42 = vpop.f32.mrb[25].mxu0 }
 0x192   : > { %v1016_v43 = vmax.f32 %v3221_v52, %v3236_v37  ;;  %v996_v45 = vadd.f32 %v2087_v35, %v995_v40  ;;  %v997_v41 = vpop.f32.mrb[23].mxu1  ;;  %v2090_v46 = vadd.f32 %v2089_v42, %v2088_v39  ;;  %v2091_v47 = vpop.f32.mrb[26].mxu0 }
 0x193   : > { %v2092_v48 = vpop.f32.mrb[27].mxu0 }
 0x194   : > { %v1017_v49 = vmax.f32 %v3223_v56, %v996_v45  ;;  %v2093_v50 = vadd.f32 %v2092_v48, %v2091_v47 }
 0x197   : > { %v1000_v44 = vpop.f32.mrb[24].mxu1 }
 0x198   : > { %v1001_v51 = vadd.f32 %v2090_v46, %v1000_v44  ;;  %v1002_v53 = vpop.f32.mrb[25].mxu1  ;;  %v2094_v54 = vpop.f32.mrb[28].mxu0 }
 0x199   : > { %v1003_v55 = vpop.f32.mrb[26].mxu1  ;;  %v2095_v57 = vpop.f32.mrb[29].mxu0 }
 0x19a   : > { %v1018_v58 = vmax.f32 %v3225_v23, %v1001_v51  ;;  %v1004_v59 = vadd.f32 %v2093_v50, %v1003_v55  ;;  %v1005_v60 = vpop.f32.mrb[27].mxu1  ;;  %v2096_v61 = vadd.f32 %v2095_v57, %v2094_v54  ;;  %v2097_v52 = vpop.f32.mrb[30].mxu0 }
 0x19b   : > { %v2098_v62 = vpop.f32.mrb[31].mxu0 }
 0x19c   : > { %v1019_v63 = vmax.f32 %v3227_v29, %v1004_v59 }
 0x19f   : > { %v1008_v25 = vpop.f32.mrb[28].mxu1 }
 0x1a0   : > { %v3243_v27 = vadd.f32 %v2096_v61, %v1008_v25  ;;  %v1010_v56 = vpop.f32.mrb[29].mxu1 }
 0x1a1   : > { %v1011_v0 = vpop.f32.mrb[30].mxu1  ;;  %v2116_v3 = vpop.f32.mrb[32].mxu0 }
 0x1a2   : > { %v1020_v4 = vmax.f32 %v3229_v10, %v3243_v27  ;;  %v1012_v6 = vpop.f32.mrb[31].mxu1  ;;  %v2117_v7 = vpop.f32.mrb[33].mxu0 }
 0x1a3   : > { %v2118_v30 = vadd.f32 %v2117_v7, %v2116_v3  ;;  %v2119_v23 = vpop.f32.mrb[34].mxu0 }
 0x1a4   : > { %v2120_v9 = vpop.f32.mrb[35].mxu0 }
 0x1a5   : > { %v2121_v2 = vadd.f32 %v2120_v9, %v2119_v23 }
 0x1a9   : > { %v2122_v5 = vpop.f32.mrb[36].mxu0 }
 0x1aa   : > { %v2123_v12 = vpop.f32.mrb[37].mxu0 }
 0x1ab   : > { %v1216_v13 = vpop.f32.mrb[32].mxu1  ;;  %v2124_v8 = vadd.f32 %v2123_v12, %v2122_v5  ;;  %v2125_v29 = vpop.f32.mrb[38].mxu0 }
 0x1ac   : > { %v1217_v11 = vadd.f32 %v2118_v30, %v1216_v13  ;;  %v1218_v15 = vpop.f32.mrb[33].mxu1  ;;  %v2126_v16 = vpop.f32.mrb[39].mxu0 }
 0x1ad   : > { %v1219_v14 = vpop.f32.mrb[34].mxu1  ;;  %v2127_v18 = vadd.f32 %v2126_v16, %v2125_v29 }
 0x1ae   : > { %v3247_v17 = vmax.f32 %v1014_v24, %v1217_v11  ;;  %v1220_v19 = vadd.f32 %v2121_v2, %v1219_v14  ;;  %v1221_v10 = vpop.f32.mrb[35].mxu1  ;;  %v3264_v2 = vld [vmem:[%s3356_s2] ss:$0 sm:$0xff] }
 0x1b0   : > { %v3249_v20 = vmax.f32 %v1015_v34, %v1220_v19 }
 0x1b1   : > { %v2128_v21 = vpop.f32.mrb[40].mxu0 }
 0x1b2   : > { %v2129_v22 = vpop.f32.mrb[41].mxu0 }
 0x1b3   : > { %v1224_v26 = vpop.f32.mrb[36].mxu1  ;;  %v2130_v31 = vadd.f32 %v2129_v22, %v2128_v21  ;;  %v2131_v1 = vpop.f32.mrb[42].mxu0 }
 0x1b4   : > { %v1225_v32 = vadd.f32 %v2124_v8, %v1224_v26  ;;  %v1226_v33 = vpop.f32.mrb[37].mxu1  ;;  %v2132_v28 = vpop.f32.mrb[43].mxu0 }
 0x1b5   : > { %v1227_v35 = vpop.f32.mrb[38].mxu1  ;;  %v2133_v36 = vadd.f32 %v2132_v28, %v2131_v1 }
 0x1b6   : > { %v3251_v37 = vmax.f32 %v1016_v43, %v1225_v32  ;;  %v1228_v38 = vadd.f32 %v2127_v18, %v1227_v35  ;;  %v1229_v39 = vpop.f32.mrb[39].mxu1 }
 0x1b8   : > { %v3253_v24 = vmax.f32 %v1017_v49, %v1228_v38 }
 0x1b9   : > { %v2134_v40 = vpop.f32.mrb[44].mxu0 }
 0x1ba   : > { %v2135_v42 = vpop.f32.mrb[45].mxu0 }
 0x1bb   : > { %v1232_v34 = vpop.f32.mrb[40].mxu1  ;;  %v2136_v45 = vadd.f32 %v2135_v42, %v2134_v40  ;;  %v2137_v41 = vpop.f32.mrb[46].mxu0 }
 0x1bc   : > { %v1233_v46 = vadd.f32 %v2130_v31, %v1232_v34  ;;  %v1234_v47 = vpop.f32.mrb[41].mxu1  ;;  %v2138_v48 = vpop.f32.mrb[47].mxu0 }
 0x1bd   : > { %v1235_v50 = vpop.f32.mrb[42].mxu1 }
 0x1be   : > { %v3255_v44 = vmax.f32 %v1018_v58, %v1233_v46  ;;  %v1236_v51 = vadd.f32 %v2133_v36, %v1235_v50  ;;  %v1237_v53 = vpop.f32.mrb[43].mxu1 }
 0x1c0   : > { %v3257_v54 = vmax.f32 %v1019_v63, %v1236_v51 }
 0x1c1   : > { %v2156_v43 = vpop.f32.mrb[48].mxu0 }
 0x1c2   : > { %v2157_v55 = vpop.f32.mrb[49].mxu0 }
 0x1c3   : > { %v1240_v57 = vpop.f32.mrb[44].mxu1  ;;  %v2158_v49 = vadd.f32 %v2157_v55, %v2156_v43  ;;  %v2159_v59 = vpop.f32.mrb[50].mxu0 }
 0x1c4   : > { %v1241_v60 = vadd.f32 %v2136_v45, %v1240_v57  ;;  %v1242_v61 = vpop.f32.mrb[45].mxu1  ;;  %v2160_v52 = vpop.f32.mrb[51].mxu0 }
 0x1c5   : > { %v1243_v62 = vpop.f32.mrb[46].mxu1  ;;  %v2161_v25 = vadd.f32 %v2160_v52, %v2159_v59 }
 0x1c6   : > { %v3259_v27 = vmax.f32 %v1020_v4, %v1241_v60  ;;  %v1244_v56 = vpop.f32.mrb[47].mxu1 }
 0x1c9   : > { %v2162_v0 = vpop.f32.mrb[52].mxu0 }
 0x1ca   : > { %v2163_v58 = vpop.f32.mrb[53].mxu0 }
 0x1cb   : > { %v2164_v3 = vadd.f32 %v2163_v58, %v2162_v0  ;;  %v2165_v6 = vpop.f32.mrb[54].mxu0 }
 0x1cc   : > { %v2166_v63 = vpop.f32.mrb[55].mxu0 }
 0x1cd   : > { %v2167_v7 = vadd.f32 %v2166_v63, %v2165_v6 }
 0x1cf   : > { %v1448_v30 = vpop.f32.mrb[48].mxu1 }
 0x1d0   : > { %v1449_v23 = vadd.f32 %v2158_v49, %v1448_v30  ;;  %v1450_v9 = vpop.f32.mrb[49].mxu1 }
 0x1d1   : > { %v1451_v5 = vpop.f32.mrb[50].mxu1  ;;  %v2168_v12 = vpop.f32.mrb[56].mxu0 }
 0x1d2   : > { %v1478_v4 = vmax.f32 %v3247_v17, %v1449_v23  ;;  %v1452_v13 = vadd.f32 %v2161_v25, %v1451_v5  ;;  %v1453_v8 = vpop.f32.mrb[51].mxu1  ;;  %v2169_v29 = vpop.f32.mrb[57].mxu0 }
 0x1d3   : > { %v2170_v11 = vadd.f32 %v2169_v29, %v2168_v12  ;;  %v2171_v15 = vpop.f32.mrb[58].mxu0 }
 0x1d4   : > { %v1492_v16 = vadd.f32 %v3264_v2, %v1478_v4  ;;  %v1479_v14 = vmax.f32 %v3249_v20, %v1452_v13  ;;  %v2172_v18 = vpop.f32.mrb[59].mxu0 }
 0x1d5   : > { %v2173_v19 = vadd.f32 %v2172_v18, %v2171_v15 }
 0x1d6   : > { %v1499_v10 = vmax.f32 %v1492_v16, 0.0  ;;  %v1493_v21 = vadd.f32 %v3264_v2, %v1479_v14 }
 0x1d7   : > { %v1456_v22 = vpop.f32.mrb[52].mxu1 }
 0x1d8   : > { %v2011_v26 = vpack.c.bf16 %v1499_v10, %v1499_v10  ;;  %v1500_v17 = vmax.f32 %v1493_v21, 0.0  ;;  %v1457_v31 = vadd.f32 %v2164_v3, %v1456_v22  ;;  %v1458_v1 = vpop.f32.mrb[53].mxu1 }
 0x1d9   : > { %v1459_v32 = vpop.f32.mrb[54].mxu1  ;;  %v2174_v33 = vpop.f32.mrb[60].mxu0 }
 0x1da   : > { %1536 = vst.msk [vmem:[%s3272_s12] sm:$0xf] %vm1535_vm1, %v2011_v26  ;;  %v2012_v20 = vpack.c.bf16 %v1500_v17, %v1500_v17  ;;  %v1480_v28 = vmax.f32 %v3251_v37, %v1457_v31  ;;  %v1460_v35 = vadd.f32 %v2167_v7, %v1459_v32  ;;  %v1461_v36 = vpop.f32.mrb[55].mxu1  ;;  %v2175_v38 = vpop.f32.mrb[61].mxu0 }
 0x1db   : > { %v2176_v39 = vadd.f32 %v2175_v38, %v2174_v33  ;;  %v2177_v40 = vpop.f32.mrb[62].mxu0 }
 0x1dc   : > { %1537 = vst.msk [vmem:[%s3272_s12 + $0x4] sm:$0xf] %vm1535_vm1, %v2012_v20  ;;  %v1494_v42 = vadd.f32 %v3264_v2, %v1480_v28  ;;  %v1481_v34 = vmax.f32 %v3253_v24, %v1460_v35  ;;  %v2178_v45 = vpop.f32.mrb[63].mxu0 }
 0x1de   : > { %v1501_v41 = vmax.f32 %v1494_v42, 0.0  ;;  %v1495_v46 = vadd.f32 %v3264_v2, %v1481_v34 }
 0x1df   : > { %v1464_v47 = vpop.f32.mrb[56].mxu1 }
 0x1e0   : > { %v2013_v48 = vpack.c.bf16 %v1501_v41, %v1501_v41  ;;  %v1502_v37 = vmax.f32 %v1495_v46, 0.0  ;;  %v1465_v50 = vadd.f32 %v2170_v11, %v1464_v47  ;;  %v1466_v51 = vpop.f32.mrb[57].mxu1 }
 0x1e1   : > { %v1467_v53 = vpop.f32.mrb[58].mxu1 }
 0x1e2   : > { %1538 = vst.msk [vmem:[%s3272_s12 + $0x8] sm:$0xf] %vm1535_vm1, %v2013_v48  ;;  %v2014_v43 = vpack.c.bf16 %v1502_v37, %v1502_v37  ;;  %v1482_v55 = vmax.f32 %v3255_v44, %v1465_v50  ;;  %v1468_v57 = vadd.f32 %v2173_v19, %v1467_v53  ;;  %v1469_v49 = vpop.f32.mrb[59].mxu1 }
 0x1e4   : > { %1539 = vst.msk [vmem:[%s3272_s12 + $0xc] sm:$0xf] %vm1535_vm1, %v2014_v43  ;;  %v1496_v24 = vadd.f32 %v3264_v2, %v1482_v55  ;;  %v1483_v59 = vmax.f32 %v3257_v54, %v1468_v57 }
 0x1e6   : > { %v1503_v60 = vmax.f32 %v1496_v24, 0.0  ;;  %v1497_v61 = vadd.f32 %v3264_v2, %v1483_v59 }
 0x1e7   : > { %v1472_v52 = vpop.f32.mrb[60].mxu1 }
 0x1e8   : > { %v2015_v62 = vpack.c.bf16 %v1503_v60, %v1503_v60  ;;  %v1504_v25 = vmax.f32 %v1497_v61, 0.0  ;;  %v1473_v56 = vadd.f32 %v2176_v39, %v1472_v52  ;;  %v1474_v0 = vpop.f32.mrb[61].mxu1 }
 0x1e9   : > { %v1475_v58 = vpop.f32.mrb[62].mxu1 }
 0x1ea   : > { %1540 = vst.msk [vmem:[%s3272_s12 + $0x10] sm:$0xf] %vm1535_vm1, %v2015_v62  ;;  %v2016_v44 = vpack.c.bf16 %v1504_v25, %v1504_v25  ;;  %v1484_v3 = vmax.f32 %v3259_v27, %v1473_v56  ;;  %v1476_v6 = vpop.f32.mrb[63].mxu1 }
 0x1ec   : > { %1541 = vst.msk [vmem:[%s3272_s12 + $0x14] sm:$0xf] %vm1535_vm1, %v2016_v44  ;;  %v1498_v54 = vadd.f32 %v3264_v2, %v1484_v3  ;;  %1549 = sbr.rel (!%p2663_p5) target bundleno = 565 (0x235), region = 66 }
 0x1ee   : > { %v1505_v63 = vmax.f32 %v1498_v54, 0.0 }
 0x1f0   : > { %v2017_v7 = vpack.c.bf16 %v1505_v63, %v1505_v63 }
 0x1f2   : > { %1542 = vst.msk [vmem:[%s3272_s12 + $0x18] sm:$0xf] %vm1535_vm1, %v2017_v7 }
 0x1f3   : > { %s3380_s26 = smov (!%p1552_p4, %s1551_s26), 7 }
 0x1f4   : > { %s1996_s28 = sshll.u32 %s3380_s26, 6 }
 0x1f5   : > { %p1999_p6 = scmp.eq.s32.totalorder %s1996_s28, 0 }
 0x1f6   : > { %2455 = sdivrem.u32 (!%p1999_p6), %s3380_s26, 7 }
 0x1f7   : > { %1560 = sbr.rel (%p1999_p6) target bundleno = 565 (0x235), region = 70 }
 0x1ff   : > { %s3311_s20 = spop.drf %2455 }
 0x200   : > { %p2000_p5 = scmp.le.s32.totalorder %s3311_s20, 0 }
 0x201   : > { %s3367_s15 = smov (!%p2000_p5), %s3305_s24  ;;  %s3368_s30 = smov (!%p2000_p5), %s3272_s12 }
 0x202   : > { %1781 = sbr.rel (%p2000_p5) target bundleno = 536 (0x218), region = 174  ;;  %s3320_s4 = smov (!%p2000_p5), 0  }
 0x203   : > { %s3322_s5 = smov (!%p2000_p5), 0  }
 0x209 LB: >> { %v1577_v27 = vld [vmem:[%s2585_s30] sm:$0xf]  ;;  %v1579_v30 = vld [vmem:[%s2585_s30 + $0x4] sm:$0xf]  ;;  %v1581_v23 = vld [vmem:[%s2585_s30 + $0x8] sm:$0xf]  ;;  %s2593_s5 = sphi %s3322_s5, %s1571_s5   ;;  %s2589_s4 = sphi %s3320_s4, %s3369_s4   ;;  %s2585_s30 = sphi %s3368_s30, %s1596_s30   ;;  %s2581_s15 = sphi %s3367_s15, %s1597_s15  }
 0x20a   : >> { %1578 = vst [vmem:[%s2581_s15] sm:$0xf] %v1577_v27  ;;  %1580 = vst [vmem:[%s2581_s15 + $0x4] sm:$0xf] %v1579_v30  ;;  %v1583_v9 = vld [vmem:[%s2585_s30 + $0xc] sm:$0xf]  ;;  %s1591_s6 = sadd.s32 1, %s2589_s4 }
 0x20b   : >> { %1582 = vst [vmem:[%s2581_s15 + $0x8] sm:$0xf] %v1581_v23  ;;  %v1585_v2 = vld [vmem:[%s2585_s30 + $0x10] sm:$0xf]  ;;  %v1587_v5 = vld [vmem:[%s2585_s30 + $0x14] sm:$0xf]  ;;  %p1592_p7 = scmp.ge.s32.totalorder %s1591_s6, %s3311_s20 }
 0x20c   : >> { %1584 = vst [vmem:[%s2581_s15 + $0xc] sm:$0xf] %v1583_v9  ;;  %1586 = vst [vmem:[%s2581_s15 + $0x10] sm:$0xf] %v1585_v2  ;;  %v1589_v12 = vld [vmem:[%s2585_s30 + $0x18] sm:$0xf] }
 0x20d   : >> { %1588 = vst [vmem:[%s2581_s15 + $0x14] sm:$0xf] %v1587_v5  ;;  %1590 = vst [vmem:[%s2581_s15 + $0x18] sm:$0xf] %v1589_v12  ;;  %s3382_s6 = smov (%p1592_p7, %s1591_s6), 0  ;;  %s1571_s5 = sadd.s32 1, %s2593_s5  }
 0x20e   : >> { %s1594_s7 = smul.u32 28, %s3382_s6  ;;  %p1570_p8 = scmp.ge.s32.totalorder %s1571_s5, %s3311_s20 }
 0x20f   : >> { %s3369_s4 = smov %s3382_s6 }
 0x210   : >> { %s1596_s30 = scalar_lea.vmem %s3272_s12, %s1594_s7 [#allocation3]   ;;  %s1597_s15 = scalar_lea.vmem %s3305_s24, %s1594_s7  }
 0x211   : > { %1573 = sbr.rel (!%p1570_p8) target bundleno = 521 (0x209), region = 180 }
 0x218 PF: > { %2457 = sdivrem.u32 %s3380_s26, 7 }
 0x219   : > { %s2001_s8 = smul.u32 28, %s3311_s20 }
 0x21b   : > { %s1602_s14 = scalar_lea.vmem %s3272_s12, %s2001_s8 [#allocation3]   ;;  %s1604_s10 = scalar_lea.vmem %s3305_s24, %s2001_s8  }
 0x221   : > { %s2458_s11 = spop.drf %2457 }
 0x222   : > { %p2003_p9 = scmp.le.s32.totalorder %s2458_s11, 0 }
 0x223   : > { %s2595_s17 = smov (!%p2003_p9), %s1604_s10   ;;  %s2599_s18 = smov (!%p2003_p9), %s1602_s14  }
 0x224   : > { %1795 = sbr.rel (%p2003_p9) target bundleno = 565 (0x235), region = 185  ;;  %s2603_s21 = smov (!%p2003_p9), 0  }
 0x225   : > { %s2607_s22 = smov (!%p2003_p9), 0  }
 0x22b LB: >> { %v1614_v4 = vld [vmem:[%s2601_s18] sm:$0xf]  ;;  %s1616_s23 = sadd.s32 1, %s2605_s21  ;;  %s1608_s22 = sadd.s32 1, %s2609_s22   ;;  %s2609_s22 = sphi %s2607_s22, %s1608_s22   ;;  %s2605_s21 = sphi %s2603_s21, %s2604_s21   ;;  %s2601_s18 = sphi %s2599_s18, %s1621_s18   ;;  %s2597_s17 = sphi %s2595_s17, %s1622_s17  }
 0x22c   : >> { %1615 = vst [vmem:[%s2597_s17] sm:$0xf] %v1614_v4  ;;  %p1617_p10 = scmp.ge.s32.totalorder %s1616_s23, %s2458_s11  ;;  %p1607_p11 = scmp.ge.s32.totalorder %s1608_s22, %s2458_s11 }
 0x22e   : >> { %s3384_s23 = smov (%p1617_p10, %s1616_s23), 0  ;;  %1610 = sbr.rel (!%p1607_p11) target bundleno = 555 (0x22b), region = 191 }
 0x22f   : >> { %s2004_s12 = sshll.u32 %s3384_s23, 2  ;;  %s2604_s21 = smov %s3384_s23  }
 0x230   : >> { %s1621_s18 = scalar_lea.vmem %s1602_s14, %s2004_s12 [#allocation3]   ;;  %s1622_s17 = scalar_lea.vmem %s1604_s10, %s2004_s12  }
 0x235 PF: > { %p10_p12 = scmp.ge.s32.totalorder %s2651_s16, 4   ;;  %s3370_s12 = smov %s2541_s13 }
 0x236   : > { %s3371_s13 = smov %s2661_s19  ;;  %s3372_s14 = smov %s2651_s16 }
 0x237   :  { %12 = sbr.rel (!%p10_p12) target bundleno = 2 (0x2), region = 202 }

// kernel: convnet_forward.5
= control target key start
LH: loop header
LB: loop body
LE: loop exit
PB: predicated region body
PF: predicated region fallthrough
CT: control target
= control target key end

     0   :  { %v227_v29 = vlaneseq  ;;  %v1581_v35 = vmov 1966171168   ;;  %s1938_s0 = inlined_call_operand.vmem [shape: bf16[2,1568], index: 0, kind: input, shape index: {}]   ;;  %s1939_s1 = inlined_call_operand.vmem [shape: bf16[1568,128], index: 1, kind: input, shape index: {}]   ;;  %s1940_s2 = inlined_call_operand.vmem [shape: f32[1,128], index: 2, kind: input, shape index: {}]   ;;  %s1941_s3 = inlined_call_operand.hbm [shape: f32[2,128], index: 3, kind: output, shape index: {}]  }
   0x1   :  { %v1457_v0 = vld [vmem:[%s1939_s1 + $0x40] sm:$0xff]   ;;  %v1461_v4 = vld [vmem:[%s1939_s1 + $0x48] sm:$0xff]   ;;  %v1465_v8 = vld [vmem:[%s1939_s1 + $0x50] sm:$0xff]   ;;  %v225_v36 = vunpack.c.l.s4 %v1581_v35 }
   0x2   :  { %v1458_v1 = vld [vmem:[%s1939_s1] sm:$0xff]   ;;  %1310 = vmatprep.subr.bf16.mxu0 %v1457_v0  ;;  %v1462_v5 = vld [vmem:[%s1939_s1 + $0x8] sm:$0xff]   ;;  %v1466_v9 = vld [vmem:[%s1939_s1 + $0x10] sm:$0xff]   ;;  %v228_v33 = vshrl.u32 %v227_v29, 7 }
   0x3   :  { %v1459_v2 = vld [vmem:[%s1939_s1 + $0xc0] sm:$0xff]   ;;  %1311 = vmatpush3.bf16.msra.mxu0 %v1458_v1  ;;  %v1463_v6 = vld [vmem:[%s1939_s1 + $0xc8] sm:$0xff]   ;;  %v1467_v10 = vld [vmem:[%s1939_s1 + $0xd0] sm:$0xff]   ;;  %v226_v39 = vunpack.c.0.s8 %v225_v36 }
   0x4   :  { %v1460_v3 = vld [vmem:[%s1939_s1 + $0x80] sm:$0xff]   ;;  %1332 = vmatprep.subr.bf16.mxu1 %v1459_v2  ;;  %1312 = vmatprep.subr.bf16.mxu0 %v1461_v4  ;;  %v1464_v7 = vld [vmem:[%s1939_s1 + $0x88] sm:$0xff]   ;;  %v1468_v11 = vld [vmem:[%s1939_s1 + $0x90] sm:$0xff]  }
   0x5   :  { %1333 = vmatpush3.bf16.msra.mxu1 %v1460_v3  ;;  %v1469_v12 = vld [vmem:[%s1939_s1 + $0x58] sm:$0xff]   ;;  %v1473_v16 = vld [vmem:[%s1939_s1 + $0x60] sm:$0xff]   ;;  %v1477_v20 = vld [vmem:[%s1939_s1 + $0x68] sm:$0xff]   ;;  %v1710_v41 = vsub.s32 %v226_v39, %v228_v33 }
   0x6   :  { %1334 = vmatprep.subr.bf16.mxu1 %v1463_v6  ;;  %v1470_v13 = vld [vmem:[%s1939_s1 + $0x18] sm:$0xff]   ;;  %v1474_v17 = vld [vmem:[%s1939_s1 + $0x20] sm:$0xff]   ;;  %v1478_v21 = vld [vmem:[%s1939_s1 + $0x28] sm:$0xff]  }
   0x7   :  { %1313 = vmatpush3.bf16.msra.mxu0 %v1462_v5  ;;  %v1471_v14 = vld [vmem:[%s1939_s1 + $0xd8] sm:$0xff]   ;;  %v1475_v18 = vld [vmem:[%s1939_s1 + $0xe0] sm:$0xff]   ;;  %v1479_v22 = vld [vmem:[%s1939_s1 + $0xe8] sm:$0xff]  }
   0x8   :  { %1314 = vmatprep.subr.bf16.mxu0 %v1465_v8  ;;  %v1472_v15 = vld [vmem:[%s1939_s1 + $0x98] sm:$0xff]   ;;  %v1476_v19 = vld [vmem:[%s1939_s1 + $0xa0] sm:$0xff]   ;;  %v1480_v23 = vld [vmem:[%s1939_s1 + $0xa8] sm:$0xff]  }
   0x9   :  { %1335 = vmatpush3.bf16.msra.mxu1 %v1464_v7  ;;  %v1481_v24 = vld [vmem:[%s1939_s1 + $0x70] sm:$0xff]   ;;  %v1485_v28 = vld [vmem:[%s1939_s1 + $0x78] sm:$0xff]   ;;  %v1490_v34 = vld [vmem:[%s1939_s1 + $0x140] sm:$0xff]  }
   0xa   :  { %1336 = vmatprep.subr.bf16.mxu1 %v1467_v10  ;;  %v1482_v25 = vld [vmem:[%s1939_s1 + $0x30] sm:$0xff]   ;;  %v1486_v30 = vld [vmem:[%s1939_s1 + $0x38] sm:$0xff]   ;;  %v16_v37 = vld [vmem:[%s1938_s0] sm:$0xff] }
   0xb   :  { %1315 = vmatpush3.bf16.msra.mxu0 %v1466_v9  ;;  %v1483_v26 = vld [vmem:[%s1939_s1 + $0xf0] sm:$0xff]   ;;  %v1487_v31 = vld [vmem:[%s1939_s1 + $0xf8] sm:$0xff]   ;;  %v223_v38 = vcombine.high %v16_v37, %v16_v37  ;;  %v1492_v40 = vld [vmem:[%s1939_s1 + $0x1c0] sm:$0xff]   ;;  %v230_v42 = vrot.slane %v16_v37, %v1710_v41 }
   0xc   :  { %1316 = vmatprep.subr.bf16.mxu0 %v1469_v12  ;;  %v1484_v27 = vld [vmem:[%s1939_s1 + $0xb0] sm:$0xff]   ;;  %v1488_v32 = vld [vmem:[%s1939_s1 + $0xb8] sm:$0xff]   ;;  %v1491_v48 = vld [vmem:[%s1939_s1 + $0x100] sm:$0xff]  }
   0xd   :  { %1337 = vmatpush3.bf16.msra.mxu1 %v1468_v11  ;;  %v1714_v43 = vrot.slane %v223_v38, %v1710_v41  ;;  %v238_v44 = vcombine.high %v230_v42, %v230_v42  ;;  %v246_v45 = vrot.slane %v230_v42, %v1710_v41  ;;  %v1494_v51 = vld [vmem:[%s1939_s1 + $0x148] sm:$0xff]   ;;  %v1493_v53 = vld [vmem:[%s1939_s1 + $0x180] sm:$0xff]   ;;  %v1498_v57 = vld [vmem:[%s1939_s1 + $0x150] sm:$0xff]  }
   0xe   :  { %1338 = vmatprep.subr.bf16.mxu1 %v1471_v14  ;;  %v1496_v54 = vld [vmem:[%s1939_s1 + $0x1c8] sm:$0xff]   ;;  %v1500_v59 = vld [vmem:[%s1939_s1 + $0x1d0] sm:$0xff]   ;;  %v1502_v61 = vld [vmem:[%s1939_s1 + $0x158] sm:$0xff]  }
   0xf   :  { %1317 = vmatpush3.bf16.msra.mxu0 %v1470_v13  ;;  %v239_v46 = vcombine.high %v1714_v43, %v1714_v43  ;;  %v260_v47 = vrot.slane %v238_v44, %v1710_v41  ;;  %v268_v50 = vcombine.high %v246_v45, %v246_v45  ;;  %v1495_v56 = vld [vmem:[%s1939_s1 + $0x108] sm:$0xff]   ;;  %v1499_v60 = vld [vmem:[%s1939_s1 + $0x110] sm:$0xff]   ;;  %v1504_v63 = vld [vmem:[%s1939_s1 + $0x1d8] sm:$0xff]  }
  0x10   :  { %1318 = vmatprep.subr.bf16.mxu0 %v1473_v16  ;;  %v1497_v58 = vld [vmem:[%s1939_s1 + $0x188] sm:$0xff]   ;;  %v1501_v62 = vld [vmem:[%s1939_s1 + $0x190] sm:$0xff]   ;;  %v1503_v0 = vld [vmem:[%s1939_s1 + $0x118] sm:$0xff]  }
  0x11   :  { %1339 = vmatpush3.bf16.msra.mxu1 %v1472_v15  ;;  %v267_v49 = vrot.slane %v239_v46, %v1710_v41  ;;  %947 = vmatprep.mubr.bf16.mxu0 %v260_v47  ;;  %v270_v52 = vcombine.high %v260_v47, %v260_v47  ;;  %v1506_v1 = vld [vmem:[%s1939_s1 + $0x160] sm:$0xff]   ;;  %v1505_v2 = vld [vmem:[%s1939_s1 + $0x198] sm:$0xff]   ;;  %v1510_v5 = vld [vmem:[%s1939_s1 + $0x168] sm:$0xff]  }
  0x12   :  { %1340 = vmatprep.subr.bf16.mxu1 %v1475_v18  ;;  %v1508_v3 = vld [vmem:[%s1939_s1 + $0x1e0] sm:$0xff]   ;;  %v1512_v7 = vld [vmem:[%s1939_s1 + $0x1e8] sm:$0xff]   ;;  %v1514_v9 = vld [vmem:[%s1939_s1 + $0x170] sm:$0xff]  }
  0x13   :  { %1319 = vmatpush3.bf16.msra.mxu0 %v1474_v17  ;;  %v271_v55 = vcombine.high %v267_v49, %v267_v49  ;;  %987 = vmatprep.mubr.bf16.mxu1 %v270_v52  ;;  %v1507_v4 = vld [vmem:[%s1939_s1 + $0x120] sm:$0xff]   ;;  %v1511_v8 = vld [vmem:[%s1939_s1 + $0x128] sm:$0xff]   ;;  %v1516_v11 = vld [vmem:[%s1939_s1 + $0x1f0] sm:$0xff]   ;;  %v253_v17 = vrot.slane %v1714_v43, %v1710_v41 }
  0x14   :  { %1320 = vmatprep.subr.bf16.mxu0 %v1477_v20  ;;  %v1509_v6 = vld [vmem:[%s1939_s1 + $0x1a0] sm:$0xff]   ;;  %v1513_v10 = vld [vmem:[%s1939_s1 + $0x1a8] sm:$0xff]   ;;  %v1515_v12 = vld [vmem:[%s1939_s1 + $0x130] sm:$0xff]  }
  0x15   :  { %1341 = vmatpush3.bf16.msra.mxu1 %v1476_v19  ;;  %v1518_v13 = vld [vmem:[%s1939_s1 + $0x178] sm:$0xff]   ;;  %v1517_v14 = vld [vmem:[%s1939_s1 + $0x1b0] sm:$0xff]   ;;  %v1522_v18 = vld [vmem:[%s1939_s1 + $0x240] sm:$0xff]  }
  0x16   :  { %1342 = vmatprep.subr.bf16.mxu1 %v1479_v22  ;;  %v1520_v15 = vld [vmem:[%s1939_s1 + $0x1f8] sm:$0xff]   ;;  %v1524_v20 = vld [vmem:[%s1939_s1 + $0x2c0] sm:$0xff]   ;;  %v269_v22 = vcombine.high %v253_v17, %v253_v17  ;;  %v1532_v29 = vld [vmem:[%s1939_s1 + $0x2d0] sm:$0xff]  }
  0x17   :  { %1321 = vmatpush3.bf16.msra.mxu0 %v1478_v21  ;;  %v1519_v16 = vld [vmem:[%s1939_s1 + $0x138] sm:$0xff]   ;;  %v1523_v21 = vld [vmem:[%s1939_s1 + $0x200] sm:$0xff]   ;;  %v1542_v39 = vld [vmem:[%s1939_s1 + $0x268] sm:$0xff]  }
  0x18   :  { %1322 = vmatprep.subr.bf16.mxu0 %v1481_v24  ;;  %v1521_v19 = vld [vmem:[%s1939_s1 + $0x1b8] sm:$0xff]   ;;  %v1525_v24 = vld [vmem:[%s1939_s1 + $0x280] sm:$0xff]   ;;  %v1544_v42 = vld [vmem:[%s1939_s1 + $0x2e8] sm:$0xff]  }
  0x19   :  { %1343 = vmatpush3.bf16.msra.mxu1 %v1480_v23  ;;  %v1526_v23 = vld [vmem:[%s1939_s1 + $0x248] sm:$0xff]   ;;  %v1536_v33 = vld [vmem:[%s1939_s1 + $0x2d8] sm:$0xff]   ;;  %v1538_v35 = vld [vmem:[%s1939_s1 + $0x260] sm:$0xff]  }
  0x1a   :  { %1344 = vmatprep.subr.bf16.mxu1 %v1483_v26  ;;  %v1527_v26 = vld [vmem:[%s1939_s1 + $0x208] sm:$0xff]   ;;  %v1537_v36 = vld [vmem:[%s1939_s1 + $0x298] sm:$0xff]   ;;  %v1540_v37 = vld [vmem:[%s1939_s1 + $0x2e0] sm:$0xff]  }
  0x1b   :  { %1323 = vmatpush3.bf16.msra.mxu0 %v1482_v25  ;;  %v1528_v25 = vld [vmem:[%s1939_s1 + $0x2c8] sm:$0xff]   ;;  %v1539_v38 = vld [vmem:[%s1939_s1 + $0x220] sm:$0xff]   ;;  %v1546_v44 = vld [vmem:[%s1939_s1 + $0x270] sm:$0xff]  }
  0x1c   :  { %1324 = vmatprep.subr.bf16.mxu0 %v1485_v28  ;;  %v1529_v28 = vld [vmem:[%s1939_s1 + $0x288] sm:$0xff]  }
  0x1d   :  { %1345 = vmatpush3.bf16.msra.mxu1 %v1484_v27  ;;  %v1530_v27 = vld [vmem:[%s1939_s1 + $0x250] sm:$0xff]   ;;  %v1543_v43 = vld [vmem:[%s1939_s1 + $0x228] sm:$0xff]  }
  0x1e   :  { %1346 = vmatprep.subr.bf16.mxu1 %v1487_v31  ;;  %v1534_v31 = vld [vmem:[%s1939_s1 + $0x258] sm:$0xff]   ;;  %v1545_v46 = vld [vmem:[%s1939_s1 + $0x2a8] sm:$0xff]  }
  0x1f   :  { %1325 = vmatpush3.bf16.msra.mxu0 %v1486_v30  ;;  %v1531_v30 = vld [vmem:[%s1939_s1 + $0x210] sm:$0xff]  }
  0x20   :  { %1354 = vmatprep.subr.bf16.mxu0 %v1490_v34  ;;  %v1535_v34 = vld [vmem:[%s1939_s1 + $0x218] sm:$0xff]  }
  0x21   :  { %1347 = vmatpush3.bf16.msra.mxu1 %v1488_v32  ;;  %v1533_v32 = vld [vmem:[%s1939_s1 + $0x290] sm:$0xff]  }
  0x22   :  { %1376 = vmatprep.subr.bf16.mxu1 %v1492_v40  ;;  %948 = vmatmul.mubr.bf16.vlgmr.msra.gmra.mrb[0].mxu0 %v246_v45  ;;  %v1541_v40 = vld [vmem:[%s1939_s1 + $0x2a0] sm:$0xff]   ;;  %v17_v45 = vld [vmem:[%s1938_s0 + $0x8] sm:$0x1f] }
  0x23   :  { %1355 = vmatpush3.bf16.msra.mxu0 %v1491_v48  ;;  %1027 = vmatprep.mubr.bf16.mxu0 %v267_v49  ;;  %v279_v47 = vrot.slane %v17_v45, %v1710_v41  ;;  %v1548_v48 = vld [vmem:[%s1939_s1 + $0x2f0] sm:$0xff]  }
  0x24   :  { %988 = vmatmul.mubr.bf16.vlgmr.msra.gmra.mrb[0].mxu1 %v268_v50  ;;  %1356 = vmatprep.subr.bf16.mxu0 %v1494_v51 }
  0x25   :  { %1377 = vmatpush3.bf16.msra.mxu1 %v1493_v53  ;;  %1067 = vmatprep.mubr.bf16.mxu1 %v271_v55 }
  0x26   :  { %1378 = vmatprep.subr.bf16.mxu1 %v1496_v54 }
  0x27   :  { %1357 = vmatpush3.bf16.msra.mxu0 %v1495_v56 }
  0x28   :  { %1358 = vmatprep.subr.bf16.mxu0 %v1498_v57 }
  0x29   :  { %1379 = vmatpush3.bf16.msra.mxu1 %v1497_v58 }
  0x2a   :  { %1380 = vmatprep.subr.bf16.mxu1 %v1500_v59 }
  0x2b   :  { %1359 = vmatpush3.bf16.msra.mxu0 %v1499_v60 }
  0x2c   :  { %1360 = vmatprep.subr.bf16.mxu0 %v1502_v61 }
  0x2d   :  { %1381 = vmatpush3.bf16.msra.mxu1 %v1501_v62 }
  0x2e   :  { %1382 = vmatprep.subr.bf16.mxu1 %v1504_v63 }
  0x2f   :  { %1361 = vmatpush3.bf16.msra.mxu0 %v1503_v0 }
  0x30   :  { %1362 = vmatprep.subr.bf16.mxu0 %v1506_v1 }
  0x31   :  { %1383 = vmatpush3.bf16.msra.mxu1 %v1505_v2 }
  0x32   :  { %1384 = vmatprep.subr.bf16.mxu1 %v1508_v3 }
  0x33   :  { %1363 = vmatpush3.bf16.msra.mxu0 %v1507_v4 }
  0x34   :  { %1364 = vmatprep.subr.bf16.mxu0 %v1510_v5 }
  0x35   :  { %1385 = vmatpush3.bf16.msra.mxu1 %v1509_v6 }
  0x36   :  { %1386 = vmatprep.subr.bf16.mxu1 %v1512_v7 }
  0x37   :  { %1365 = vmatpush3.bf16.msra.mxu0 %v1511_v8 }
  0x38   :  { %1366 = vmatprep.subr.bf16.mxu0 %v1514_v9 }
  0x39   :  { %1387 = vmatpush3.bf16.msra.mxu1 %v1513_v10 }
  0x3a   :  { %1388 = vmatprep.subr.bf16.mxu1 %v1516_v11 }
  0x3b   :  { %1367 = vmatpush3.bf16.msra.mxu0 %v1515_v12 }
  0x3c   :  { %1368 = vmatprep.subr.bf16.mxu0 %v1518_v13 }
  0x3d   :  { %1389 = vmatpush3.bf16.msra.mxu1 %v1517_v14 }
  0x3e   :  { %1390 = vmatprep.subr.bf16.mxu1 %v1520_v15 }
  0x3f   :  { %1369 = vmatpush3.bf16.msra.mxu0 %v1519_v16 }
  0x40   :  { %1398 = vmatprep.subr.bf16.mxu0 %v1522_v18 }
  0x41   :  { %1391 = vmatpush3.bf16.msra.mxu1 %v1521_v19 }
  0x42   :  { %1028 = vmatmul.mubr.bf16.vlgmr.msra.gmra.mrb[4].mxu0 %v253_v17  ;;  %1420 = vmatprep.subr.bf16.mxu1 %v1524_v20 }
  0x43   :  { %1399 = vmatpush3.bf16.msra.mxu0 %v1523_v21 }
  0x44   :  { %1068 = vmatmul.mubr.bf16.vlgmr.msra.gmra.mrb[4].mxu1 %v269_v22  ;;  %1400 = vmatprep.subr.bf16.mxu0 %v1526_v23 }
  0x45   :  { %1421 = vmatpush3.bf16.msra.mxu1 %v1525_v24 }
  0x46   :  { %1422 = vmatprep.subr.bf16.mxu1 %v1528_v25 }
  0x47   :  { %1401 = vmatpush3.bf16.msra.mxu0 %v1527_v26 }
  0x48   :  { %1402 = vmatprep.subr.bf16.mxu0 %v1530_v27 }
  0x49   :  { %1423 = vmatpush3.bf16.msra.mxu1 %v1529_v28 }
  0x4a   :  { %1424 = vmatprep.subr.bf16.mxu1 %v1532_v29 }
  0x4b   :  { %1403 = vmatpush3.bf16.msra.mxu0 %v1531_v30 }
  0x4c   :  { %1404 = vmatprep.subr.bf16.mxu0 %v1534_v31 }
  0x4d   :  { %1425 = vmatpush3.bf16.msra.mxu1 %v1533_v32 }
  0x4e   :  { %1426 = vmatprep.subr.bf16.mxu1 %v1536_v33 }
  0x4f   :  { %1405 = vmatpush3.bf16.msra.mxu0 %v1535_v34 }
  0x50   :  { %1406 = vmatprep.subr.bf16.mxu0 %v1538_v35 }
  0x51   :  { %1427 = vmatpush3.bf16.msra.mxu1 %v1537_v36 }
  0x52   :  { %1428 = vmatprep.subr.bf16.mxu1 %v1540_v37 }
  0x53   :  { %1407 = vmatpush3.bf16.msra.mxu0 %v1539_v38 }
  0x54   :  { %1408 = vmatprep.subr.bf16.mxu0 %v1542_v39 }
  0x55   :  { %1429 = vmatpush3.bf16.msra.mxu1 %v1541_v40 }
  0x56   :  { %1430 = vmatprep.subr.bf16.mxu1 %v1544_v42 }
  0x57   :  { %8 = vsyncpa [#allocation3], 0  ;;  %1409 = vmatpush3.bf16.msra.mxu0 %v1543_v43  ;;  %v1547_v49 = vld [vmem:[%s1939_s1 + $0x230] sm:$0xff]   ;;  %v287_v50 = vcombine.high %v279_v47, %v279_v47  ;;  %v1550_v51 = vld [vmem:[%s1939_s1 + $0x278] sm:$0xff]   ;;  %v294_v57 = vrot.slane %v279_v47, %v1710_v41  ;;  %v272_v59 = vcombine.high %v17_v45, %v17_v45  ;;  %v1582_v61 = vmov 0.0  }
  0x58   :  { %1410 = vmatprep.subr.bf16.mxu0 %v1546_v44  ;;  %v1549_v52 = vld [vmem:[%s1939_s1 + $0x2b0] sm:$0xff]   ;;  %v1552_v54 = vld [vmem:[%s1939_s1 + $0x2f8] sm:$0xff]   ;;  %v1555_v60 = vld [vmem:[%s1939_s1 + $0x300] sm:$0xff]   ;;  %vm1583_vm0 = vmmov 0   ;;  %vm911_vm1 = vcmask 261120  }
  0x59   :  { %1431 = vmatpush3.bf16.msra.mxu1 %v1545_v46  ;;  %v308_v53 = vrot.slane %v287_v50, %v1710_v41  ;;  %v1551_v55 = vld [vmem:[%s1939_s1 + $0x238] sm:$0xff]   ;;  %v309_v62 = vcombine.high %v294_v57, %v294_v57  ;;  %v286_v63 = vrot.slane %v272_v59, %v1710_v41  ;;  %v1556_v0 = vld [vmem:[%s1939_s1 + $0x308] sm:$0xff]   ;;  %v1210_v3 = vld [vmem:[%s1940_s2] ss:$0 sm:$0xff] }
  0x5a   :  { %1432 = vmatprep.subr.bf16.mxu1 %v1548_v48  ;;  %v1553_v58 = vld [vmem:[%s1939_s1 + $0x2b8] sm:$0xff]   ;;  %s1584_s1 = smov [#allocation2]  }
  0x5b   :  { %1411 = vmatpush3.bf16.msra.mxu0 %v1547_v49  ;;  %1107 = vmatprep.mubr.bf16.mxu0 %v308_v53  ;;  %v310_v56 = vcombine.high %v308_v53, %v308_v53  ;;  %v301_v1 = vrot.slane %v286_v63, %v1710_v41  ;;  %s1202_s2 = sshll.u32 %s1584_s1, 4  ;;  %s1203_s2 = int_to_ptr.vmem [resolvable:$true] %s1202_s2 }
  0x5c   :  { %1412 = vmatprep.subr.bf16.mxu0 %v1550_v51  ;;  %s1557_s24 = scalar_lea.vmem %s1203_s2, 32  ;;  %p1562_p1 = scmp.lt.s32.totalorder %s1203_s2, %s1203_s2 }
  0x5d   :  { %1433 = vmatpush3.bf16.msra.mxu1 %v1549_v52  ;;  %1147 = vmatprep.mubr.bf16.mxu1 %v310_v56  ;;  %p1558_p0 = scmp.ne.s32.totalorder %s1203_s2, %s1557_s24  ;;  %p1563_p2 = scmp.lt.s32.totalorder %s1557_s24, %s1557_s24 }
  0x5e   :  { %1434 = vmatprep.subr.bf16.mxu1 %v1552_v54 }
  0x5f   :  { %1413 = vmatpush3.bf16.msra.mxu0 %v1551_v55  ;;  %p1564_p3 = por %p1563_p2, %p1562_p1 }
  0x60   :  { %1445 = vmatprep.subr.bf16.mxu0 %v1582_v61 }
  0x61   :  { %1435 = vmatpush3.bf16.msra.mxu1 %v1553_v58  ;;  %p1565_p4 = pnand %p1564_p3, %p1558_p0 }
  0x62   :  { %1108 = vmatmul.mubr.bf16.vlgmr.msra.gmra.mrb[8].mxu0 %v294_v57 }
  0x63   :  { %1446 = vmatpush3.bf16.msra.mxu0 %v1555_v60  ;;  %1449 = vmatprep.mubr.msk.bf16.mxu0 %vm1583_vm0, %v1582_v61 }
  0x64   :  { %1148 = vmatmul.mubr.bf16.vlgmr.msra.gmra.mrb[8].mxu1 %v309_v62  ;;  %1447 = vmatprep.subr.bf16.mxu0 %v1582_v61 }
  0x67   :  { %1448 = vmatpush3.bf16.msra.mxu0 %v1556_v0 }
  0x6a   :  { %1450 = vmatmul.mubr.msk.bf16.vlgmr.msra.gmra.mrb[12].mxu0 %vm911_vm1, %v301_v1 }
  0xf5   :  { %v1326_v2 = vpop.f32.mrb[0].mxu0 }
  0xf6   :  { %v1327_v4 = vpop.f32.mrb[1].mxu0 }
  0xf7   :  { %v1328_v5 = vadd.f32 %v1327_v4, %v1326_v2  ;;  %v1329_v6 = vpop.f32.mrb[2].mxu0  ;;  %v1348_v7 = vpop.f32.mrb[0].mxu1 }
  0xf8   :  { %v1330_v8 = vpop.f32.mrb[3].mxu0  ;;  %v1349_v9 = vpop.f32.mrb[1].mxu1 }
  0xf9   :  { %v950_v10 = vadd.f32 %v1328_v5, %v1210_v3  ;;  %v1350_v11 = vadd.f32 %v1349_v9, %v1348_v7  ;;  %v1351_v12 = vpop.f32.mrb[2].mxu1 }
  0xfa   :  { %v1352_v13 = vpop.f32.mrb[3].mxu1 }
  0xfb   :  { %v990_v14 = vadd.f32 %v1350_v11, %v950_v10 }
 0x115   :  { %v1370_v41 = vpop.f32.mrb[4].mxu0 }
 0x116   :  { %v1371_v15 = vpop.f32.mrb[5].mxu0 }
 0x117   :  { %v1372_v16 = vadd.f32 %v1371_v15, %v1370_v41  ;;  %v1373_v17 = vpop.f32.mrb[6].mxu0  ;;  %v1392_v18 = vpop.f32.mrb[4].mxu1 }
 0x118   :  { %v1374_v19 = vpop.f32.mrb[7].mxu0  ;;  %v1393_v20 = vpop.f32.mrb[5].mxu1 }
 0x119   :  { %v1030_v21 = vadd.f32 %v1372_v16, %v990_v14  ;;  %v1394_v22 = vadd.f32 %v1393_v20, %v1392_v18  ;;  %v1395_v23 = vpop.f32.mrb[6].mxu1 }
 0x11a   :  { %v1396_v24 = vpop.f32.mrb[7].mxu1 }
 0x11b   :  { %v1070_v25 = vadd.f32 %v1394_v22, %v1030_v21 }
 0x135   :  { %v1414_v26 = vpop.f32.mrb[8].mxu0 }
 0x136   :  { %v1415_v27 = vpop.f32.mrb[9].mxu0 }
 0x137   :  { %v1416_v28 = vadd.f32 %v1415_v27, %v1414_v26  ;;  %v1436_v29 = vpop.f32.mrb[8].mxu1  ;;  %v1417_v30 = vpop.f32.mrb[10].mxu0 }
 0x138   :  { %v1437_v31 = vpop.f32.mrb[9].mxu1  ;;  %v1418_v32 = vpop.f32.mrb[11].mxu0 }
 0x139   :  { %v1110_v33 = vadd.f32 %v1416_v28, %v1070_v25  ;;  %v1438_v34 = vadd.f32 %v1437_v31, %v1436_v29  ;;  %v1439_v35 = vpop.f32.mrb[10].mxu1 }
 0x13a   :  { %v1440_v36 = vpop.f32.mrb[11].mxu1 }
 0x13b   :  { %v1150_v37 = vadd.f32 %v1438_v34, %v1110_v33 }
 0x13d   :  { %v1189_v38 = vpop.f32.mrb[12].mxu0 }
 0x13e   :  { %v1190_v39 = vadd.f32 %v1189_v38, %v1150_v37  ;;  %v1451_v40 = vpop.f32.mrb[13].mxu0 }
 0x13f   :  { %v1192_v42 = vpop.f32.mrb[14].mxu0 }
 0x140   :  { %1195 = vst [vmem:[#allocation2] sm:$0x3] %v1190_v39  ;;  %v1452_v43 = vpop.f32.mrb[15].mxu0 }
 0x141   :  { %1568 = shalt.err (!%p1565_p4)
}
 0x142   :  { %s1569_s27 = scalar_lea.hbm %s1941_s3, 32 }
 0x143   :  { %p1570_p5 = scmp.ne.s32.totalorder %s1941_s3, %s1569_s27  ;;  %p1573_p6 = scmp.lt.u32.totalorder %s1569_s27, %s1941_s3 }
 0x145   :  { %p1575_p7 = pnand %p1573_p6, %p1570_p5 }
 0x147   :  { %1578 = shalt.err (!%p1575_p7)
}
 0x148   :  { %1205 = dma.vmem_to_hbm [thread:$0]  %s1203_s2, 32, %s1941_s3, [#allocation3]  }
 0x149   :  { %1579 = dma.done.wait [#allocation3], 32  }
 0x14a   :  { %1580 = vsyncadd [#allocation3], 4294967264 }
 0x14b   :  { %1209 = vsyncpa [#allocation3], 1 }

</bundles_post_ra>
